<compile_context>
chip_gen: v5e
topology: v5e:2x2
jax: 0.10.0
libtpu: 0.0.40
codegen_flags: <defaults>
</compile_context>

<pallas_src>
import math

import jax
import jax.numpy as jnp
from jax import lax
from jax.experimental import pallas as pl
from jax.experimental.pallas import tpu as pltpu


# ------------------- hoisted layer-0 input projection kernel -------------------

def matmul_bias_kernel(x_ref, w_ref, b_ref, o_ref):
    o_ref[...] = (jnp.dot(x_ref[...], w_ref[...],
                          preferred_element_type=jnp.float32)
                  + b_ref[...]).astype(o_ref.dtype)


def input_projection(x2d, w_t, bias_row):
    """(N, I) @ (I, F) + (1, F) -> (N, F); row-tiled over N."""
    N, I = x2d.shape
    F = w_t.shape[1]
    TN = 256
    if N < TN:
        TN = ((N + 7) // 8) * 8          # round rows up to a sublane multiple
    n_pad = pl.cdiv(N, TN) * TN
    if n_pad != N:
        x2d = jnp.pad(x2d, ((0, n_pad - N), (0, 0)))
    out = pl.pallas_call(
        matmul_bias_kernel,
        out_shape=jax.ShapeDtypeStruct((n_pad, F), jnp.float32),
        grid_spec=pltpu.PrefetchScalarGridSpec(
            num_scalar_prefetch=0,
            grid=(n_pad // TN,),
            in_specs=[
                pl.BlockSpec((TN, I), lambda i: (i, 0)),
                pl.BlockSpec((I, F), lambda i: (0, 0)),
                pl.BlockSpec((1, F), lambda i: (0, 0)),
            ],
            out_specs=pl.BlockSpec((TN, F), lambda i: (i, 0)),
        ),
        compiler_params=pltpu.CompilerParams(
            dimension_semantics=("parallel",),
            vmem_limit_bytes=32 * 1024 * 1024),
    )(x2d, w_t, bias_row)
    return out[:N]


# -------------- fused 2-layer LSTM recurrence + linear head kernel -------------

def fused_lstm_kernel(gxi_ref, gxf_ref, gxg_ref, gxo_ref,
                      whh0_ref, wih1_ref, whh1_ref, b1_ref,
                      wreg_ref, breg_ref, y_ref,
                      h1_sc, c1_sc, h2_sc, c2_sc):
    """One time-chunk of the fused stack.

    gx*_ref : (T_CHUNK, B, H)  hoisted layer-0 gate inputs (x@W_ih0^T + bias),
                               one array per gate (i, f, g, o)
    whh0_ref: (4, H, H)        layer-0 recurrent weights, per-gate, transposed
    wih1_ref: (4, H, H)        layer-1 input weights, per-gate, transposed
    whh1_ref: (4, H, H)        layer-1 recurrent weights, per-gate, transposed
    b1_ref  : (4, 1, H)        layer-1 combined bias per gate
    wreg_ref: (H, O), breg_ref: (1, O)   linear head
    y_ref   : (T_CHUNK, B, O)  final output for this chunk
    h*_sc, c*_sc : (B, H)      persistent VMEM state for both layers
    """
    @pl.when(pl.program_id(0) == 0)
    def _():
        h1_sc[...] = jnp.zeros_like(h1_sc)
        c1_sc[...] = jnp.zeros_like(c1_sc)
        h2_sc[...] = jnp.zeros_like(h2_sc)
        c2_sc[...] = jnp.zeros_like(c2_sc)

    t_chunk = y_ref.shape[0]
    gx_refs = (gxi_ref, gxf_ref, gxg_ref, gxo_ref)

    def lstm_cell(h_prev, c_prev, gate_x, w_rec_ref):
        # gate_x: 4 pre-activation contributions (B, H); PyTorch order i, f, g, o
        pre = [gate_x[g] + jnp.dot(h_prev, w_rec_ref[g],
                                   preferred_element_type=jnp.float32)
               for g in range(4)]
        i_g = jax.nn.sigmoid(pre[0])
        f_g = jax.nn.sigmoid(pre[1])
        g_g = jnp.tanh(pre[2])
        o_g = jax.nn.sigmoid(pre[3])
        c_new = f_g * c_prev + i_g * g_g
        h_new = o_g * jnp.tanh(c_new)
        return h_new, c_new

    def step(tt, carry):
        h1, c1, h2, c2 = carry
        # layer 0: input contribution precomputed outside the recurrence
        gx0 = [gx_refs[g][tt] for g in range(4)]
        h1n, c1n = lstm_cell(h1, c1, gx0, whh0_ref)
        # layer 1: input is layer-0's fresh hidden state
        gx1 = [jnp.dot(h1n, wih1_ref[g], preferred_element_type=jnp.float32)
               + b1_ref[g] for g in range(4)]
        h2n, c2n = lstm_cell(h2, c2, gx1, whh1_ref)
        # fused linear head
        y = (jnp.dot(h2n, wreg_ref[...], preferred_element_type=jnp.float32)
             + breg_ref[...])
        y_ref[tt] = y.astype(y_ref.dtype)
        return (h1n, c1n, h2n, c2n)

    carry0 = (h1_sc[...], c1_sc[...], h2_sc[...], c2_sc[...])
    h1, c1, h2, c2 = lax.fori_loop(0, t_chunk, step, carry0, unroll=True)
    h1_sc[...] = h1
    c1_sc[...] = c1
    h2_sc[...] = h2
    c2_sc[...] = c2


# -------------------------------- Full module ---------------------------------

def lstm_reg_forward(x, params, t_chunk=8):
    """x: (S, B, input_size) -> (S, B, output_size)."""
    assert len(params["lstm"]) == 2, "fused kernel implements num_layers=2"
    S, B, I = x.shape
    l0, l1 = params["lstm"]
    H = l0["w_hh"].shape[1]
    O = params["reg_w"].shape[0]

    x = x.astype(jnp.float32)

    # (1) hoisted layer-0 input projection: one big MXU matmul over S*B rows.
    w_ih0_t = jnp.transpose(l0["w_ih"]).astype(jnp.float32)            # (I, 4H)
    bias0 = (l0["b_ih"] + l0["b_hh"]).reshape(1, 4 * H).astype(jnp.float32)
    gx2d = input_projection(x.reshape(S * B, I), w_ih0_t, bias0)       # (S*B, 4H)
    # split per-gate -> (4, S, B, H): lane-aligned gate tiles, no in-kernel slicing
    gx = gx2d.reshape(S, B, 4, H).transpose(2, 0, 1, 3)

    # (2) pad time dim to a multiple of the chunk size (padded steps are discarded)
    t_chunk = max(1, min(t_chunk, S))
    s_pad = pl.cdiv(S, t_chunk) * t_chunk
    if s_pad != S:
        gx = jnp.pad(gx, ((0, 0), (0, s_pad - S), (0, 0), (0, 0)))
    gxi, gxf, gxg, gxo = gx[0], gx[1], gx[2], gx[3]

    # per-gate, pre-transposed weights: (4, H, H); [g] = W_gate^T
    whh0_t = l0["w_hh"].reshape(4, H, H).transpose(0, 2, 1).astype(jnp.float32)
    wih1_t = l1["w_ih"].reshape(4, H, H).transpose(0, 2, 1).astype(jnp.float32)
    whh1_t = l1["w_hh"].reshape(4, H, H).transpose(0, 2, 1).astype(jnp.float32)
    b1 = (l1["b_ih"] + l1["b_hh"]).reshape(4, 1, H).astype(jnp.float32)
    wreg_t = jnp.transpose(params["reg_w"]).astype(jnp.float32)        # (H, O)
    breg = params["reg_b"].reshape(1, O).astype(jnp.float32)

    num_chunks = s_pad // t_chunk
    gate_spec = pl.BlockSpec((t_chunk, B, H), lambda c: (c, 0, 0))
    w_spec = pl.BlockSpec((4, H, H), lambda c: (0, 0, 0))

    y = pl.pallas_call(
        fused_lstm_kernel,
        out_shape=jax.ShapeDtypeStruct((s_pad, B, O), jnp.float32),
        grid_spec=pltpu.PrefetchScalarGridSpec(
            num_scalar_prefetch=0,
            grid=(num_chunks,),
            in_specs=[
                gate_spec, gate_spec, gate_spec, gate_spec,            # gx i,f,g,o
                w_spec,                                                # whh0_t
                w_spec,                                                # wih1_t
                w_spec,                                                # whh1_t
                pl.BlockSpec((4, 1, H), lambda c: (0, 0, 0)),          # b1
                pl.BlockSpec((H, O), lambda c: (0, 0)),                # wreg_t
                pl.BlockSpec((1, O), lambda c: (0, 0)),                # breg
            ],
            out_specs=pl.BlockSpec((t_chunk, B, O), lambda c: (c, 0, 0)),
            scratch_shapes=[pltpu.VMEM((B, H), jnp.float32)] * 4,      # h1,c1,h2,c2
        ),
        compiler_params=pltpu.CompilerParams(
            dimension_semantics=("arbitrary",),        # recurrence: sequential
            vmem_limit_bytes=32 * 1024 * 1024),
    )(gxi, gxf, gxg, gxo, whh0_t, wih1_t, whh1_t, b1, wreg_t, breg)
    return y[:S]


# ------------------------------ pure-JAX reference -----------------------------

def lstm_reg_reference(x, params):
    h_seq = x.astype(jnp.float32)
    for lp in params["lstm"]:
        H = lp["w_hh"].shape[1]
        B = h_seq.shape[1]
        w_ih, w_hh = lp["w_ih"], lp["w_hh"]
        b = lp["b_ih"] + lp["b_hh"]

        def cell(carry, x_t, w_ih=w_ih, w_hh=w_hh, b=b):
            h, c = carry
            gates = x_t @ w_ih.T + h @ w_hh.T + b
            i, f, g, o = jnp.split(gates, 4, axis=-1)
            c = jax.nn.sigmoid(f) * c + jax.nn.sigmoid(i) * jnp.tanh(g)
            h = jax.nn.sigmoid(o) * jnp.tanh(c)
            return (h, c), h

        init = (jnp.zeros((B, H), jnp.float32), jnp.zeros((B, H), jnp.float32))
        _, h_seq = lax.scan(cell, init, h_seq)
    S, B, H = h_seq.shape
    y = h_seq.reshape(S * B, H) @ params["reg_w"].T + params["reg_b"]
    return y.reshape(S, B, -1)


# ----------------------------------- params ------------------------------------

def init_params(key, input_size, hidden_size, output_size=1, num_layers=2):
    """PyTorch-style uniform(-1/sqrt(hidden), 1/sqrt(hidden)) init."""
    k = 1.0 / math.sqrt(hidden_size)
    params = {"lstm": []}
    for layer in range(num_layers):
        in_sz = input_size if layer == 0 else hidden_size
        key, k1, k2, k3, k4 = jax.random.split(key, 5)
        params["lstm"].append({
            "w_ih": jax.random.uniform(k1, (4 * hidden_size, in_sz),
                                       jnp.float32, -k, k),
            "w_hh": jax.random.uniform(k2, (4 * hidden_size, hidden_size),
                                       jnp.float32, -k, k),
            "b_ih": jax.random.uniform(k3, (4 * hidden_size,),
                                       jnp.float32, -k, k),
            "b_hh": jax.random.uniform(k4, (4 * hidden_size,),
                                       jnp.float32, -k, k),
        })
    key, k5, k6 = jax.random.split(key, 3)
    params["reg_w"] = jax.random.uniform(k5, (output_size, hidden_size),
                                         jnp.float32, -k, k)
    params["reg_b"] = jax.random.uniform(k6, (output_size,),
                                         jnp.float32, -k, k)
    return params


if __name__ == "__main__":
    SEQ, BATCH, INPUT_SIZE, HIDDEN, OUTPUT = 8, 2, 4, 32, 1

    key = jax.random.PRNGKey(0)
    key, xkey = jax.random.split(key)
    x = jax.random.normal(xkey, (SEQ, BATCH, INPUT_SIZE), jnp.float32)

    params = init_params(key, INPUT_SIZE, HIDDEN, OUTPUT, num_layers=2)

    y = jax.jit(lstm_reg_forward)(x, params)
    y = jax.block_until_ready(y)
    assert y.shape == (SEQ, BATCH, OUTPUT), y.shape
    assert bool(jnp.all(jnp.isfinite(y)))

    with jax.default_matmul_precision("float32"):
        y_ref = lstm_reg_reference(x, params)
    max_err = float(jnp.max(jnp.abs(y - y_ref)))
    assert jnp.allclose(y, y_ref, rtol=5e-3, atol=5e-3), max_err

    print("KERNEL_OK")
</pallas_src>

<mosaic_0001>
module attributes {stable_mosaic.version = 11 : i64} {
  func.func @matmul_bias_kernel(%arg0: i32, %arg1: memref<16x4xf32, #tpu.memory_space<vmem>>, %arg2: memref<4x128xf32, #tpu.memory_space<vmem>>, %arg3: memref<1x128xf32, #tpu.memory_space<vmem>>, %arg4: memref<16x128xf32, #tpu.memory_space<vmem>>) attributes {dimension_semantics = [#tpu.dimension_semantics<parallel>], iteration_bounds = array<i64: 1>, scalar_prefetch = 0 : i64, scratch_operands = 0 : i64, tpu.core_type = #tpu.core_type<tc>, window_params = [{transform_indices = @transform_0, window_bounds = array<i64: 16, 4>}, {pipeline_mode = #tpu.pipeline_mode<synchronous>, transform_indices = @transform_1, window_bounds = array<i64: 4, 128>}, {pipeline_mode = #tpu.pipeline_mode<synchronous>, transform_indices = @transform_2, window_bounds = array<i64: 1, 128>}, {transform_indices = @transform_3, window_bounds = array<i64: 16, 128>}]} {
    %c0 = arith.constant 0 : index
    %c0_0 = arith.constant 0 : index
    %0 = vector.load %arg1[%c0, %c0_0] : memref<16x4xf32, #tpu.memory_space<vmem>>, vector<16x4xf32>
    %c0_1 = arith.constant 0 : index
    %c0_2 = arith.constant 0 : index
    %1 = vector.load %arg2[%c0_1, %c0_2] : memref<4x128xf32, #tpu.memory_space<vmem>>, vector<4x128xf32>
    %cst = arith.constant dense<0.000000e+00> : vector<16x128xf32>
    %2 = tpu.matmul %0, %1, %cst {dimension_numbers = #tpu.dot_dimension_numbers<[1], [0], [0], [1], [0, 0, 1, 1], [], []>} : vector<16x4xf32>, vector<4x128xf32>, vector<16x128xf32> -> vector<16x128xf32>
    %c0_3 = arith.constant 0 : index
    %c0_4 = arith.constant 0 : index
    %3 = vector.load %arg3[%c0_3, %c0_4] : memref<1x128xf32, #tpu.memory_space<vmem>>, vector<1x128xf32>
    %4 = vector.broadcast %3 : vector<1x128xf32> to vector<16x128xf32>
    %5 = arith.addf %2, %4 : vector<16x128xf32>
    %c0_5 = arith.constant 0 : index
    %c0_6 = arith.constant 0 : index
    %6 = vector.load %arg4[%c0_5, %c0_6] : memref<16x128xf32, #tpu.memory_space<vmem>>, vector<16x128xf32>
    tpu.vector_store %arg4[%c0_5, %c0_6], %5 {strides = array<i32>} : memref<16x128xf32, #tpu.memory_space<vmem>>, vector<16x128xf32>,
    return
  }
  func.func @transform_0(%arg0: i32) -> (i32, i32) {
    %c0_i32 = arith.constant 0 : i32
    %c0_i32_0 = arith.constant 0 : i32
    return %arg0, %c0_i32 : i32, i32
  }
  func.func @transform_1(%arg0: i32) -> (i32, i32) {
    %c0_i32 = arith.constant 0 : i32
    %c0_i32_0 = arith.constant 0 : i32
    %c0_i32_1 = arith.constant 0 : i32
    return %c0_i32, %c0_i32_0 : i32, i32
  }
  func.func @transform_2(%arg0: i32) -> (i32, i32) {
    %c0_i32 = arith.constant 0 : i32
    %c0_i32_0 = arith.constant 0 : i32
    %c0_i32_1 = arith.constant 0 : i32
    return %c0_i32, %c0_i32_0 : i32, i32
  }
  func.func @transform_3(%arg0: i32) -> (i32, i32) {
    %c0_i32 = arith.constant 0 : i32
    %c0_i32_0 = arith.constant 0 : i32
    return %arg0, %c0_i32 : i32, i32
  }
}

module attributes {stable_mosaic.version = 11 : i64} {
  func.func @fused_lstm_kernel(%arg0: i32, %arg1: memref<8x2x32xf32, #tpu.memory_space<vmem>>, %arg2: memref<8x2x32xf32, #tpu.memory_space<vmem>>, %arg3: memref<8x2x32xf32, #tpu.memory_space<vmem>>, %arg4: memref<8x2x32xf32, #tpu.memory_space<vmem>>, %arg5: memref<4x32x32xf32, #tpu.memory_space<vmem>>, %arg6: memref<4x32x32xf32, #tpu.memory_space<vmem>>, %arg7: memref<4x32x32xf32, #tpu.memory_space<vmem>>, %arg8: memref<4x1x32xf32, #tpu.memory_space<vmem>>, %arg9: memref<32x1xf32, #tpu.memory_space<vmem>>, %arg10: memref<1x1xf32, #tpu.memory_space<vmem>>, %arg11: memref<8x2x1xf32, #tpu.memory_space<vmem>>, %arg12: memref<2x32xf32, #tpu.memory_space<vmem>>, %arg13: memref<2x32xf32, #tpu.memory_space<vmem>>, %arg14: memref<2x32xf32, #tpu.memory_space<vmem>>, %arg15: memref<2x32xf32, #tpu.memory_space<vmem>>) attributes {dimension_semantics = [#tpu.dimension_semantics<arbitrary>], iteration_bounds = array<i64: 1>, scalar_prefetch = 0 : i64, scratch_operands = 4 : i64, tpu.core_type = #tpu.core_type<tc>, window_params = [{transform_indices = @transform_0, window_bounds = array<i64: 8, 2, 32>}, {transform_indices = @transform_1, window_bounds = array<i64: 8, 2, 32>}, {transform_indices = @transform_2, window_bounds = array<i64: 8, 2, 32>}, {transform_indices = @transform_3, window_bounds = array<i64: 8, 2, 32>}, {pipeline_mode = #tpu.pipeline_mode<synchronous>, transform_indices = @transform_4, window_bounds = array<i64: 4, 32, 32>}, {pipeline_mode = #tpu.pipeline_mode<synchronous>, transform_indices = @transform_5, window_bounds = array<i64: 4, 32, 32>}, {pipeline_mode = #tpu.pipeline_mode<synchronous>, transform_indices = @transform_6, window_bounds = array<i64: 4, 32, 32>}, {pipeline_mode = #tpu.pipeline_mode<synchronous>, transform_indices = @transform_7, window_bounds = array<i64: 4, 1, 32>}, {pipeline_mode = #tpu.pipeline_mode<synchronous>, transform_indices = @transform_8, window_bounds = array<i64: 32, 1>}, {pipeline_mode = #tpu.pipeline_mode<synchronous>, transform_indices = @transform_9, window_bounds = array<i64: 1, 1>}, {transform_indices = @transform_10, window_bounds = array<i64: 8, 2, 1>}]} {
    %c0_i32 = arith.constant 0 : i32
    %0 = arith.cmpi eq, %arg0, %c0_i32 : i32
    %1 = arith.extui %0 : i1 to i32
    %c0_i32_0 = arith.constant 0 : i32
    %2 = arith.cmpi ne, %1, %c0_i32_0 : i32
    scf.if %2 {
      %cst_661 = arith.constant 0.000000e+00 : f32
      %995 = vector.broadcast %cst_661 : f32 to vector<2x32xf32>
      %c0_662 = arith.constant 0 : index
      %c0_663 = arith.constant 0 : index
      %996 = vector.load %arg12[%c0_662, %c0_663] : memref<2x32xf32, #tpu.memory_space<vmem>>, vector<2x32xf32>
      tpu.vector_store %arg12[%c0_662, %c0_663], %995 {strides = array<i32>} : memref<2x32xf32, #tpu.memory_space<vmem>>, vector<2x32xf32>,
      %cst_664 = arith.constant 0.000000e+00 : f32
      %997 = vector.broadcast %cst_664 : f32 to vector<2x32xf32>
      %c0_665 = arith.constant 0 : index
      %c0_666 = arith.constant 0 : index
      %998 = vector.load %arg13[%c0_665, %c0_666] : memref<2x32xf32, #tpu.memory_space<vmem>>, vector<2x32xf32>
      tpu.vector_store %arg13[%c0_665, %c0_666], %997 {strides = array<i32>} : memref<2x32xf32, #tpu.memory_space<vmem>>, vector<2x32xf32>,
      %cst_667 = arith.constant 0.000000e+00 : f32
      %999 = vector.broadcast %cst_667 : f32 to vector<2x32xf32>
      %c0_668 = arith.constant 0 : index
      %c0_669 = arith.constant 0 : index
      %1000 = vector.load %arg14[%c0_668, %c0_669] : memref<2x32xf32, #tpu.memory_space<vmem>>, vector<2x32xf32>
      tpu.vector_store %arg14[%c0_668, %c0_669], %999 {strides = array<i32>} : memref<2x32xf32, #tpu.memory_space<vmem>>, vector<2x32xf32>,
      %cst_670 = arith.constant 0.000000e+00 : f32
      %1001 = vector.broadcast %cst_670 : f32 to vector<2x32xf32>
      %c0_671 = arith.constant 0 : index
      %c0_672 = arith.constant 0 : index
      %1002 = vector.load %arg15[%c0_671, %c0_672] : memref<2x32xf32, #tpu.memory_space<vmem>>, vector<2x32xf32>
      tpu.vector_store %arg15[%c0_671, %c0_672], %1001 {strides = array<i32>} : memref<2x32xf32, #tpu.memory_space<vmem>>, vector<2x32xf32>,
    } else {
    }
    %c0 = arith.constant 0 : index
    %c0_1 = arith.constant 0 : index
    %3 = vector.load %arg12[%c0, %c0_1] : memref<2x32xf32, #tpu.memory_space<vmem>>, vector<2x32xf32>
    %c0_2 = arith.constant 0 : index
    %c0_3 = arith.constant 0 : index
    %4 = vector.load %arg13[%c0_2, %c0_3] : memref<2x32xf32, #tpu.memory_space<vmem>>, vector<2x32xf32>
    %c0_4 = arith.constant 0 : index
    %c0_5 = arith.constant 0 : index
    %5 = vector.load %arg14[%c0_4, %c0_5] : memref<2x32xf32, #tpu.memory_space<vmem>>, vector<2x32xf32>
    %c0_6 = arith.constant 0 : index
    %c0_7 = arith.constant 0 : index
    %6 = vector.load %arg15[%c0_6, %c0_7] : memref<2x32xf32, #tpu.memory_space<vmem>>, vector<2x32xf32>
    %c0_i32_8 = arith.constant 0 : i32
    %7 = arith.index_cast %c0_i32_8 : i32 to index
    %c0_9 = arith.constant 0 : index
    %c0_10 = arith.constant 0 : index
    %8 = vector.load %arg1[%7, %c0_9, %c0_10] : memref<8x2x32xf32, #tpu.memory_space<vmem>>, vector<1x2x32xf32>
    %9 = vector.shape_cast %8 : vector<1x2x32xf32> to vector<2x32xf32>
    %10 = arith.index_cast %c0_i32_8 : i32 to index
    %c0_11 = arith.constant 0 : index
    %c0_12 = arith.constant 0 : index
    %11 = vector.load %arg2[%10, %c0_11, %c0_12] : memref<8x2x32xf32, #tpu.memory_space<vmem>>, vector<1x2x32xf32>
    %12 = vector.shape_cast %11 : vector<1x2x32xf32> to vector<2x32xf32>
    %13 = arith.index_cast %c0_i32_8 : i32 to index
    %c0_13 = arith.constant 0 : index
    %c0_14 = arith.constant 0 : index
    %14 = vector.load %arg3[%13, %c0_13, %c0_14] : memref<8x2x32xf32, #tpu.memory_space<vmem>>, vector<1x2x32xf32>
    %15 = vector.shape_cast %14 : vector<1x2x32xf32> to vector<2x32xf32>
    %16 = arith.index_cast %c0_i32_8 : i32 to index
    %c0_15 = arith.constant 0 : index
    %c0_16 = arith.constant 0 : index
    %17 = vector.load %arg4[%16, %c0_15, %c0_16] : memref<8x2x32xf32, #tpu.memory_space<vmem>>, vector<1x2x32xf32>
    %18 = vector.shape_cast %17 : vector<1x2x32xf32> to vector<2x32xf32>
    %c0_17 = arith.constant 0 : index
    %c0_18 = arith.constant 0 : index
    %c0_19 = arith.constant 0 : index
    %19 = vector.load %arg5[%c0_17, %c0_18, %c0_19] : memref<4x32x32xf32, #tpu.memory_space<vmem>>, vector<1x32x32xf32>
    %20 = vector.shape_cast %19 : vector<1x32x32xf32> to vector<32x32xf32>
    %cst = arith.constant dense<0.000000e+00> : vector<2x32xf32>
    %21 = tpu.matmul %3, %20, %cst {dimension_numbers = #tpu.dot_dimension_numbers<[1], [0], [0], [1], [0, 0, 1, 1], [], []>} : vector<2x32xf32>, vector<32x32xf32>, vector<2x32xf32> -> vector<2x32xf32>
    %22 = arith.addf %9, %21 : vector<2x32xf32>
    %c1 = arith.constant 1 : index
    %c0_20 = arith.constant 0 : index
    %c0_21 = arith.constant 0 : index
    %23 = vector.load %arg5[%c1, %c0_20, %c0_21] : memref<4x32x32xf32, #tpu.memory_space<vmem>>, vector<1x32x32xf32>
    %24 = vector.shape_cast %23 : vector<1x32x32xf32> to vector<32x32xf32>
    %cst_22 = arith.constant dense<0.000000e+00> : vector<2x32xf32>
    %25 = tpu.matmul %3, %24, %cst_22 {dimension_numbers = #tpu.dot_dimension_numbers<[1], [0], [0], [1], [0, 0, 1, 1], [], []>} : vector<2x32xf32>, vector<32x32xf32>, vector<2x32xf32> -> vector<2x32xf32>
    %26 = arith.addf %12, %25 : vector<2x32xf32>
    %c2 = arith.constant 2 : index
    %c0_23 = arith.constant 0 : index
    %c0_24 = arith.constant 0 : index
    %27 = vector.load %arg5[%c2, %c0_23, %c0_24] : memref<4x32x32xf32, #tpu.memory_space<vmem>>, vector<1x32x32xf32>
    %28 = vector.shape_cast %27 : vector<1x32x32xf32> to vector<32x32xf32>
    %cst_25 = arith.constant dense<0.000000e+00> : vector<2x32xf32>
    %29 = tpu.matmul %3, %28, %cst_25 {dimension_numbers = #tpu.dot_dimension_numbers<[1], [0], [0], [1], [0, 0, 1, 1], [], []>} : vector<2x32xf32>, vector<32x32xf32>, vector<2x32xf32> -> vector<2x32xf32>
    %30 = arith.addf %15, %29 : vector<2x32xf32>
    %c3 = arith.constant 3 : index
    %c0_26 = arith.constant 0 : index
    %c0_27 = arith.constant 0 : index
    %31 = vector.load %arg5[%c3, %c0_26, %c0_27] : memref<4x32x32xf32, #tpu.memory_space<vmem>>, vector<1x32x32xf32>
    %32 = vector.shape_cast %31 : vector<1x32x32xf32> to vector<32x32xf32>
    %cst_28 = arith.constant dense<0.000000e+00> : vector<2x32xf32>
    %33 = tpu.matmul %3, %32, %cst_28 {dimension_numbers = #tpu.dot_dimension_numbers<[1], [0], [0], [1], [0, 0, 1, 1], [], []>} : vector<2x32xf32>, vector<32x32xf32>, vector<2x32xf32> -> vector<2x32xf32>
    %34 = arith.addf %18, %33 : vector<2x32xf32>
    %35 = arith.negf %22 : vector<2x32xf32>
    %36 = math.exp %35 : vector<2x32xf32>
    %cst_29 = arith.constant 1.000000e+00 : f32
    %37 = vector.broadcast %cst_29 : f32 to vector<2x32xf32>
    %38 = arith.addf %37, %36 : vector<2x32xf32>
    %39 = arith.divf %37, %38 : vector<2x32xf32>
    %40 = arith.negf %26 : vector<2x32xf32>
    %41 = math.exp %40 : vector<2x32xf32>
    %cst_30 = arith.constant 1.000000e+00 : f32
    %42 = vector.broadcast %cst_30 : f32 to vector<2x32xf32>
    %43 = arith.addf %42, %41 : vector<2x32xf32>
    %44 = arith.divf %42, %43 : vector<2x32xf32>
    %45 = math.tanh %30 : vector<2x32xf32>
    %46 = arith.negf %34 : vector<2x32xf32>
    %47 = math.exp %46 : vector<2x32xf32>
    %cst_31 = arith.constant 1.000000e+00 : f32
    %48 = vector.broadcast %cst_31 : f32 to vector<2x32xf32>
    %49 = arith.addf %48, %47 : vector<2x32xf32>
    %50 = arith.divf %48, %49 : vector<2x32xf32>
    %51 = arith.mulf %44, %4 : vector<2x32xf32>
    %52 = arith.mulf %39, %45 : vector<2x32xf32>
    %53 = arith.addf %51, %52 : vector<2x32xf32>
    %54 = math.tanh %53 : vector<2x32xf32>
    %55 = arith.mulf %50, %54 : vector<2x32xf32>
    %c0_32 = arith.constant 0 : index
    %c0_33 = arith.constant 0 : index
    %c0_34 = arith.constant 0 : index
    %56 = vector.load %arg6[%c0_32, %c0_33, %c0_34] : memref<4x32x32xf32, #tpu.memory_space<vmem>>, vector<1x32x32xf32>
    %57 = vector.shape_cast %56 : vector<1x32x32xf32> to vector<32x32xf32>
    %cst_35 = arith.constant dense<0.000000e+00> : vector<2x32xf32>
    %58 = tpu.matmul %55, %57, %cst_35 {dimension_numbers = #tpu.dot_dimension_numbers<[1], [0], [0], [1], [0, 0, 1, 1], [], []>} : vector<2x32xf32>, vector<32x32xf32>, vector<2x32xf32> -> vector<2x32xf32>
    %c0_36 = arith.constant 0 : index
    %c0_37 = arith.constant 0 : index
    %c0_38 = arith.constant 0 : index
    %59 = vector.load %arg8[%c0_36, %c0_37, %c0_38] : memref<4x1x32xf32, #tpu.memory_space<vmem>>, vector<1x1x32xf32>
    %60 = vector.shape_cast %59 : vector<1x1x32xf32> to vector<1x32xf32>
    %61 = vector.broadcast %60 : vector<1x32xf32> to vector<2x32xf32>
    %62 = arith.addf %58, %61 : vector<2x32xf32>
    %c1_39 = arith.constant 1 : index
    %c0_40 = arith.constant 0 : index
    %c0_41 = arith.constant 0 : index
    %63 = vector.load %arg6[%c1_39, %c0_40, %c0_41] : memref<4x32x32xf32, #tpu.memory_space<vmem>>, vector<1x32x32xf32>
    %64 = vector.shape_cast %63 : vector<1x32x32xf32> to vector<32x32xf32>
    %cst_42 = arith.constant dense<0.000000e+00> : vector<2x32xf32>
    %65 = tpu.matmul %55, %64, %cst_42 {dimension_numbers = #tpu.dot_dimension_numbers<[1], [0], [0], [1], [0, 0, 1, 1], [], []>} : vector<2x32xf32>, vector<32x32xf32>, vector<2x32xf32> -> vector<2x32xf32>
    %c1_43 = arith.constant 1 : index
    %c0_44 = arith.constant 0 : index
    %c0_45 = arith.constant 0 : index
    %66 = vector.load %arg8[%c1_43, %c0_44, %c0_45] : memref<4x1x32xf32, #tpu.memory_space<vmem>>, vector<1x1x32xf32>
    %67 = vector.shape_cast %66 : vector<1x1x32xf32> to vector<1x32xf32>
    %68 = vector.broadcast %67 : vector<1x32xf32> to vector<2x32xf32>
    %69 = arith.addf %65, %68 : vector<2x32xf32>
    %c2_46 = arith.constant 2 : index
    %c0_47 = arith.constant 0 : index
    %c0_48 = arith.constant 0 : index
    %70 = vector.load %arg6[%c2_46, %c0_47, %c0_48] : memref<4x32x32xf32, #tpu.memory_space<vmem>>, vector<1x32x32xf32>
    %71 = vector.shape_cast %70 : vector<1x32x32xf32> to vector<32x32xf32>
    %cst_49 = arith.constant dense<0.000000e+00> : vector<2x32xf32>
    %72 = tpu.matmul %55, %71, %cst_49 {dimension_numbers = #tpu.dot_dimension_numbers<[1], [0], [0], [1], [0, 0, 1, 1], [], []>} : vector<2x32xf32>, vector<32x32xf32>, vector<2x32xf32> -> vector<2x32xf32>
    %c2_50 = arith.constant 2 : index
    %c0_51 = arith.constant 0 : index
    %c0_52 = arith.constant 0 : index
    %73 = vector.load %arg8[%c2_50, %c0_51, %c0_52] : memref<4x1x32xf32, #tpu.memory_space<vmem>>, vector<1x1x32xf32>
    %74 = vector.shape_cast %73 : vector<1x1x32xf32> to vector<1x32xf32>
    %75 = vector.broadcast %74 : vector<1x32xf32> to vector<2x32xf32>
    %76 = arith.addf %72, %75 : vector<2x32xf32>
    %c3_53 = arith.constant 3 : index
    %c0_54 = arith.constant 0 : index
    %c0_55 = arith.constant 0 : index
    %77 = vector.load %arg6[%c3_53, %c0_54, %c0_55] : memref<4x32x32xf32, #tpu.memory_space<vmem>>, vector<1x32x32xf32>
    %78 = vector.shape_cast %77 : vector<1x32x32xf32> to vector<32x32xf32>
    %cst_56 = arith.constant dense<0.000000e+00> : vector<2x32xf32>
    %79 = tpu.matmul %55, %78, %cst_56 {dimension_numbers = #tpu.dot_dimension_numbers<[1], [0], [0], [1], [0, 0, 1, 1], [], []>} : vector<2x32xf32>, vector<32x32xf32>, vector<2x32xf32> -> vector<2x32xf32>
    %c3_57 = arith.constant 3 : index
    %c0_58 = arith.constant 0 : index
    %c0_59 = arith.constant 0 : index
    %80 = vector.load %arg8[%c3_57, %c0_58, %c0_59] : memref<4x1x32xf32, #tpu.memory_space<vmem>>, vector<1x1x32xf32>
    %81 = vector.shape_cast %80 : vector<1x1x32xf32> to vector<1x32xf32>
    %82 = vector.broadcast %81 : vector<1x32xf32> to vector<2x32xf32>
    %83 = arith.addf %79, %82 : vector<2x32xf32>
    %c0_60 = arith.constant 0 : index
    %c0_61 = arith.constant 0 : index
    %c0_62 = arith.constant 0 : index
    %84 = vector.load %arg7[%c0_60, %c0_61, %c0_62] : memref<4x32x32xf32, #tpu.memory_space<vmem>>, vector<1x32x32xf32>
    %85 = vector.shape_cast %84 : vector<1x32x32xf32> to vector<32x32xf32>
    %cst_63 = arith.constant dense<0.000000e+00> : vector<2x32xf32>
    %86 = tpu.matmul %5, %85, %cst_63 {dimension_numbers = #tpu.dot_dimension_numbers<[1], [0], [0], [1], [0, 0, 1, 1], [], []>} : vector<2x32xf32>, vector<32x32xf32>, vector<2x32xf32> -> vector<2x32xf32>
    %87 = arith.addf %62, %86 : vector<2x32xf32>
    %c1_64 = arith.constant 1 : index
    %c0_65 = arith.constant 0 : index
    %c0_66 = arith.constant 0 : index
    %88 = vector.load %arg7[%c1_64, %c0_65, %c0_66] : memref<4x32x32xf32, #tpu.memory_space<vmem>>, vector<1x32x32xf32>
    %89 = vector.shape_cast %88 : vector<1x32x32xf32> to vector<32x32xf32>
    %cst_67 = arith.constant dense<0.000000e+00> : vector<2x32xf32>
    %90 = tpu.matmul %5, %89, %cst_67 {dimension_numbers = #tpu.dot_dimension_numbers<[1], [0], [0], [1], [0, 0, 1, 1], [], []>} : vector<2x32xf32>, vector<32x32xf32>, vector<2x32xf32> -> vector<2x32xf32>
    %91 = arith.addf %69, %90 : vector<2x32xf32>
    %c2_68 = arith.constant 2 : index
    %c0_69 = arith.constant 0 : index
    %c0_70 = arith.constant 0 : index
    %92 = vector.load %arg7[%c2_68, %c0_69, %c0_70] : memref<4x32x32xf32, #tpu.memory_space<vmem>>, vector<1x32x32xf32>
    %93 = vector.shape_cast %92 : vector<1x32x32xf32> to vector<32x32xf32>
    %cst_71 = arith.constant dense<0.000000e+00> : vector<2x32xf32>
    %94 = tpu.matmul %5, %93, %cst_71 {dimension_numbers = #tpu.dot_dimension_numbers<[1], [0], [0], [1], [0, 0, 1, 1], [], []>} : vector<2x32xf32>, vector<32x32xf32>, vector<2x32xf32> -> vector<2x32xf32>
    %95 = arith.addf %76, %94 : vector<2x32xf32>
    %c3_72 = arith.constant 3 : index
    %c0_73 = arith.constant 0 : index
    %c0_74 = arith.constant 0 : index
    %96 = vector.load %arg7[%c3_72, %c0_73, %c0_74] : memref<4x32x32xf32, #tpu.memory_space<vmem>>, vector<1x32x32xf32>
    %97 = vector.shape_cast %96 : vector<1x32x32xf32> to vector<32x32xf32>
    %cst_75 = arith.constant dense<0.000000e+00> : vector<2x32xf32>
    %98 = tpu.matmul %5, %97, %cst_75 {dimension_numbers = #tpu.dot_dimension_numbers<[1], [0], [0], [1], [0, 0, 1, 1], [], []>} : vector<2x32xf32>, vector<32x32xf32>, vector<2x32xf32> -> vector<2x32xf32>
    %99 = arith.addf %83, %98 : vector<2x32xf32>
    %100 = arith.negf %87 : vector<2x32xf32>
    %101 = math.exp %100 : vector<2x32xf32>
    %cst_76 = arith.constant 1.000000e+00 : f32
    %102 = vector.broadcast %cst_76 : f32 to vector<2x32xf32>
    %103 = arith.addf %102, %101 : vector<2x32xf32>
    %104 = arith.divf %102, %103 : vector<2x32xf32>
    %105 = arith.negf %91 : vector<2x32xf32>
    %106 = math.exp %105 : vector<2x32xf32>
    %cst_77 = arith.constant 1.000000e+00 : f32
    %107 = vector.broadcast %cst_77 : f32 to vector<2x32xf32>
    %108 = arith.addf %107, %106 : vector<2x32xf32>
    %109 = arith.divf %107, %108 : vector<2x32xf32>
    %110 = math.tanh %95 : vector<2x32xf32>
    %111 = arith.negf %99 : vector<2x32xf32>
    %112 = math.exp %111 : vector<2x32xf32>
    %cst_78 = arith.constant 1.000000e+00 : f32
    %113 = vector.broadcast %cst_78 : f32 to vector<2x32xf32>
    %114 = arith.addf %113, %112 : vector<2x32xf32>
    %115 = arith.divf %113, %114 : vector<2x32xf32>
    %116 = arith.mulf %109, %6 : vector<2x32xf32>
    %117 = arith.mulf %104, %110 : vector<2x32xf32>
    %118 = arith.addf %116, %117 : vector<2x32xf32>
    %119 = math.tanh %118 : vector<2x32xf32>
    %120 = arith.mulf %115, %119 : vector<2x32xf32>
    %c0_79 = arith.constant 0 : index
    %c0_80 = arith.constant 0 : index
    %121 = vector.load %arg9[%c0_79, %c0_80] : memref<32x1xf32, #tpu.memory_space<vmem>>, vector<32x1xf32>
    %cst_81 = arith.constant dense<0.000000e+00> : vector<2x1xf32>
    %122 = tpu.matmul %120, %121, %cst_81 {dimension_numbers = #tpu.dot_dimension_numbers<[1], [0], [0], [1], [0, 0, 1, 1], [], []>} : vector<2x32xf32>, vector<32x1xf32>, vector<2x1xf32> -> vector<2x1xf32>
    %c0_82 = arith.constant 0 : index
    %c0_83 = arith.constant 0 : index
    %123 = vector.load %arg10[%c0_82, %c0_83] : memref<1x1xf32, #tpu.memory_space<vmem>>, vector<1x1xf32>
    %124 = vector.broadcast %123 : vector<1x1xf32> to vector<2x1xf32>
    %125 = arith.addf %122, %124 : vector<2x1xf32>
    %126 = arith.index_cast %c0_i32_8 : i32 to index
    %c0_84 = arith.constant 0 : index
    %c0_85 = arith.constant 0 : index
    %127 = vector.load %arg11[%126, %c0_84, %c0_85] : memref<8x2x1xf32, #tpu.memory_space<vmem>>, vector<1x2x1xf32>
    %128 = vector.shape_cast %127 : vector<1x2x1xf32> to vector<2x1xf32>
    %129 = vector.shape_cast %125 : vector<2x1xf32> to vector<1x2x1xf32>
    tpu.vector_store %arg11[%126, %c0_84, %c0_85], %129 {strides = array<i32>} : memref<8x2x1xf32, #tpu.memory_space<vmem>>, vector<1x2x1xf32>,
    %c1_i32 = arith.constant 1 : i32
    %130 = arith.index_cast %c1_i32 : i32 to index
    %c0_86 = arith.constant 0 : index
    %c0_87 = arith.constant 0 : index
    %131 = vector.load %arg1[%130, %c0_86, %c0_87] : memref<8x2x32xf32, #tpu.memory_space<vmem>>, vector<1x2x32xf32>
    %132 = vector.shape_cast %131 : vector<1x2x32xf32> to vector<2x32xf32>
    %133 = arith.index_cast %c1_i32 : i32 to index
    %c0_88 = arith.constant 0 : index
    %c0_89 = arith.constant 0 : index
    %134 = vector.load %arg2[%133, %c0_88, %c0_89] : memref<8x2x32xf32, #tpu.memory_space<vmem>>, vector<1x2x32xf32>
    %135 = vector.shape_cast %134 : vector<1x2x32xf32> to vector<2x32xf32>
    %136 = arith.index_cast %c1_i32 : i32 to index
    %c0_90 = arith.constant 0 : index
    %c0_91 = arith.constant 0 : index
    %137 = vector.load %arg3[%136, %c0_90, %c0_91] : memref<8x2x32xf32, #tpu.memory_space<vmem>>, vector<1x2x32xf32>
    %138 = vector.shape_cast %137 : vector<1x2x32xf32> to vector<2x32xf32>
    %139 = arith.index_cast %c1_i32 : i32 to index
    %c0_92 = arith.constant 0 : index
    %c0_93 = arith.constant 0 : index
    %140 = vector.load %arg4[%139, %c0_92, %c0_93] : memref<8x2x32xf32, #tpu.memory_space<vmem>>, vector<1x2x32xf32>
    %141 = vector.shape_cast %140 : vector<1x2x32xf32> to vector<2x32xf32>
    %c0_94 = arith.constant 0 : index
    %c0_95 = arith.constant 0 : index
    %c0_96 = arith.constant 0 : index
    %142 = vector.load %arg5[%c0_94, %c0_95, %c0_96] : memref<4x32x32xf32, #tpu.memory_space<vmem>>, vector<1x32x32xf32>
    %143 = vector.shape_cast %142 : vector<1x32x32xf32> to vector<32x32xf32>
    %cst_97 = arith.constant dense<0.000000e+00> : vector<2x32xf32>
    %144 = tpu.matmul %55, %143, %cst_97 {dimension_numbers = #tpu.dot_dimension_numbers<[1], [0], [0], [1], [0, 0, 1, 1], [], []>} : vector<2x32xf32>, vector<32x32xf32>, vector<2x32xf32> -> vector<2x32xf32>
    %145 = arith.addf %132, %144 : vector<2x32xf32>
    %c1_98 = arith.constant 1 : index
    %c0_99 = arith.constant 0 : index
    %c0_100 = arith.constant 0 : index
    %146 = vector.load %arg5[%c1_98, %c0_99, %c0_100] : memref<4x32x32xf32, #tpu.memory_space<vmem>>, vector<1x32x32xf32>
    %147 = vector.shape_cast %146 : vector<1x32x32xf32> to vector<32x32xf32>
    %cst_101 = arith.constant dense<0.000000e+00> : vector<2x32xf32>
    %148 = tpu.matmul %55, %147, %cst_101 {dimension_numbers = #tpu.dot_dimension_numbers<[1], [0], [0], [1], [0, 0, 1, 1], [], []>} : vector<2x32xf32>, vector<32x32xf32>, vector<2x32xf32> -> vector<2x32xf32>
    %149 = arith.addf %135, %148 : vector<2x32xf32>
    %c2_102 = arith.constant 2 : index
    %c0_103 = arith.constant 0 : index
    %c0_104 = arith.constant 0 : index
    %150 = vector.load %arg5[%c2_102, %c0_103, %c0_104] : memref<4x32x32xf32, #tpu.memory_space<vmem>>, vector<1x32x32xf32>
    %151 = vector.shape_cast %150 : vector<1x32x32xf32> to vector<32x32xf32>
    %cst_105 = arith.constant dense<0.000000e+00> : vector<2x32xf32>
    %152 = tpu.matmul %55, %151, %cst_105 {dimension_numbers = #tpu.dot_dimension_numbers<[1], [0], [0], [1], [0, 0, 1, 1], [], []>} : vector<2x32xf32>, vector<32x32xf32>, vector<2x32xf32> -> vector<2x32xf32>
    %153 = arith.addf %138, %152 : vector<2x32xf32>
    %c3_106 = arith.constant 3 : index
    %c0_107 = arith.constant 0 : index
    %c0_108 = arith.constant 0 : index
    %154 = vector.load %arg5[%c3_106, %c0_107, %c0_108] : memref<4x32x32xf32, #tpu.memory_space<vmem>>, vector<1x32x32xf32>
    %155 = vector.shape_cast %154 : vector<1x32x32xf32> to vector<32x32xf32>
    %cst_109 = arith.constant dense<0.000000e+00> : vector<2x32xf32>
    %156 = tpu.matmul %55, %155, %cst_109 {dimension_numbers = #tpu.dot_dimension_numbers<[1], [0], [0], [1], [0, 0, 1, 1], [], []>} : vector<2x32xf32>, vector<32x32xf32>, vector<2x32xf32> -> vector<2x32xf32>
    %157 = arith.addf %141, %156 : vector<2x32xf32>
    %158 = arith.negf %145 : vector<2x32xf32>
    %159 = math.exp %158 : vector<2x32xf32>
    %cst_110 = arith.constant 1.000000e+00 : f32
    %160 = vector.broadcast %cst_110 : f32 to vector<2x32xf32>
    %161 = arith.addf %160, %159 : vector<2x32xf32>
    %162 = arith.divf %160, %161 : vector<2x32xf32>
    %163 = arith.negf %149 : vector<2x32xf32>
    %164 = math.exp %163 : vector<2x32xf32>
    %cst_111 = arith.constant 1.000000e+00 : f32
    %165 = vector.broadcast %cst_111 : f32 to vector<2x32xf32>
    %166 = arith.addf %165, %164 : vector<2x32xf32>
    %167 = arith.divf %165, %166 : vector<2x32xf32>
    %168 = math.tanh %153 : vector<2x32xf32>
    %169 = arith.negf %157 : vector<2x32xf32>
    %170 = math.exp %169 : vector<2x32xf32>
    %cst_112 = arith.constant 1.000000e+00 : f32
    %171 = vector.broadcast %cst_112 : f32 to vector<2x32xf32>
    %172 = arith.addf %171, %170 : vector<2x32xf32>
    %173 = arith.divf %171, %172 : vector<2x32xf32>
    %174 = arith.mulf %167, %53 : vector<2x32xf32>
    %175 = arith.mulf %162, %168 : vector<2x32xf32>
    %176 = arith.addf %174, %175 : vector<2x32xf32>
    %177 = math.tanh %176 : vector<2x32xf32>
    %178 = arith.mulf %173, %177 : vector<2x32xf32>
    %c0_113 = arith.constant 0 : index
    %c0_114 = arith.constant 0 : index
    %c0_115 = arith.constant 0 : index
    %179 = vector.load %arg6[%c0_113, %c0_114, %c0_115] : memref<4x32x32xf32, #tpu.memory_space<vmem>>, vector<1x32x32xf32>
    %180 = vector.shape_cast %179 : vector<1x32x32xf32> to vector<32x32xf32>
    %cst_116 = arith.constant dense<0.000000e+00> : vector<2x32xf32>
    %181 = tpu.matmul %178, %180, %cst_116 {dimension_numbers = #tpu.dot_dimension_numbers<[1], [0], [0], [1], [0, 0, 1, 1], [], []>} : vector<2x32xf32>, vector<32x32xf32>, vector<2x32xf32> -> vector<2x32xf32>
    %c0_117 = arith.constant 0 : index
    %c0_118 = arith.constant 0 : index
    %c0_119 = arith.constant 0 : index
    %182 = vector.load %arg8[%c0_117, %c0_118, %c0_119] : memref<4x1x32xf32, #tpu.memory_space<vmem>>, vector<1x1x32xf32>
    %183 = vector.shape_cast %182 : vector<1x1x32xf32> to vector<1x32xf32>
    %184 = vector.broadcast %183 : vector<1x32xf32> to vector<2x32xf32>
    %185 = arith.addf %181, %184 : vector<2x32xf32>
    %c1_120 = arith.constant 1 : index
    %c0_121 = arith.constant 0 : index
    %c0_122 = arith.constant 0 : index
    %186 = vector.load %arg6[%c1_120, %c0_121, %c0_122] : memref<4x32x32xf32, #tpu.memory_space<vmem>>, vector<1x32x32xf32>
    %187 = vector.shape_cast %186 : vector<1x32x32xf32> to vector<32x32xf32>
    %cst_123 = arith.constant dense<0.000000e+00> : vector<2x32xf32>
    %188 = tpu.matmul %178, %187, %cst_123 {dimension_numbers = #tpu.dot_dimension_numbers<[1], [0], [0], [1], [0, 0, 1, 1], [], []>} : vector<2x32xf32>, vector<32x32xf32>, vector<2x32xf32> -> vector<2x32xf32>
    %c1_124 = arith.constant 1 : index
    %c0_125 = arith.constant 0 : index
    %c0_126 = arith.constant 0 : index
    %189 = vector.load %arg8[%c1_124, %c0_125, %c0_126] : memref<4x1x32xf32, #tpu.memory_space<vmem>>, vector<1x1x32xf32>
    %190 = vector.shape_cast %189 : vector<1x1x32xf32> to vector<1x32xf32>
    %191 = vector.broadcast %190 : vector<1x32xf32> to vector<2x32xf32>
    %192 = arith.addf %188, %191 : vector<2x32xf32>
    %c2_127 = arith.constant 2 : index
    %c0_128 = arith.constant 0 : index
    %c0_129 = arith.constant 0 : index
    %193 = vector.load %arg6[%c2_127, %c0_128, %c0_129] : memref<4x32x32xf32, #tpu.memory_space<vmem>>, vector<1x32x32xf32>
    %194 = vector.shape_cast %193 : vector<1x32x32xf32> to vector<32x32xf32>
    %cst_130 = arith.constant dense<0.000000e+00> : vector<2x32xf32>
    %195 = tpu.matmul %178, %194, %cst_130 {dimension_numbers = #tpu.dot_dimension_numbers<[1], [0], [0], [1], [0, 0, 1, 1], [], []>} : vector<2x32xf32>, vector<32x32xf32>, vector<2x32xf32> -> vector<2x32xf32>
    %c2_131 = arith.constant 2 : index
    %c0_132 = arith.constant 0 : index
    %c0_133 = arith.constant 0 : index
    %196 = vector.load %arg8[%c2_131, %c0_132, %c0_133] : memref<4x1x32xf32, #tpu.memory_space<vmem>>, vector<1x1x32xf32>
    %197 = vector.shape_cast %196 : vector<1x1x32xf32> to vector<1x32xf32>
    %198 = vector.broadcast %197 : vector<1x32xf32> to vector<2x32xf32>
    %199 = arith.addf %195, %198 : vector<2x32xf32>
    %c3_134 = arith.constant 3 : index
    %c0_135 = arith.constant 0 : index
    %c0_136 = arith.constant 0 : index
    %200 = vector.load %arg6[%c3_134, %c0_135, %c0_136] : memref<4x32x32xf32, #tpu.memory_space<vmem>>, vector<1x32x32xf32>
    %201 = vector.shape_cast %200 : vector<1x32x32xf32> to vector<32x32xf32>
    %cst_137 = arith.constant dense<0.000000e+00> : vector<2x32xf32>
    %202 = tpu.matmul %178, %201, %cst_137 {dimension_numbers = #tpu.dot_dimension_numbers<[1], [0], [0], [1], [0, 0, 1, 1], [], []>} : vector<2x32xf32>, vector<32x32xf32>, vector<2x32xf32> -> vector<2x32xf32>
    %c3_138 = arith.constant 3 : index
    %c0_139 = arith.constant 0 : index
    %c0_140 = arith.constant 0 : index
    %203 = vector.load %arg8[%c3_138, %c0_139, %c0_140] : memref<4x1x32xf32, #tpu.memory_space<vmem>>, vector<1x1x32xf32>
    %204 = vector.shape_cast %203 : vector<1x1x32xf32> to vector<1x32xf32>
    %205 = vector.broadcast %204 : vector<1x32xf32> to vector<2x32xf32>
    %206 = arith.addf %202, %205 : vector<2x32xf32>
    %c0_141 = arith.constant 0 : index
    %c0_142 = arith.constant 0 : index
    %c0_143 = arith.constant 0 : index
    %207 = vector.load %arg7[%c0_141, %c0_142, %c0_143] : memref<4x32x32xf32, #tpu.memory_space<vmem>>, vector<1x32x32xf32>
    %208 = vector.shape_cast %207 : vector<1x32x32xf32> to vector<32x32xf32>
    %cst_144 = arith.constant dense<0.000000e+00> : vector<2x32xf32>
    %209 = tpu.matmul %120, %208, %cst_144 {dimension_numbers = #tpu.dot_dimension_numbers<[1], [0], [0], [1], [0, 0, 1, 1], [], []>} : vector<2x32xf32>, vector<32x32xf32>, vector<2x32xf32> -> vector<2x32xf32>
    %210 = arith.addf %185, %209 : vector<2x32xf32>
    %c1_145 = arith.constant 1 : index
    %c0_146 = arith.constant 0 : index
    %c0_147 = arith.constant 0 : index
    %211 = vector.load %arg7[%c1_145, %c0_146, %c0_147] : memref<4x32x32xf32, #tpu.memory_space<vmem>>, vector<1x32x32xf32>
    %212 = vector.shape_cast %211 : vector<1x32x32xf32> to vector<32x32xf32>
    %cst_148 = arith.constant dense<0.000000e+00> : vector<2x32xf32>
    %213 = tpu.matmul %120, %212, %cst_148 {dimension_numbers = #tpu.dot_dimension_numbers<[1], [0], [0], [1], [0, 0, 1, 1], [], []>} : vector<2x32xf32>, vector<32x32xf32>, vector<2x32xf32> -> vector<2x32xf32>
    %214 = arith.addf %192, %213 : vector<2x32xf32>
    %c2_149 = arith.constant 2 : index
    %c0_150 = arith.constant 0 : index
    %c0_151 = arith.constant 0 : index
    %215 = vector.load %arg7[%c2_149, %c0_150, %c0_151] : memref<4x32x32xf32, #tpu.memory_space<vmem>>, vector<1x32x32xf32>
    %216 = vector.shape_cast %215 : vector<1x32x32xf32> to vector<32x32xf32>
    %cst_152 = arith.constant dense<0.000000e+00> : vector<2x32xf32>
    %217 = tpu.matmul %120, %216, %cst_152 {dimension_numbers = #tpu.dot_dimension_numbers<[1], [0], [0], [1], [0, 0, 1, 1], [], []>} : vector<2x32xf32>, vector<32x32xf32>, vector<2x32xf32> -> vector<2x32xf32>
    %218 = arith.addf %199, %217 : vector<2x32xf32>
    %c3_153 = arith.constant 3 : index
    %c0_154 = arith.constant 0 : index
    %c0_155 = arith.constant 0 : index
    %219 = vector.load %arg7[%c3_153, %c0_154, %c0_155] : memref<4x32x32xf32, #tpu.memory_space<vmem>>, vector<1x32x32xf32>
    %220 = vector.shape_cast %219 : vector<1x32x32xf32> to vector<32x32xf32>
    %cst_156 = arith.constant dense<0.000000e+00> : vector<2x32xf32>
    %221 = tpu.matmul %120, %220, %cst_156 {dimension_numbers = #tpu.dot_dimension_numbers<[1], [0], [0], [1], [0, 0, 1, 1], [], []>} : vector<2x32xf32>, vector<32x32xf32>, vector<2x32xf32> -> vector<2x32xf32>
    %222 = arith.addf %206, %221 : vector<2x32xf32>
    %223 = arith.negf %210 : vector<2x32xf32>
    %224 = math.exp %223 : vector<2x32xf32>
    %cst_157 = arith.constant 1.000000e+00 : f32
    %225 = vector.broadcast %cst_157 : f32 to vector<2x32xf32>
    %226 = arith.addf %225, %224 : vector<2x32xf32>
    %227 = arith.divf %225, %226 : vector<2x32xf32>
    %228 = arith.negf %214 : vector<2x32xf32>
    %229 = math.exp %228 : vector<2x32xf32>
    %cst_158 = arith.constant 1.000000e+00 : f32
    %230 = vector.broadcast %cst_158 : f32 to vector<2x32xf32>
    %231 = arith.addf %230, %229 : vector<2x32xf32>
    %232 = arith.divf %230, %231 : vector<2x32xf32>
    %233 = math.tanh %218 : vector<2x32xf32>
    %234 = arith.negf %222 : vector<2x32xf32>
    %235 = math.exp %234 : vector<2x32xf32>
    %cst_159 = arith.constant 1.000000e+00 : f32
    %236 = vector.broadcast %cst_159 : f32 to vector<2x32xf32>
    %237 = arith.addf %236, %235 : vector<2x32xf32>
    %238 = arith.divf %236, %237 : vector<2x32xf32>
    %239 = arith.mulf %232, %118 : vector<2x32xf32>
    %240 = arith.mulf %227, %233 : vector<2x32xf32>
    %241 = arith.addf %239, %240 : vector<2x32xf32>
    %242 = math.tanh %241 : vector<2x32xf32>
    %243 = arith.mulf %238, %242 : vector<2x32xf32>
    %c0_160 = arith.constant 0 : index
    %c0_161 = arith.constant 0 : index
    %244 = vector.load %arg9[%c0_160, %c0_161] : memref<32x1xf32, #tpu.memory_space<vmem>>, vector<32x1xf32>
    %cst_162 = arith.constant dense<0.000000e+00> : vector<2x1xf32>
    %245 = tpu.matmul %243, %244, %cst_162 {dimension_numbers = #tpu.dot_dimension_numbers<[1], [0], [0], [1], [0, 0, 1, 1], [], []>} : vector<2x32xf32>, vector<32x1xf32>, vector<2x1xf32> -> vector<2x1xf32>
    %c0_163 = arith.constant 0 : index
    %c0_164 = arith.constant 0 : index
    %246 = vector.load %arg10[%c0_163, %c0_164] : memref<1x1xf32, #tpu.memory_space<vmem>>, vector<1x1xf32>
    %247 = vector.broadcast %246 : vector<1x1xf32> to vector<2x1xf32>
    %248 = arith.addf %245, %247 : vector<2x1xf32>
    %249 = arith.index_cast %c1_i32 : i32 to index
    %c0_165 = arith.constant 0 : index
    %c0_166 = arith.constant 0 : index
    %250 = vector.load %arg11[%249, %c0_165, %c0_166] : memref<8x2x1xf32, #tpu.memory_space<vmem>>, vector<1x2x1xf32>
    %251 = vector.shape_cast %250 : vector<1x2x1xf32> to vector<2x1xf32>
    %252 = vector.shape_cast %248 : vector<2x1xf32> to vector<1x2x1xf32>
    tpu.vector_store %arg11[%249, %c0_165, %c0_166], %252 {strides = array<i32>} : memref<8x2x1xf32, #tpu.memory_space<vmem>>, vector<1x2x1xf32>,
    %c2_i32 = arith.constant 2 : i32
    %253 = arith.index_cast %c2_i32 : i32 to index
    %c0_167 = arith.constant 0 : index
    %c0_168 = arith.constant 0 : index
    %254 = vector.load %arg1[%253, %c0_167, %c0_168] : memref<8x2x32xf32, #tpu.memory_space<vmem>>, vector<1x2x32xf32>
    %255 = vector.shape_cast %254 : vector<1x2x32xf32> to vector<2x32xf32>
    %256 = arith.index_cast %c2_i32 : i32 to index
    %c0_169 = arith.constant 0 : index
    %c0_170 = arith.constant 0 : index
    %257 = vector.load %arg2[%256, %c0_169, %c0_170] : memref<8x2x32xf32, #tpu.memory_space<vmem>>, vector<1x2x32xf32>
    %258 = vector.shape_cast %257 : vector<1x2x32xf32> to vector<2x32xf32>
    %259 = arith.index_cast %c2_i32 : i32 to index
    %c0_171 = arith.constant 0 : index
    %c0_172 = arith.constant 0 : index
    %260 = vector.load %arg3[%259, %c0_171, %c0_172] : memref<8x2x32xf32, #tpu.memory_space<vmem>>, vector<1x2x32xf32>
    %261 = vector.shape_cast %260 : vector<1x2x32xf32> to vector<2x32xf32>
    %262 = arith.index_cast %c2_i32 : i32 to index
    %c0_173 = arith.constant 0 : index
    %c0_174 = arith.constant 0 : index
    %263 = vector.load %arg4[%262, %c0_173, %c0_174] : memref<8x2x32xf32, #tpu.memory_space<vmem>>, vector<1x2x32xf32>
    %264 = vector.shape_cast %263 : vector<1x2x32xf32> to vector<2x32xf32>
    %c0_175 = arith.constant 0 : index
    %c0_176 = arith.constant 0 : index
    %c0_177 = arith.constant 0 : index
    %265 = vector.load %arg5[%c0_175, %c0_176, %c0_177] : memref<4x32x32xf32, #tpu.memory_space<vmem>>, vector<1x32x32xf32>
    %266 = vector.shape_cast %265 : vector<1x32x32xf32> to vector<32x32xf32>
    %cst_178 = arith.constant dense<0.000000e+00> : vector<2x32xf32>
    %267 = tpu.matmul %178, %266, %cst_178 {dimension_numbers = #tpu.dot_dimension_numbers<[1], [0], [0], [1], [0, 0, 1, 1], [], []>} : vector<2x32xf32>, vector<32x32xf32>, vector<2x32xf32> -> vector<2x32xf32>
    %268 = arith.addf %255, %267 : vector<2x32xf32>
    %c1_179 = arith.constant 1 : index
    %c0_180 = arith.constant 0 : index
    %c0_181 = arith.constant 0 : index
    %269 = vector.load %arg5[%c1_179, %c0_180, %c0_181] : memref<4x32x32xf32, #tpu.memory_space<vmem>>, vector<1x32x32xf32>
    %270 = vector.shape_cast %269 : vector<1x32x32xf32> to vector<32x32xf32>
    %cst_182 = arith.constant dense<0.000000e+00> : vector<2x32xf32>
    %271 = tpu.matmul %178, %270, %cst_182 {dimension_numbers = #tpu.dot_dimension_numbers<[1], [0], [0], [1], [0, 0, 1, 1], [], []>} : vector<2x32xf32>, vector<32x32xf32>, vector<2x32xf32> -> vector<2x32xf32>
    %272 = arith.addf %258, %271 : vector<2x32xf32>
    %c2_183 = arith.constant 2 : index
    %c0_184 = arith.constant 0 : index
    %c0_185 = arith.constant 0 : index
    %273 = vector.load %arg5[%c2_183, %c0_184, %c0_185] : memref<4x32x32xf32, #tpu.memory_space<vmem>>, vector<1x32x32xf32>
    %274 = vector.shape_cast %273 : vector<1x32x32xf32> to vector<32x32xf32>
    %cst_186 = arith.constant dense<0.000000e+00> : vector<2x32xf32>
    %275 = tpu.matmul %178, %274, %cst_186 {dimension_numbers = #tpu.dot_dimension_numbers<[1], [0], [0], [1], [0, 0, 1, 1], [], []>} : vector<2x32xf32>, vector<32x32xf32>, vector<2x32xf32> -> vector<2x32xf32>
    %276 = arith.addf %261, %275 : vector<2x32xf32>
    %c3_187 = arith.constant 3 : index
    %c0_188 = arith.constant 0 : index
    %c0_189 = arith.constant 0 : index
    %277 = vector.load %arg5[%c3_187, %c0_188, %c0_189] : memref<4x32x32xf32, #tpu.memory_space<vmem>>, vector<1x32x32xf32>
    %278 = vector.shape_cast %277 : vector<1x32x32xf32> to vector<32x32xf32>
    %cst_190 = arith.constant dense<0.000000e+00> : vector<2x32xf32>
    %279 = tpu.matmul %178, %278, %cst_190 {dimension_numbers = #tpu.dot_dimension_numbers<[1], [0], [0], [1], [0, 0, 1, 1], [], []>} : vector<2x32xf32>, vector<32x32xf32>, vector<2x32xf32> -> vector<2x32xf32>
    %280 = arith.addf %264, %279 : vector<2x32xf32>
    %281 = arith.negf %268 : vector<2x32xf32>
    %282 = math.exp %281 : vector<2x32xf32>
    %cst_191 = arith.constant 1.000000e+00 : f32
    %283 = vector.broadcast %cst_191 : f32 to vector<2x32xf32>
    %284 = arith.addf %283, %282 : vector<2x32xf32>
    %285 = arith.divf %283, %284 : vector<2x32xf32>
    %286 = arith.negf %272 : vector<2x32xf32>
    %287 = math.exp %286 : vector<2x32xf32>
    %cst_192 = arith.constant 1.000000e+00 : f32
    %288 = vector.broadcast %cst_192 : f32 to vector<2x32xf32>
    %289 = arith.addf %288, %287 : vector<2x32xf32>
    %290 = arith.divf %288, %289 : vector<2x32xf32>
    %291 = math.tanh %276 : vector<2x32xf32>
    %292 = arith.negf %280 : vector<2x32xf32>
    %293 = math.exp %292 : vector<2x32xf32>
    %cst_193 = arith.constant 1.000000e+00 : f32
    %294 = vector.broadcast %cst_193 : f32 to vector<2x32xf32>
    %295 = arith.addf %294, %293 : vector<2x32xf32>
    %296 = arith.divf %294, %295 : vector<2x32xf32>
    %297 = arith.mulf %290, %176 : vector<2x32xf32>
    %298 = arith.mulf %285, %291 : vector<2x32xf32>
    %299 = arith.addf %297, %298 : vector<2x32xf32>
    %300 = math.tanh %299 : vector<2x32xf32>
    %301 = arith.mulf %296, %300 : vector<2x32xf32>
    %c0_194 = arith.constant 0 : index
    %c0_195 = arith.constant 0 : index
    %c0_196 = arith.constant 0 : index
    %302 = vector.load %arg6[%c0_194, %c0_195, %c0_196] : memref<4x32x32xf32, #tpu.memory_space<vmem>>, vector<1x32x32xf32>
    %303 = vector.shape_cast %302 : vector<1x32x32xf32> to vector<32x32xf32>
    %cst_197 = arith.constant dense<0.000000e+00> : vector<2x32xf32>
    %304 = tpu.matmul %301, %303, %cst_197 {dimension_numbers = #tpu.dot_dimension_numbers<[1], [0], [0], [1], [0, 0, 1, 1], [], []>} : vector<2x32xf32>, vector<32x32xf32>, vector<2x32xf32> -> vector<2x32xf32>
    %c0_198 = arith.constant 0 : index
    %c0_199 = arith.constant 0 : index
    %c0_200 = arith.constant 0 : index
    %305 = vector.load %arg8[%c0_198, %c0_199, %c0_200] : memref<4x1x32xf32, #tpu.memory_space<vmem>>, vector<1x1x32xf32>
    %306 = vector.shape_cast %305 : vector<1x1x32xf32> to vector<1x32xf32>
    %307 = vector.broadcast %306 : vector<1x32xf32> to vector<2x32xf32>
    %308 = arith.addf %304, %307 : vector<2x32xf32>
    %c1_201 = arith.constant 1 : index
    %c0_202 = arith.constant 0 : index
    %c0_203 = arith.constant 0 : index
    %309 = vector.load %arg6[%c1_201, %c0_202, %c0_203] : memref<4x32x32xf32, #tpu.memory_space<vmem>>, vector<1x32x32xf32>
    %310 = vector.shape_cast %309 : vector<1x32x32xf32> to vector<32x32xf32>
    %cst_204 = arith.constant dense<0.000000e+00> : vector<2x32xf32>
    %311 = tpu.matmul %301, %310, %cst_204 {dimension_numbers = #tpu.dot_dimension_numbers<[1], [0], [0], [1], [0, 0, 1, 1], [], []>} : vector<2x32xf32>, vector<32x32xf32>, vector<2x32xf32> -> vector<2x32xf32>
    %c1_205 = arith.constant 1 : index
    %c0_206 = arith.constant 0 : index
    %c0_207 = arith.constant 0 : index
    %312 = vector.load %arg8[%c1_205, %c0_206, %c0_207] : memref<4x1x32xf32, #tpu.memory_space<vmem>>, vector<1x1x32xf32>
    %313 = vector.shape_cast %312 : vector<1x1x32xf32> to vector<1x32xf32>
    %314 = vector.broadcast %313 : vector<1x32xf32> to vector<2x32xf32>
    %315 = arith.addf %311, %314 : vector<2x32xf32>
    %c2_208 = arith.constant 2 : index
    %c0_209 = arith.constant 0 : index
    %c0_210 = arith.constant 0 : index
    %316 = vector.load %arg6[%c2_208, %c0_209, %c0_210] : memref<4x32x32xf32, #tpu.memory_space<vmem>>, vector<1x32x32xf32>
    %317 = vector.shape_cast %316 : vector<1x32x32xf32> to vector<32x32xf32>
    %cst_211 = arith.constant dense<0.000000e+00> : vector<2x32xf32>
    %318 = tpu.matmul %301, %317, %cst_211 {dimension_numbers = #tpu.dot_dimension_numbers<[1], [0], [0], [1], [0, 0, 1, 1], [], []>} : vector<2x32xf32>, vector<32x32xf32>, vector<2x32xf32> -> vector<2x32xf32>
    %c2_212 = arith.constant 2 : index
    %c0_213 = arith.constant 0 : index
    %c0_214 = arith.constant 0 : index
    %319 = vector.load %arg8[%c2_212, %c0_213, %c0_214] : memref<4x1x32xf32, #tpu.memory_space<vmem>>, vector<1x1x32xf32>
    %320 = vector.shape_cast %319 : vector<1x1x32xf32> to vector<1x32xf32>
    %321 = vector.broadcast %320 : vector<1x32xf32> to vector<2x32xf32>
    %322 = arith.addf %318, %321 : vector<2x32xf32>
    %c3_215 = arith.constant 3 : index
    %c0_216 = arith.constant 0 : index
    %c0_217 = arith.constant 0 : index
    %323 = vector.load %arg6[%c3_215, %c0_216, %c0_217] : memref<4x32x32xf32, #tpu.memory_space<vmem>>, vector<1x32x32xf32>
    %324 = vector.shape_cast %323 : vector<1x32x32xf32> to vector<32x32xf32>
    %cst_218 = arith.constant dense<0.000000e+00> : vector<2x32xf32>
    %325 = tpu.matmul %301, %324, %cst_218 {dimension_numbers = #tpu.dot_dimension_numbers<[1], [0], [0], [1], [0, 0, 1, 1], [], []>} : vector<2x32xf32>, vector<32x32xf32>, vector<2x32xf32> -> vector<2x32xf32>
    %c3_219 = arith.constant 3 : index
    %c0_220 = arith.constant 0 : index
    %c0_221 = arith.constant 0 : index
    %326 = vector.load %arg8[%c3_219, %c0_220, %c0_221] : memref<4x1x32xf32, #tpu.memory_space<vmem>>, vector<1x1x32xf32>
    %327 = vector.shape_cast %326 : vector<1x1x32xf32> to vector<1x32xf32>
    %328 = vector.broadcast %327 : vector<1x32xf32> to vector<2x32xf32>
    %329 = arith.addf %325, %328 : vector<2x32xf32>
    %c0_222 = arith.constant 0 : index
    %c0_223 = arith.constant 0 : index
    %c0_224 = arith.constant 0 : index
    %330 = vector.load %arg7[%c0_222, %c0_223, %c0_224] : memref<4x32x32xf32, #tpu.memory_space<vmem>>, vector<1x32x32xf32>
    %331 = vector.shape_cast %330 : vector<1x32x32xf32> to vector<32x32xf32>
    %cst_225 = arith.constant dense<0.000000e+00> : vector<2x32xf32>
    %332 = tpu.matmul %243, %331, %cst_225 {dimension_numbers = #tpu.dot_dimension_numbers<[1], [0], [0], [1], [0, 0, 1, 1], [], []>} : vector<2x32xf32>, vector<32x32xf32>, vector<2x32xf32> -> vector<2x32xf32>
    %333 = arith.addf %308, %332 : vector<2x32xf32>
    %c1_226 = arith.constant 1 : index
    %c0_227 = arith.constant 0 : index
    %c0_228 = arith.constant 0 : index
    %334 = vector.load %arg7[%c1_226, %c0_227, %c0_228] : memref<4x32x32xf32, #tpu.memory_space<vmem>>, vector<1x32x32xf32>
    %335 = vector.shape_cast %334 : vector<1x32x32xf32> to vector<32x32xf32>
    %cst_229 = arith.constant dense<0.000000e+00> : vector<2x32xf32>
    %336 = tpu.matmul %243, %335, %cst_229 {dimension_numbers = #tpu.dot_dimension_numbers<[1], [0], [0], [1], [0, 0, 1, 1], [], []>} : vector<2x32xf32>, vector<32x32xf32>, vector<2x32xf32> -> vector<2x32xf32>
    %337 = arith.addf %315, %336 : vector<2x32xf32>
    %c2_230 = arith.constant 2 : index
    %c0_231 = arith.constant 0 : index
    %c0_232 = arith.constant 0 : index
    %338 = vector.load %arg7[%c2_230, %c0_231, %c0_232] : memref<4x32x32xf32, #tpu.memory_space<vmem>>, vector<1x32x32xf32>
    %339 = vector.shape_cast %338 : vector<1x32x32xf32> to vector<32x32xf32>
    %cst_233 = arith.constant dense<0.000000e+00> : vector<2x32xf32>
    %340 = tpu.matmul %243, %339, %cst_233 {dimension_numbers = #tpu.dot_dimension_numbers<[1], [0], [0], [1], [0, 0, 1, 1], [], []>} : vector<2x32xf32>, vector<32x32xf32>, vector<2x32xf32> -> vector<2x32xf32>
    %341 = arith.addf %322, %340 : vector<2x32xf32>
    %c3_234 = arith.constant 3 : index
    %c0_235 = arith.constant 0 : index
    %c0_236 = arith.constant 0 : index
    %342 = vector.load %arg7[%c3_234, %c0_235, %c0_236] : memref<4x32x32xf32, #tpu.memory_space<vmem>>, vector<1x32x32xf32>
    %343 = vector.shape_cast %342 : vector<1x32x32xf32> to vector<32x32xf32>
    %cst_237 = arith.constant dense<0.000000e+00> : vector<2x32xf32>
    %344 = tpu.matmul %243, %343, %cst_237 {dimension_numbers = #tpu.dot_dimension_numbers<[1], [0], [0], [1], [0, 0, 1, 1], [], []>} : vector<2x32xf32>, vector<32x32xf32>, vector<2x32xf32> -> vector<2x32xf32>
    %345 = arith.addf %329, %344 : vector<2x32xf32>
    %346 = arith.negf %333 : vector<2x32xf32>
    %347 = math.exp %346 : vector<2x32xf32>
    %cst_238 = arith.constant 1.000000e+00 : f32
    %348 = vector.broadcast %cst_238 : f32 to vector<2x32xf32>
    %349 = arith.addf %348, %347 : vector<2x32xf32>
    %350 = arith.divf %348, %349 : vector<2x32xf32>
    %351 = arith.negf %337 : vector<2x32xf32>
    %352 = math.exp %351 : vector<2x32xf32>
    %cst_239 = arith.constant 1.000000e+00 : f32
    %353 = vector.broadcast %cst_239 : f32 to vector<2x32xf32>
    %354 = arith.addf %353, %352 : vector<2x32xf32>
    %355 = arith.divf %353, %354 : vector<2x32xf32>
    %356 = math.tanh %341 : vector<2x32xf32>
    %357 = arith.negf %345 : vector<2x32xf32>
    %358 = math.exp %357 : vector<2x32xf32>
    %cst_240 = arith.constant 1.000000e+00 : f32
    %359 = vector.broadcast %cst_240 : f32 to vector<2x32xf32>
    %360 = arith.addf %359, %358 : vector<2x32xf32>
    %361 = arith.divf %359, %360 : vector<2x32xf32>
    %362 = arith.mulf %355, %241 : vector<2x32xf32>
    %363 = arith.mulf %350, %356 : vector<2x32xf32>
    %364 = arith.addf %362, %363 : vector<2x32xf32>
    %365 = math.tanh %364 : vector<2x32xf32>
    %366 = arith.mulf %361, %365 : vector<2x32xf32>
    %c0_241 = arith.constant 0 : index
    %c0_242 = arith.constant 0 : index
    %367 = vector.load %arg9[%c0_241, %c0_242] : memref<32x1xf32, #tpu.memory_space<vmem>>, vector<32x1xf32>
    %cst_243 = arith.constant dense<0.000000e+00> : vector<2x1xf32>
    %368 = tpu.matmul %366, %367, %cst_243 {dimension_numbers = #tpu.dot_dimension_numbers<[1], [0], [0], [1], [0, 0, 1, 1], [], []>} : vector<2x32xf32>, vector<32x1xf32>, vector<2x1xf32> -> vector<2x1xf32>
    %c0_244 = arith.constant 0 : index
    %c0_245 = arith.constant 0 : index
    %369 = vector.load %arg10[%c0_244, %c0_245] : memref<1x1xf32, #tpu.memory_space<vmem>>, vector<1x1xf32>
    %370 = vector.broadcast %369 : vector<1x1xf32> to vector<2x1xf32>
    %371 = arith.addf %368, %370 : vector<2x1xf32>
    %372 = arith.index_cast %c2_i32 : i32 to index
    %c0_246 = arith.constant 0 : index
    %c0_247 = arith.constant 0 : index
    %373 = vector.load %arg11[%372, %c0_246, %c0_247] : memref<8x2x1xf32, #tpu.memory_space<vmem>>, vector<1x2x1xf32>
    %374 = vector.shape_cast %373 : vector<1x2x1xf32> to vector<2x1xf32>
    %375 = vector.shape_cast %371 : vector<2x1xf32> to vector<1x2x1xf32>
    tpu.vector_store %arg11[%372, %c0_246, %c0_247], %375 {strides = array<i32>} : memref<8x2x1xf32, #tpu.memory_space<vmem>>, vector<1x2x1xf32>,
    %c3_i32 = arith.constant 3 : i32
    %376 = arith.index_cast %c3_i32 : i32 to index
    %c0_248 = arith.constant 0 : index
    %c0_249 = arith.constant 0 : index
    %377 = vector.load %arg1[%376, %c0_248, %c0_249] : memref<8x2x32xf32, #tpu.memory_space<vmem>>, vector<1x2x32xf32>
    %378 = vector.shape_cast %377 : vector<1x2x32xf32> to vector<2x32xf32>
    %379 = arith.index_cast %c3_i32 : i32 to index
    %c0_250 = arith.constant 0 : index
    %c0_251 = arith.constant 0 : index
    %380 = vector.load %arg2[%379, %c0_250, %c0_251] : memref<8x2x32xf32, #tpu.memory_space<vmem>>, vector<1x2x32xf32>
    %381 = vector.shape_cast %380 : vector<1x2x32xf32> to vector<2x32xf32>
    %382 = arith.index_cast %c3_i32 : i32 to index
    %c0_252 = arith.constant 0 : index
    %c0_253 = arith.constant 0 : index
    %383 = vector.load %arg3[%382, %c0_252, %c0_253] : memref<8x2x32xf32, #tpu.memory_space<vmem>>, vector<1x2x32xf32>
    %384 = vector.shape_cast %383 : vector<1x2x32xf32> to vector<2x32xf32>
    %385 = arith.index_cast %c3_i32 : i32 to index
    %c0_254 = arith.constant 0 : index
    %c0_255 = arith.constant 0 : index
    %386 = vector.load %arg4[%385, %c0_254, %c0_255] : memref<8x2x32xf32, #tpu.memory_space<vmem>>, vector<1x2x32xf32>
    %387 = vector.shape_cast %386 : vector<1x2x32xf32> to vector<2x32xf32>
    %c0_256 = arith.constant 0 : index
    %c0_257 = arith.constant 0 : index
    %c0_258 = arith.constant 0 : index
    %388 = vector.load %arg5[%c0_256, %c0_257, %c0_258] : memref<4x32x32xf32, #tpu.memory_space<vmem>>, vector<1x32x32xf32>
    %389 = vector.shape_cast %388 : vector<1x32x32xf32> to vector<32x32xf32>
    %cst_259 = arith.constant dense<0.000000e+00> : vector<2x32xf32>
    %390 = tpu.matmul %301, %389, %cst_259 {dimension_numbers = #tpu.dot_dimension_numbers<[1], [0], [0], [1], [0, 0, 1, 1], [], []>} : vector<2x32xf32>, vector<32x32xf32>, vector<2x32xf32> -> vector<2x32xf32>
    %391 = arith.addf %378, %390 : vector<2x32xf32>
    %c1_260 = arith.constant 1 : index
    %c0_261 = arith.constant 0 : index
    %c0_262 = arith.constant 0 : index
    %392 = vector.load %arg5[%c1_260, %c0_261, %c0_262] : memref<4x32x32xf32, #tpu.memory_space<vmem>>, vector<1x32x32xf32>
    %393 = vector.shape_cast %392 : vector<1x32x32xf32> to vector<32x32xf32>
    %cst_263 = arith.constant dense<0.000000e+00> : vector<2x32xf32>
    %394 = tpu.matmul %301, %393, %cst_263 {dimension_numbers = #tpu.dot_dimension_numbers<[1], [0], [0], [1], [0, 0, 1, 1], [], []>} : vector<2x32xf32>, vector<32x32xf32>, vector<2x32xf32> -> vector<2x32xf32>
    %395 = arith.addf %381, %394 : vector<2x32xf32>
    %c2_264 = arith.constant 2 : index
    %c0_265 = arith.constant 0 : index
    %c0_266 = arith.constant 0 : index
    %396 = vector.load %arg5[%c2_264, %c0_265, %c0_266] : memref<4x32x32xf32, #tpu.memory_space<vmem>>, vector<1x32x32xf32>
    %397 = vector.shape_cast %396 : vector<1x32x32xf32> to vector<32x32xf32>
    %cst_267 = arith.constant dense<0.000000e+00> : vector<2x32xf32>
    %398 = tpu.matmul %301, %397, %cst_267 {dimension_numbers = #tpu.dot_dimension_numbers<[1], [0], [0], [1], [0, 0, 1, 1], [], []>} : vector<2x32xf32>, vector<32x32xf32>, vector<2x32xf32> -> vector<2x32xf32>
    %399 = arith.addf %384, %398 : vector<2x32xf32>
    %c3_268 = arith.constant 3 : index
    %c0_269 = arith.constant 0 : index
    %c0_270 = arith.constant 0 : index
    %400 = vector.load %arg5[%c3_268, %c0_269, %c0_270] : memref<4x32x32xf32, #tpu.memory_space<vmem>>, vector<1x32x32xf32>
    %401 = vector.shape_cast %400 : vector<1x32x32xf32> to vector<32x32xf32>
    %cst_271 = arith.constant dense<0.000000e+00> : vector<2x32xf32>
    %402 = tpu.matmul %301, %401, %cst_271 {dimension_numbers = #tpu.dot_dimension_numbers<[1], [0], [0], [1], [0, 0, 1, 1], [], []>} : vector<2x32xf32>, vector<32x32xf32>, vector<2x32xf32> -> vector<2x32xf32>
    %403 = arith.addf %387, %402 : vector<2x32xf32>
    %404 = arith.negf %391 : vector<2x32xf32>
    %405 = math.exp %404 : vector<2x32xf32>
    %cst_272 = arith.constant 1.000000e+00 : f32
    %406 = vector.broadcast %cst_272 : f32 to vector<2x32xf32>
    %407 = arith.addf %406, %405 : vector<2x32xf32>
    %408 = arith.divf %406, %407 : vector<2x32xf32>
    %409 = arith.negf %395 : vector<2x32xf32>
    %410 = math.exp %409 : vector<2x32xf32>
    %cst_273 = arith.constant 1.000000e+00 : f32
    %411 = vector.broadcast %cst_273 : f32 to vector<2x32xf32>
    %412 = arith.addf %411, %410 : vector<2x32xf32>
    %413 = arith.divf %411, %412 : vector<2x32xf32>
    %414 = math.tanh %399 : vector<2x32xf32>
    %415 = arith.negf %403 : vector<2x32xf32>
    %416 = math.exp %415 : vector<2x32xf32>
    %cst_274 = arith.constant 1.000000e+00 : f32
    %417 = vector.broadcast %cst_274 : f32 to vector<2x32xf32>
    %418 = arith.addf %417, %416 : vector<2x32xf32>
    %419 = arith.divf %417, %418 : vector<2x32xf32>
    %420 = arith.mulf %413, %299 : vector<2x32xf32>
    %421 = arith.mulf %408, %414 : vector<2x32xf32>
    %422 = arith.addf %420, %421 : vector<2x32xf32>
    %423 = math.tanh %422 : vector<2x32xf32>
    %424 = arith.mulf %419, %423 : vector<2x32xf32>
    %c0_275 = arith.constant 0 : index
    %c0_276 = arith.constant 0 : index
    %c0_277 = arith.constant 0 : index
    %425 = vector.load %arg6[%c0_275, %c0_276, %c0_277] : memref<4x32x32xf32, #tpu.memory_space<vmem>>, vector<1x32x32xf32>
    %426 = vector.shape_cast %425 : vector<1x32x32xf32> to vector<32x32xf32>
    %cst_278 = arith.constant dense<0.000000e+00> : vector<2x32xf32>
    %427 = tpu.matmul %424, %426, %cst_278 {dimension_numbers = #tpu.dot_dimension_numbers<[1], [0], [0], [1], [0, 0, 1, 1], [], []>} : vector<2x32xf32>, vector<32x32xf32>, vector<2x32xf32> -> vector<2x32xf32>
    %c0_279 = arith.constant 0 : index
    %c0_280 = arith.constant 0 : index
    %c0_281 = arith.constant 0 : index
    %428 = vector.load %arg8[%c0_279, %c0_280, %c0_281] : memref<4x1x32xf32, #tpu.memory_space<vmem>>, vector<1x1x32xf32>
    %429 = vector.shape_cast %428 : vector<1x1x32xf32> to vector<1x32xf32>
    %430 = vector.broadcast %429 : vector<1x32xf32> to vector<2x32xf32>
    %431 = arith.addf %427, %430 : vector<2x32xf32>
    %c1_282 = arith.constant 1 : index
    %c0_283 = arith.constant 0 : index
    %c0_284 = arith.constant 0 : index
    %432 = vector.load %arg6[%c1_282, %c0_283, %c0_284] : memref<4x32x32xf32, #tpu.memory_space<vmem>>, vector<1x32x32xf32>
    %433 = vector.shape_cast %432 : vector<1x32x32xf32> to vector<32x32xf32>
    %cst_285 = arith.constant dense<0.000000e+00> : vector<2x32xf32>
    %434 = tpu.matmul %424, %433, %cst_285 {dimension_numbers = #tpu.dot_dimension_numbers<[1], [0], [0], [1], [0, 0, 1, 1], [], []>} : vector<2x32xf32>, vector<32x32xf32>, vector<2x32xf32> -> vector<2x32xf32>
    %c1_286 = arith.constant 1 : index
    %c0_287 = arith.constant 0 : index
    %c0_288 = arith.constant 0 : index
    %435 = vector.load %arg8[%c1_286, %c0_287, %c0_288] : memref<4x1x32xf32, #tpu.memory_space<vmem>>, vector<1x1x32xf32>
    %436 = vector.shape_cast %435 : vector<1x1x32xf32> to vector<1x32xf32>
    %437 = vector.broadcast %436 : vector<1x32xf32> to vector<2x32xf32>
    %438 = arith.addf %434, %437 : vector<2x32xf32>
    %c2_289 = arith.constant 2 : index
    %c0_290 = arith.constant 0 : index
    %c0_291 = arith.constant 0 : index
    %439 = vector.load %arg6[%c2_289, %c0_290, %c0_291] : memref<4x32x32xf32, #tpu.memory_space<vmem>>, vector<1x32x32xf32>
    %440 = vector.shape_cast %439 : vector<1x32x32xf32> to vector<32x32xf32>
    %cst_292 = arith.constant dense<0.000000e+00> : vector<2x32xf32>
    %441 = tpu.matmul %424, %440, %cst_292 {dimension_numbers = #tpu.dot_dimension_numbers<[1], [0], [0], [1], [0, 0, 1, 1], [], []>} : vector<2x32xf32>, vector<32x32xf32>, vector<2x32xf32> -> vector<2x32xf32>
    %c2_293 = arith.constant 2 : index
    %c0_294 = arith.constant 0 : index
    %c0_295 = arith.constant 0 : index
    %442 = vector.load %arg8[%c2_293, %c0_294, %c0_295] : memref<4x1x32xf32, #tpu.memory_space<vmem>>, vector<1x1x32xf32>
    %443 = vector.shape_cast %442 : vector<1x1x32xf32> to vector<1x32xf32>
    %444 = vector.broadcast %443 : vector<1x32xf32> to vector<2x32xf32>
    %445 = arith.addf %441, %444 : vector<2x32xf32>
    %c3_296 = arith.constant 3 : index
    %c0_297 = arith.constant 0 : index
    %c0_298 = arith.constant 0 : index
    %446 = vector.load %arg6[%c3_296, %c0_297, %c0_298] : memref<4x32x32xf32, #tpu.memory_space<vmem>>, vector<1x32x32xf32>
    %447 = vector.shape_cast %446 : vector<1x32x32xf32> to vector<32x32xf32>
    %cst_299 = arith.constant dense<0.000000e+00> : vector<2x32xf32>
    %448 = tpu.matmul %424, %447, %cst_299 {dimension_numbers = #tpu.dot_dimension_numbers<[1], [0], [0], [1], [0, 0, 1, 1], [], []>} : vector<2x32xf32>, vector<32x32xf32>, vector<2x32xf32> -> vector<2x32xf32>
    %c3_300 = arith.constant 3 : index
    %c0_301 = arith.constant 0 : index
    %c0_302 = arith.constant 0 : index
    %449 = vector.load %arg8[%c3_300, %c0_301, %c0_302] : memref<4x1x32xf32, #tpu.memory_space<vmem>>, vector<1x1x32xf32>
    %450 = vector.shape_cast %449 : vector<1x1x32xf32> to vector<1x32xf32>
    %451 = vector.broadcast %450 : vector<1x32xf32> to vector<2x32xf32>
    %452 = arith.addf %448, %451 : vector<2x32xf32>
    %c0_303 = arith.constant 0 : index
    %c0_304 = arith.constant 0 : index
    %c0_305 = arith.constant 0 : index
    %453 = vector.load %arg7[%c0_303, %c0_304, %c0_305] : memref<4x32x32xf32, #tpu.memory_space<vmem>>, vector<1x32x32xf32>
    %454 = vector.shape_cast %453 : vector<1x32x32xf32> to vector<32x32xf32>
    %cst_306 = arith.constant dense<0.000000e+00> : vector<2x32xf32>
    %455 = tpu.matmul %366, %454, %cst_306 {dimension_numbers = #tpu.dot_dimension_numbers<[1], [0], [0], [1], [0, 0, 1, 1], [], []>} : vector<2x32xf32>, vector<32x32xf32>, vector<2x32xf32> -> vector<2x32xf32>
    %456 = arith.addf %431, %455 : vector<2x32xf32>
    %c1_307 = arith.constant 1 : index
    %c0_308 = arith.constant 0 : index
    %c0_309 = arith.constant 0 : index
    %457 = vector.load %arg7[%c1_307, %c0_308, %c0_309] : memref<4x32x32xf32, #tpu.memory_space<vmem>>, vector<1x32x32xf32>
    %458 = vector.shape_cast %457 : vector<1x32x32xf32> to vector<32x32xf32>
    %cst_310 = arith.constant dense<0.000000e+00> : vector<2x32xf32>
    %459 = tpu.matmul %366, %458, %cst_310 {dimension_numbers = #tpu.dot_dimension_numbers<[1], [0], [0], [1], [0, 0, 1, 1], [], []>} : vector<2x32xf32>, vector<32x32xf32>, vector<2x32xf32> -> vector<2x32xf32>
    %460 = arith.addf %438, %459 : vector<2x32xf32>
    %c2_311 = arith.constant 2 : index
    %c0_312 = arith.constant 0 : index
    %c0_313 = arith.constant 0 : index
    %461 = vector.load %arg7[%c2_311, %c0_312, %c0_313] : memref<4x32x32xf32, #tpu.memory_space<vmem>>, vector<1x32x32xf32>
    %462 = vector.shape_cast %461 : vector<1x32x32xf32> to vector<32x32xf32>
    %cst_314 = arith.constant dense<0.000000e+00> : vector<2x32xf32>
    %463 = tpu.matmul %366, %462, %cst_314 {dimension_numbers = #tpu.dot_dimension_numbers<[1], [0], [0], [1], [0, 0, 1, 1], [], []>} : vector<2x32xf32>, vector<32x32xf32>, vector<2x32xf32> -> vector<2x32xf32>
    %464 = arith.addf %445, %463 : vector<2x32xf32>
    %c3_315 = arith.constant 3 : index
    %c0_316 = arith.constant 0 : index
    %c0_317 = arith.constant 0 : index
    %465 = vector.load %arg7[%c3_315, %c0_316, %c0_317] : memref<4x32x32xf32, #tpu.memory_space<vmem>>, vector<1x32x32xf32>
    %466 = vector.shape_cast %465 : vector<1x32x32xf32> to vector<32x32xf32>
    %cst_318 = arith.constant dense<0.000000e+00> : vector<2x32xf32>
    %467 = tpu.matmul %366, %466, %cst_318 {dimension_numbers = #tpu.dot_dimension_numbers<[1], [0], [0], [1], [0, 0, 1, 1], [], []>} : vector<2x32xf32>, vector<32x32xf32>, vector<2x32xf32> -> vector<2x32xf32>
    %468 = arith.addf %452, %467 : vector<2x32xf32>
    %469 = arith.negf %456 : vector<2x32xf32>
    %470 = math.exp %469 : vector<2x32xf32>
    %cst_319 = arith.constant 1.000000e+00 : f32
    %471 = vector.broadcast %cst_319 : f32 to vector<2x32xf32>
    %472 = arith.addf %471, %470 : vector<2x32xf32>
    %473 = arith.divf %471, %472 : vector<2x32xf32>
    %474 = arith.negf %460 : vector<2x32xf32>
    %475 = math.exp %474 : vector<2x32xf32>
    %cst_320 = arith.constant 1.000000e+00 : f32
    %476 = vector.broadcast %cst_320 : f32 to vector<2x32xf32>
    %477 = arith.addf %476, %475 : vector<2x32xf32>
    %478 = arith.divf %476, %477 : vector<2x32xf32>
    %479 = math.tanh %464 : vector<2x32xf32>
    %480 = arith.negf %468 : vector<2x32xf32>
    %481 = math.exp %480 : vector<2x32xf32>
    %cst_321 = arith.constant 1.000000e+00 : f32
    %482 = vector.broadcast %cst_321 : f32 to vector<2x32xf32>
    %483 = arith.addf %482, %481 : vector<2x32xf32>
    %484 = arith.divf %482, %483 : vector<2x32xf32>
    %485 = arith.mulf %478, %364 : vector<2x32xf32>
    %486 = arith.mulf %473, %479 : vector<2x32xf32>
    %487 = arith.addf %485, %486 : vector<2x32xf32>
    %488 = math.tanh %487 : vector<2x32xf32>
    %489 = arith.mulf %484, %488 : vector<2x32xf32>
    %c0_322 = arith.constant 0 : index
    %c0_323 = arith.constant 0 : index
    %490 = vector.load %arg9[%c0_322, %c0_323] : memref<32x1xf32, #tpu.memory_space<vmem>>, vector<32x1xf32>
    %cst_324 = arith.constant dense<0.000000e+00> : vector<2x1xf32>
    %491 = tpu.matmul %489, %490, %cst_324 {dimension_numbers = #tpu.dot_dimension_numbers<[1], [0], [0], [1], [0, 0, 1, 1], [], []>} : vector<2x32xf32>, vector<32x1xf32>, vector<2x1xf32> -> vector<2x1xf32>
    %c0_325 = arith.constant 0 : index
    %c0_326 = arith.constant 0 : index
    %492 = vector.load %arg10[%c0_325, %c0_326] : memref<1x1xf32, #tpu.memory_space<vmem>>, vector<1x1xf32>
    %493 = vector.broadcast %492 : vector<1x1xf32> to vector<2x1xf32>
    %494 = arith.addf %491, %493 : vector<2x1xf32>
    %495 = arith.index_cast %c3_i32 : i32 to index
    %c0_327 = arith.constant 0 : index
    %c0_328 = arith.constant 0 : index
    %496 = vector.load %arg11[%495, %c0_327, %c0_328] : memref<8x2x1xf32, #tpu.memory_space<vmem>>, vector<1x2x1xf32>
    %497 = vector.shape_cast %496 : vector<1x2x1xf32> to vector<2x1xf32>
    %498 = vector.shape_cast %494 : vector<2x1xf32> to vector<1x2x1xf32>
    tpu.vector_store %arg11[%495, %c0_327, %c0_328], %498 {strides = array<i32>} : memref<8x2x1xf32, #tpu.memory_space<vmem>>, vector<1x2x1xf32>,
    %c4_i32 = arith.constant 4 : i32
    %499 = arith.index_cast %c4_i32 : i32 to index
    %c0_329 = arith.constant 0 : index
    %c0_330 = arith.constant 0 : index
    %500 = vector.load %arg1[%499, %c0_329, %c0_330] : memref<8x2x32xf32, #tpu.memory_space<vmem>>, vector<1x2x32xf32>
    %501 = vector.shape_cast %500 : vector<1x2x32xf32> to vector<2x32xf32>
    %502 = arith.index_cast %c4_i32 : i32 to index
    %c0_331 = arith.constant 0 : index
    %c0_332 = arith.constant 0 : index
    %503 = vector.load %arg2[%502, %c0_331, %c0_332] : memref<8x2x32xf32, #tpu.memory_space<vmem>>, vector<1x2x32xf32>
    %504 = vector.shape_cast %503 : vector<1x2x32xf32> to vector<2x32xf32>
    %505 = arith.index_cast %c4_i32 : i32 to index
    %c0_333 = arith.constant 0 : index
    %c0_334 = arith.constant 0 : index
    %506 = vector.load %arg3[%505, %c0_333, %c0_334] : memref<8x2x32xf32, #tpu.memory_space<vmem>>, vector<1x2x32xf32>
    %507 = vector.shape_cast %506 : vector<1x2x32xf32> to vector<2x32xf32>
    %508 = arith.index_cast %c4_i32 : i32 to index
    %c0_335 = arith.constant 0 : index
    %c0_336 = arith.constant 0 : index
    %509 = vector.load %arg4[%508, %c0_335, %c0_336] : memref<8x2x32xf32, #tpu.memory_space<vmem>>, vector<1x2x32xf32>
    %510 = vector.shape_cast %509 : vector<1x2x32xf32> to vector<2x32xf32>
    %c0_337 = arith.constant 0 : index
    %c0_338 = arith.constant 0 : index
    %c0_339 = arith.constant 0 : index
    %511 = vector.load %arg5[%c0_337, %c0_338, %c0_339] : memref<4x32x32xf32, #tpu.memory_space<vmem>>, vector<1x32x32xf32>
    %512 = vector.shape_cast %511 : vector<1x32x32xf32> to vector<32x32xf32>
    %cst_340 = arith.constant dense<0.000000e+00> : vector<2x32xf32>
    %513 = tpu.matmul %424, %512, %cst_340 {dimension_numbers = #tpu.dot_dimension_numbers<[1], [0], [0], [1], [0, 0, 1, 1], [], []>} : vector<2x32xf32>, vector<32x32xf32>, vector<2x32xf32> -> vector<2x32xf32>
    %514 = arith.addf %501, %513 : vector<2x32xf32>
    %c1_341 = arith.constant 1 : index
    %c0_342 = arith.constant 0 : index
    %c0_343 = arith.constant 0 : index
    %515 = vector.load %arg5[%c1_341, %c0_342, %c0_343] : memref<4x32x32xf32, #tpu.memory_space<vmem>>, vector<1x32x32xf32>
    %516 = vector.shape_cast %515 : vector<1x32x32xf32> to vector<32x32xf32>
    %cst_344 = arith.constant dense<0.000000e+00> : vector<2x32xf32>
    %517 = tpu.matmul %424, %516, %cst_344 {dimension_numbers = #tpu.dot_dimension_numbers<[1], [0], [0], [1], [0, 0, 1, 1], [], []>} : vector<2x32xf32>, vector<32x32xf32>, vector<2x32xf32> -> vector<2x32xf32>
    %518 = arith.addf %504, %517 : vector<2x32xf32>
    %c2_345 = arith.constant 2 : index
    %c0_346 = arith.constant 0 : index
    %c0_347 = arith.constant 0 : index
    %519 = vector.load %arg5[%c2_345, %c0_346, %c0_347] : memref<4x32x32xf32, #tpu.memory_space<vmem>>, vector<1x32x32xf32>
    %520 = vector.shape_cast %519 : vector<1x32x32xf32> to vector<32x32xf32>
    %cst_348 = arith.constant dense<0.000000e+00> : vector<2x32xf32>
    %521 = tpu.matmul %424, %520, %cst_348 {dimension_numbers = #tpu.dot_dimension_numbers<[1], [0], [0], [1], [0, 0, 1, 1], [], []>} : vector<2x32xf32>, vector<32x32xf32>, vector<2x32xf32> -> vector<2x32xf32>
    %522 = arith.addf %507, %521 : vector<2x32xf32>
    %c3_349 = arith.constant 3 : index
    %c0_350 = arith.constant 0 : index
    %c0_351 = arith.constant 0 : index
    %523 = vector.load %arg5[%c3_349, %c0_350, %c0_351] : memref<4x32x32xf32, #tpu.memory_space<vmem>>, vector<1x32x32xf32>
    %524 = vector.shape_cast %523 : vector<1x32x32xf32> to vector<32x32xf32>
    %cst_352 = arith.constant dense<0.000000e+00> : vector<2x32xf32>
    %525 = tpu.matmul %424, %524, %cst_352 {dimension_numbers = #tpu.dot_dimension_numbers<[1], [0], [0], [1], [0, 0, 1, 1], [], []>} : vector<2x32xf32>, vector<32x32xf32>, vector<2x32xf32> -> vector<2x32xf32>
    %526 = arith.addf %510, %525 : vector<2x32xf32>
    %527 = arith.negf %514 : vector<2x32xf32>
    %528 = math.exp %527 : vector<2x32xf32>
    %cst_353 = arith.constant 1.000000e+00 : f32
    %529 = vector.broadcast %cst_353 : f32 to vector<2x32xf32>
    %530 = arith.addf %529, %528 : vector<2x32xf32>
    %531 = arith.divf %529, %530 : vector<2x32xf32>
    %532 = arith.negf %518 : vector<2x32xf32>
    %533 = math.exp %532 : vector<2x32xf32>
    %cst_354 = arith.constant 1.000000e+00 : f32
    %534 = vector.broadcast %cst_354 : f32 to vector<2x32xf32>
    %535 = arith.addf %534, %533 : vector<2x32xf32>
    %536 = arith.divf %534, %535 : vector<2x32xf32>
    %537 = math.tanh %522 : vector<2x32xf32>
    %538 = arith.negf %526 : vector<2x32xf32>
    %539 = math.exp %538 : vector<2x32xf32>
    %cst_355 = arith.constant 1.000000e+00 : f32
    %540 = vector.broadcast %cst_355 : f32 to vector<2x32xf32>
    %541 = arith.addf %540, %539 : vector<2x32xf32>
    %542 = arith.divf %540, %541 : vector<2x32xf32>
    %543 = arith.mulf %536, %422 : vector<2x32xf32>
    %544 = arith.mulf %531, %537 : vector<2x32xf32>
    %545 = arith.addf %543, %544 : vector<2x32xf32>
    %546 = math.tanh %545 : vector<2x32xf32>
    %547 = arith.mulf %542, %546 : vector<2x32xf32>
    %c0_356 = arith.constant 0 : index
    %c0_357 = arith.constant 0 : index
    %c0_358 = arith.constant 0 : index
    %548 = vector.load %arg6[%c0_356, %c0_357, %c0_358] : memref<4x32x32xf32, #tpu.memory_space<vmem>>, vector<1x32x32xf32>
    %549 = vector.shape_cast %548 : vector<1x32x32xf32> to vector<32x32xf32>
    %cst_359 = arith.constant dense<0.000000e+00> : vector<2x32xf32>
    %550 = tpu.matmul %547, %549, %cst_359 {dimension_numbers = #tpu.dot_dimension_numbers<[1], [0], [0], [1], [0, 0, 1, 1], [], []>} : vector<2x32xf32>, vector<32x32xf32>, vector<2x32xf32> -> vector<2x32xf32>
    %c0_360 = arith.constant 0 : index
    %c0_361 = arith.constant 0 : index
    %c0_362 = arith.constant 0 : index
    %551 = vector.load %arg8[%c0_360, %c0_361, %c0_362] : memref<4x1x32xf32, #tpu.memory_space<vmem>>, vector<1x1x32xf32>
    %552 = vector.shape_cast %551 : vector<1x1x32xf32> to vector<1x32xf32>
    %553 = vector.broadcast %552 : vector<1x32xf32> to vector<2x32xf32>
    %554 = arith.addf %550, %553 : vector<2x32xf32>
    %c1_363 = arith.constant 1 : index
    %c0_364 = arith.constant 0 : index
    %c0_365 = arith.constant 0 : index
    %555 = vector.load %arg6[%c1_363, %c0_364, %c0_365] : memref<4x32x32xf32, #tpu.memory_space<vmem>>, vector<1x32x32xf32>
    %556 = vector.shape_cast %555 : vector<1x32x32xf32> to vector<32x32xf32>
    %cst_366 = arith.constant dense<0.000000e+00> : vector<2x32xf32>
    %557 = tpu.matmul %547, %556, %cst_366 {dimension_numbers = #tpu.dot_dimension_numbers<[1], [0], [0], [1], [0, 0, 1, 1], [], []>} : vector<2x32xf32>, vector<32x32xf32>, vector<2x32xf32> -> vector<2x32xf32>
    %c1_367 = arith.constant 1 : index
    %c0_368 = arith.constant 0 : index
    %c0_369 = arith.constant 0 : index
    %558 = vector.load %arg8[%c1_367, %c0_368, %c0_369] : memref<4x1x32xf32, #tpu.memory_space<vmem>>, vector<1x1x32xf32>
    %559 = vector.shape_cast %558 : vector<1x1x32xf32> to vector<1x32xf32>
    %560 = vector.broadcast %559 : vector<1x32xf32> to vector<2x32xf32>
    %561 = arith.addf %557, %560 : vector<2x32xf32>
    %c2_370 = arith.constant 2 : index
    %c0_371 = arith.constant 0 : index
    %c0_372 = arith.constant 0 : index
    %562 = vector.load %arg6[%c2_370, %c0_371, %c0_372] : memref<4x32x32xf32, #tpu.memory_space<vmem>>, vector<1x32x32xf32>
    %563 = vector.shape_cast %562 : vector<1x32x32xf32> to vector<32x32xf32>
    %cst_373 = arith.constant dense<0.000000e+00> : vector<2x32xf32>
    %564 = tpu.matmul %547, %563, %cst_373 {dimension_numbers = #tpu.dot_dimension_numbers<[1], [0], [0], [1], [0, 0, 1, 1], [], []>} : vector<2x32xf32>, vector<32x32xf32>, vector<2x32xf32> -> vector<2x32xf32>
    %c2_374 = arith.constant 2 : index
    %c0_375 = arith.constant 0 : index
    %c0_376 = arith.constant 0 : index
    %565 = vector.load %arg8[%c2_374, %c0_375, %c0_376] : memref<4x1x32xf32, #tpu.memory_space<vmem>>, vector<1x1x32xf32>
    %566 = vector.shape_cast %565 : vector<1x1x32xf32> to vector<1x32xf32>
    %567 = vector.broadcast %566 : vector<1x32xf32> to vector<2x32xf32>
    %568 = arith.addf %564, %567 : vector<2x32xf32>
    %c3_377 = arith.constant 3 : index
    %c0_378 = arith.constant 0 : index
    %c0_379 = arith.constant 0 : index
    %569 = vector.load %arg6[%c3_377, %c0_378, %c0_379] : memref<4x32x32xf32, #tpu.memory_space<vmem>>, vector<1x32x32xf32>
    %570 = vector.shape_cast %569 : vector<1x32x32xf32> to vector<32x32xf32>
    %cst_380 = arith.constant dense<0.000000e+00> : vector<2x32xf32>
    %571 = tpu.matmul %547, %570, %cst_380 {dimension_numbers = #tpu.dot_dimension_numbers<[1], [0], [0], [1], [0, 0, 1, 1], [], []>} : vector<2x32xf32>, vector<32x32xf32>, vector<2x32xf32> -> vector<2x32xf32>
    %c3_381 = arith.constant 3 : index
    %c0_382 = arith.constant 0 : index
    %c0_383 = arith.constant 0 : index
    %572 = vector.load %arg8[%c3_381, %c0_382, %c0_383] : memref<4x1x32xf32, #tpu.memory_space<vmem>>, vector<1x1x32xf32>
    %573 = vector.shape_cast %572 : vector<1x1x32xf32> to vector<1x32xf32>
    %574 = vector.broadcast %573 : vector<1x32xf32> to vector<2x32xf32>
    %575 = arith.addf %571, %574 : vector<2x32xf32>
    %c0_384 = arith.constant 0 : index
    %c0_385 = arith.constant 0 : index
    %c0_386 = arith.constant 0 : index
    %576 = vector.load %arg7[%c0_384, %c0_385, %c0_386] : memref<4x32x32xf32, #tpu.memory_space<vmem>>, vector<1x32x32xf32>
    %577 = vector.shape_cast %576 : vector<1x32x32xf32> to vector<32x32xf32>
    %cst_387 = arith.constant dense<0.000000e+00> : vector<2x32xf32>
    %578 = tpu.matmul %489, %577, %cst_387 {dimension_numbers = #tpu.dot_dimension_numbers<[1], [0], [0], [1], [0, 0, 1, 1], [], []>} : vector<2x32xf32>, vector<32x32xf32>, vector<2x32xf32> -> vector<2x32xf32>
    %579 = arith.addf %554, %578 : vector<2x32xf32>
    %c1_388 = arith.constant 1 : index
    %c0_389 = arith.constant 0 : index
    %c0_390 = arith.constant 0 : index
    %580 = vector.load %arg7[%c1_388, %c0_389, %c0_390] : memref<4x32x32xf32, #tpu.memory_space<vmem>>, vector<1x32x32xf32>
    %581 = vector.shape_cast %580 : vector<1x32x32xf32> to vector<32x32xf32>
    %cst_391 = arith.constant dense<0.000000e+00> : vector<2x32xf32>
    %582 = tpu.matmul %489, %581, %cst_391 {dimension_numbers = #tpu.dot_dimension_numbers<[1], [0], [0], [1], [0, 0, 1, 1], [], []>} : vector<2x32xf32>, vector<32x32xf32>, vector<2x32xf32> -> vector<2x32xf32>
    %583 = arith.addf %561, %582 : vector<2x32xf32>
    %c2_392 = arith.constant 2 : index
    %c0_393 = arith.constant 0 : index
    %c0_394 = arith.constant 0 : index
    %584 = vector.load %arg7[%c2_392, %c0_393, %c0_394] : memref<4x32x32xf32, #tpu.memory_space<vmem>>, vector<1x32x32xf32>
    %585 = vector.shape_cast %584 : vector<1x32x32xf32> to vector<32x32xf32>
    %cst_395 = arith.constant dense<0.000000e+00> : vector<2x32xf32>
    %586 = tpu.matmul %489, %585, %cst_395 {dimension_numbers = #tpu.dot_dimension_numbers<[1], [0], [0], [1], [0, 0, 1, 1], [], []>} : vector<2x32xf32>, vector<32x32xf32>, vector<2x32xf32> -> vector<2x32xf32>
    %587 = arith.addf %568, %586 : vector<2x32xf32>
    %c3_396 = arith.constant 3 : index
    %c0_397 = arith.constant 0 : index
    %c0_398 = arith.constant 0 : index
    %588 = vector.load %arg7[%c3_396, %c0_397, %c0_398] : memref<4x32x32xf32, #tpu.memory_space<vmem>>, vector<1x32x32xf32>
    %589 = vector.shape_cast %588 : vector<1x32x32xf32> to vector<32x32xf32>
    %cst_399 = arith.constant dense<0.000000e+00> : vector<2x32xf32>
    %590 = tpu.matmul %489, %589, %cst_399 {dimension_numbers = #tpu.dot_dimension_numbers<[1], [0], [0], [1], [0, 0, 1, 1], [], []>} : vector<2x32xf32>, vector<32x32xf32>, vector<2x32xf32> -> vector<2x32xf32>
    %591 = arith.addf %575, %590 : vector<2x32xf32>
    %592 = arith.negf %579 : vector<2x32xf32>
    %593 = math.exp %592 : vector<2x32xf32>
    %cst_400 = arith.constant 1.000000e+00 : f32
    %594 = vector.broadcast %cst_400 : f32 to vector<2x32xf32>
    %595 = arith.addf %594, %593 : vector<2x32xf32>
    %596 = arith.divf %594, %595 : vector<2x32xf32>
    %597 = arith.negf %583 : vector<2x32xf32>
    %598 = math.exp %597 : vector<2x32xf32>
    %cst_401 = arith.constant 1.000000e+00 : f32
    %599 = vector.broadcast %cst_401 : f32 to vector<2x32xf32>
    %600 = arith.addf %599, %598 : vector<2x32xf32>
    %601 = arith.divf %599, %600 : vector<2x32xf32>
    %602 = math.tanh %587 : vector<2x32xf32>
    %603 = arith.negf %591 : vector<2x32xf32>
    %604 = math.exp %603 : vector<2x32xf32>
    %cst_402 = arith.constant 1.000000e+00 : f32
    %605 = vector.broadcast %cst_402 : f32 to vector<2x32xf32>
    %606 = arith.addf %605, %604 : vector<2x32xf32>
    %607 = arith.divf %605, %606 : vector<2x32xf32>
    %608 = arith.mulf %601, %487 : vector<2x32xf32>
    %609 = arith.mulf %596, %602 : vector<2x32xf32>
    %610 = arith.addf %608, %609 : vector<2x32xf32>
    %611 = math.tanh %610 : vector<2x32xf32>
    %612 = arith.mulf %607, %611 : vector<2x32xf32>
    %c0_403 = arith.constant 0 : index
    %c0_404 = arith.constant 0 : index
    %613 = vector.load %arg9[%c0_403, %c0_404] : memref<32x1xf32, #tpu.memory_space<vmem>>, vector<32x1xf32>
    %cst_405 = arith.constant dense<0.000000e+00> : vector<2x1xf32>
    %614 = tpu.matmul %612, %613, %cst_405 {dimension_numbers = #tpu.dot_dimension_numbers<[1], [0], [0], [1], [0, 0, 1, 1], [], []>} : vector<2x32xf32>, vector<32x1xf32>, vector<2x1xf32> -> vector<2x1xf32>
    %c0_406 = arith.constant 0 : index
    %c0_407 = arith.constant 0 : index
    %615 = vector.load %arg10[%c0_406, %c0_407] : memref<1x1xf32, #tpu.memory_space<vmem>>, vector<1x1xf32>
    %616 = vector.broadcast %615 : vector<1x1xf32> to vector<2x1xf32>
    %617 = arith.addf %614, %616 : vector<2x1xf32>
    %618 = arith.index_cast %c4_i32 : i32 to index
    %c0_408 = arith.constant 0 : index
    %c0_409 = arith.constant 0 : index
    %619 = vector.load %arg11[%618, %c0_408, %c0_409] : memref<8x2x1xf32, #tpu.memory_space<vmem>>, vector<1x2x1xf32>
    %620 = vector.shape_cast %619 : vector<1x2x1xf32> to vector<2x1xf32>
    %621 = vector.shape_cast %617 : vector<2x1xf32> to vector<1x2x1xf32>
    tpu.vector_store %arg11[%618, %c0_408, %c0_409], %621 {strides = array<i32>} : memref<8x2x1xf32, #tpu.memory_space<vmem>>, vector<1x2x1xf32>,
    %c5_i32 = arith.constant 5 : i32
    %622 = arith.index_cast %c5_i32 : i32 to index
    %c0_410 = arith.constant 0 : index
    %c0_411 = arith.constant 0 : index
    %623 = vector.load %arg1[%622, %c0_410, %c0_411] : memref<8x2x32xf32, #tpu.memory_space<vmem>>, vector<1x2x32xf32>
    %624 = vector.shape_cast %623 : vector<1x2x32xf32> to vector<2x32xf32>
    %625 = arith.index_cast %c5_i32 : i32 to index
    %c0_412 = arith.constant 0 : index
    %c0_413 = arith.constant 0 : index
    %626 = vector.load %arg2[%625, %c0_412, %c0_413] : memref<8x2x32xf32, #tpu.memory_space<vmem>>, vector<1x2x32xf32>
    %627 = vector.shape_cast %626 : vector<1x2x32xf32> to vector<2x32xf32>
    %628 = arith.index_cast %c5_i32 : i32 to index
    %c0_414 = arith.constant 0 : index
    %c0_415 = arith.constant 0 : index
    %629 = vector.load %arg3[%628, %c0_414, %c0_415] : memref<8x2x32xf32, #tpu.memory_space<vmem>>, vector<1x2x32xf32>
    %630 = vector.shape_cast %629 : vector<1x2x32xf32> to vector<2x32xf32>
    %631 = arith.index_cast %c5_i32 : i32 to index
    %c0_416 = arith.constant 0 : index
    %c0_417 = arith.constant 0 : index
    %632 = vector.load %arg4[%631, %c0_416, %c0_417] : memref<8x2x32xf32, #tpu.memory_space<vmem>>, vector<1x2x32xf32>
    %633 = vector.shape_cast %632 : vector<1x2x32xf32> to vector<2x32xf32>
    %c0_418 = arith.constant 0 : index
    %c0_419 = arith.constant 0 : index
    %c0_420 = arith.constant 0 : index
    %634 = vector.load %arg5[%c0_418, %c0_419, %c0_420] : memref<4x32x32xf32, #tpu.memory_space<vmem>>, vector<1x32x32xf32>
    %635 = vector.shape_cast %634 : vector<1x32x32xf32> to vector<32x32xf32>
    %cst_421 = arith.constant dense<0.000000e+00> : vector<2x32xf32>
    %636 = tpu.matmul %547, %635, %cst_421 {dimension_numbers = #tpu.dot_dimension_numbers<[1], [0], [0], [1], [0, 0, 1, 1], [], []>} : vector<2x32xf32>, vector<32x32xf32>, vector<2x32xf32> -> vector<2x32xf32>
    %637 = arith.addf %624, %636 : vector<2x32xf32>
    %c1_422 = arith.constant 1 : index
    %c0_423 = arith.constant 0 : index
    %c0_424 = arith.constant 0 : index
    %638 = vector.load %arg5[%c1_422, %c0_423, %c0_424] : memref<4x32x32xf32, #tpu.memory_space<vmem>>, vector<1x32x32xf32>
    %639 = vector.shape_cast %638 : vector<1x32x32xf32> to vector<32x32xf32>
    %cst_425 = arith.constant dense<0.000000e+00> : vector<2x32xf32>
    %640 = tpu.matmul %547, %639, %cst_425 {dimension_numbers = #tpu.dot_dimension_numbers<[1], [0], [0], [1], [0, 0, 1, 1], [], []>} : vector<2x32xf32>, vector<32x32xf32>, vector<2x32xf32> -> vector<2x32xf32>
    %641 = arith.addf %627, %640 : vector<2x32xf32>
    %c2_426 = arith.constant 2 : index
    %c0_427 = arith.constant 0 : index
    %c0_428 = arith.constant 0 : index
    %642 = vector.load %arg5[%c2_426, %c0_427, %c0_428] : memref<4x32x32xf32, #tpu.memory_space<vmem>>, vector<1x32x32xf32>
    %643 = vector.shape_cast %642 : vector<1x32x32xf32> to vector<32x32xf32>
    %cst_429 = arith.constant dense<0.000000e+00> : vector<2x32xf32>
    %644 = tpu.matmul %547, %643, %cst_429 {dimension_numbers = #tpu.dot_dimension_numbers<[1], [0], [0], [1], [0, 0, 1, 1], [], []>} : vector<2x32xf32>, vector<32x32xf32>, vector<2x32xf32> -> vector<2x32xf32>
    %645 = arith.addf %630, %644 : vector<2x32xf32>
    %c3_430 = arith.constant 3 : index
    %c0_431 = arith.constant 0 : index
    %c0_432 = arith.constant 0 : index
    %646 = vector.load %arg5[%c3_430, %c0_431, %c0_432] : memref<4x32x32xf32, #tpu.memory_space<vmem>>, vector<1x32x32xf32>
    %647 = vector.shape_cast %646 : vector<1x32x32xf32> to vector<32x32xf32>
    %cst_433 = arith.constant dense<0.000000e+00> : vector<2x32xf32>
    %648 = tpu.matmul %547, %647, %cst_433 {dimension_numbers = #tpu.dot_dimension_numbers<[1], [0], [0], [1], [0, 0, 1, 1], [], []>} : vector<2x32xf32>, vector<32x32xf32>, vector<2x32xf32> -> vector<2x32xf32>
    %649 = arith.addf %633, %648 : vector<2x32xf32>
    %650 = arith.negf %637 : vector<2x32xf32>
    %651 = math.exp %650 : vector<2x32xf32>
    %cst_434 = arith.constant 1.000000e+00 : f32
    %652 = vector.broadcast %cst_434 : f32 to vector<2x32xf32>
    %653 = arith.addf %652, %651 : vector<2x32xf32>
    %654 = arith.divf %652, %653 : vector<2x32xf32>
    %655 = arith.negf %641 : vector<2x32xf32>
    %656 = math.exp %655 : vector<2x32xf32>
    %cst_435 = arith.constant 1.000000e+00 : f32
    %657 = vector.broadcast %cst_435 : f32 to vector<2x32xf32>
    %658 = arith.addf %657, %656 : vector<2x32xf32>
    %659 = arith.divf %657, %658 : vector<2x32xf32>
    %660 = math.tanh %645 : vector<2x32xf32>
    %661 = arith.negf %649 : vector<2x32xf32>
    %662 = math.exp %661 : vector<2x32xf32>
    %cst_436 = arith.constant 1.000000e+00 : f32
    %663 = vector.broadcast %cst_436 : f32 to vector<2x32xf32>
    %664 = arith.addf %663, %662 : vector<2x32xf32>
    %665 = arith.divf %663, %664 : vector<2x32xf32>
    %666 = arith.mulf %659, %545 : vector<2x32xf32>
    %667 = arith.mulf %654, %660 : vector<2x32xf32>
    %668 = arith.addf %666, %667 : vector<2x32xf32>
    %669 = math.tanh %668 : vector<2x32xf32>
    %670 = arith.mulf %665, %669 : vector<2x32xf32>
    %c0_437 = arith.constant 0 : index
    %c0_438 = arith.constant 0 : index
    %c0_439 = arith.constant 0 : index
    %671 = vector.load %arg6[%c0_437, %c0_438, %c0_439] : memref<4x32x32xf32, #tpu.memory_space<vmem>>, vector<1x32x32xf32>
    %672 = vector.shape_cast %671 : vector<1x32x32xf32> to vector<32x32xf32>
    %cst_440 = arith.constant dense<0.000000e+00> : vector<2x32xf32>
    %673 = tpu.matmul %670, %672, %cst_440 {dimension_numbers = #tpu.dot_dimension_numbers<[1], [0], [0], [1], [0, 0, 1, 1], [], []>} : vector<2x32xf32>, vector<32x32xf32>, vector<2x32xf32> -> vector<2x32xf32>
    %c0_441 = arith.constant 0 : index
    %c0_442 = arith.constant 0 : index
    %c0_443 = arith.constant 0 : index
    %674 = vector.load %arg8[%c0_441, %c0_442, %c0_443] : memref<4x1x32xf32, #tpu.memory_space<vmem>>, vector<1x1x32xf32>
    %675 = vector.shape_cast %674 : vector<1x1x32xf32> to vector<1x32xf32>
    %676 = vector.broadcast %675 : vector<1x32xf32> to vector<2x32xf32>
    %677 = arith.addf %673, %676 : vector<2x32xf32>
    %c1_444 = arith.constant 1 : index
    %c0_445 = arith.constant 0 : index
    %c0_446 = arith.constant 0 : index
    %678 = vector.load %arg6[%c1_444, %c0_445, %c0_446] : memref<4x32x32xf32, #tpu.memory_space<vmem>>, vector<1x32x32xf32>
    %679 = vector.shape_cast %678 : vector<1x32x32xf32> to vector<32x32xf32>
    %cst_447 = arith.constant dense<0.000000e+00> : vector<2x32xf32>
    %680 = tpu.matmul %670, %679, %cst_447 {dimension_numbers = #tpu.dot_dimension_numbers<[1], [0], [0], [1], [0, 0, 1, 1], [], []>} : vector<2x32xf32>, vector<32x32xf32>, vector<2x32xf32> -> vector<2x32xf32>
    %c1_448 = arith.constant 1 : index
    %c0_449 = arith.constant 0 : index
    %c0_450 = arith.constant 0 : index
    %681 = vector.load %arg8[%c1_448, %c0_449, %c0_450] : memref<4x1x32xf32, #tpu.memory_space<vmem>>, vector<1x1x32xf32>
    %682 = vector.shape_cast %681 : vector<1x1x32xf32> to vector<1x32xf32>
    %683 = vector.broadcast %682 : vector<1x32xf32> to vector<2x32xf32>
    %684 = arith.addf %680, %683 : vector<2x32xf32>
    %c2_451 = arith.constant 2 : index
    %c0_452 = arith.constant 0 : index
    %c0_453 = arith.constant 0 : index
    %685 = vector.load %arg6[%c2_451, %c0_452, %c0_453] : memref<4x32x32xf32, #tpu.memory_space<vmem>>, vector<1x32x32xf32>
    %686 = vector.shape_cast %685 : vector<1x32x32xf32> to vector<32x32xf32>
    %cst_454 = arith.constant dense<0.000000e+00> : vector<2x32xf32>
    %687 = tpu.matmul %670, %686, %cst_454 {dimension_numbers = #tpu.dot_dimension_numbers<[1], [0], [0], [1], [0, 0, 1, 1], [], []>} : vector<2x32xf32>, vector<32x32xf32>, vector<2x32xf32> -> vector<2x32xf32>
    %c2_455 = arith.constant 2 : index
    %c0_456 = arith.constant 0 : index
    %c0_457 = arith.constant 0 : index
    %688 = vector.load %arg8[%c2_455, %c0_456, %c0_457] : memref<4x1x32xf32, #tpu.memory_space<vmem>>, vector<1x1x32xf32>
    %689 = vector.shape_cast %688 : vector<1x1x32xf32> to vector<1x32xf32>
    %690 = vector.broadcast %689 : vector<1x32xf32> to vector<2x32xf32>
    %691 = arith.addf %687, %690 : vector<2x32xf32>
    %c3_458 = arith.constant 3 : index
    %c0_459 = arith.constant 0 : index
    %c0_460 = arith.constant 0 : index
    %692 = vector.load %arg6[%c3_458, %c0_459, %c0_460] : memref<4x32x32xf32, #tpu.memory_space<vmem>>, vector<1x32x32xf32>
    %693 = vector.shape_cast %692 : vector<1x32x32xf32> to vector<32x32xf32>
    %cst_461 = arith.constant dense<0.000000e+00> : vector<2x32xf32>
    %694 = tpu.matmul %670, %693, %cst_461 {dimension_numbers = #tpu.dot_dimension_numbers<[1], [0], [0], [1], [0, 0, 1, 1], [], []>} : vector<2x32xf32>, vector<32x32xf32>, vector<2x32xf32> -> vector<2x32xf32>
    %c3_462 = arith.constant 3 : index
    %c0_463 = arith.constant 0 : index
    %c0_464 = arith.constant 0 : index
    %695 = vector.load %arg8[%c3_462, %c0_463, %c0_464] : memref<4x1x32xf32, #tpu.memory_space<vmem>>, vector<1x1x32xf32>
    %696 = vector.shape_cast %695 : vector<1x1x32xf32> to vector<1x32xf32>
    %697 = vector.broadcast %696 : vector<1x32xf32> to vector<2x32xf32>
    %698 = arith.addf %694, %697 : vector<2x32xf32>
    %c0_465 = arith.constant 0 : index
    %c0_466 = arith.constant 0 : index
    %c0_467 = arith.constant 0 : index
    %699 = vector.load %arg7[%c0_465, %c0_466, %c0_467] : memref<4x32x32xf32, #tpu.memory_space<vmem>>, vector<1x32x32xf32>
    %700 = vector.shape_cast %699 : vector<1x32x32xf32> to vector<32x32xf32>
    %cst_468 = arith.constant dense<0.000000e+00> : vector<2x32xf32>
    %701 = tpu.matmul %612, %700, %cst_468 {dimension_numbers = #tpu.dot_dimension_numbers<[1], [0], [0], [1], [0, 0, 1, 1], [], []>} : vector<2x32xf32>, vector<32x32xf32>, vector<2x32xf32> -> vector<2x32xf32>
    %702 = arith.addf %677, %701 : vector<2x32xf32>
    %c1_469 = arith.constant 1 : index
    %c0_470 = arith.constant 0 : index
    %c0_471 = arith.constant 0 : index
    %703 = vector.load %arg7[%c1_469, %c0_470, %c0_471] : memref<4x32x32xf32, #tpu.memory_space<vmem>>, vector<1x32x32xf32>
    %704 = vector.shape_cast %703 : vector<1x32x32xf32> to vector<32x32xf32>
    %cst_472 = arith.constant dense<0.000000e+00> : vector<2x32xf32>
    %705 = tpu.matmul %612, %704, %cst_472 {dimension_numbers = #tpu.dot_dimension_numbers<[1], [0], [0], [1], [0, 0, 1, 1], [], []>} : vector<2x32xf32>, vector<32x32xf32>, vector<2x32xf32> -> vector<2x32xf32>
    %706 = arith.addf %684, %705 : vector<2x32xf32>
    %c2_473 = arith.constant 2 : index
    %c0_474 = arith.constant 0 : index
    %c0_475 = arith.constant 0 : index
    %707 = vector.load %arg7[%c2_473, %c0_474, %c0_475] : memref<4x32x32xf32, #tpu.memory_space<vmem>>, vector<1x32x32xf32>
    %708 = vector.shape_cast %707 : vector<1x32x32xf32> to vector<32x32xf32>
    %cst_476 = arith.constant dense<0.000000e+00> : vector<2x32xf32>
    %709 = tpu.matmul %612, %708, %cst_476 {dimension_numbers = #tpu.dot_dimension_numbers<[1], [0], [0], [1], [0, 0, 1, 1], [], []>} : vector<2x32xf32>, vector<32x32xf32>, vector<2x32xf32> -> vector<2x32xf32>
    %710 = arith.addf %691, %709 : vector<2x32xf32>
    %c3_477 = arith.constant 3 : index
    %c0_478 = arith.constant 0 : index
    %c0_479 = arith.constant 0 : index
    %711 = vector.load %arg7[%c3_477, %c0_478, %c0_479] : memref<4x32x32xf32, #tpu.memory_space<vmem>>, vector<1x32x32xf32>
    %712 = vector.shape_cast %711 : vector<1x32x32xf32> to vector<32x32xf32>
    %cst_480 = arith.constant dense<0.000000e+00> : vector<2x32xf32>
    %713 = tpu.matmul %612, %712, %cst_480 {dimension_numbers = #tpu.dot_dimension_numbers<[1], [0], [0], [1], [0, 0, 1, 1], [], []>} : vector<2x32xf32>, vector<32x32xf32>, vector<2x32xf32> -> vector<2x32xf32>
    %714 = arith.addf %698, %713 : vector<2x32xf32>
    %715 = arith.negf %702 : vector<2x32xf32>
    %716 = math.exp %715 : vector<2x32xf32>
    %cst_481 = arith.constant 1.000000e+00 : f32
    %717 = vector.broadcast %cst_481 : f32 to vector<2x32xf32>
    %718 = arith.addf %717, %716 : vector<2x32xf32>
    %719 = arith.divf %717, %718 : vector<2x32xf32>
    %720 = arith.negf %706 : vector<2x32xf32>
    %721 = math.exp %720 : vector<2x32xf32>
    %cst_482 = arith.constant 1.000000e+00 : f32
    %722 = vector.broadcast %cst_482 : f32 to vector<2x32xf32>
    %723 = arith.addf %722, %721 : vector<2x32xf32>
    %724 = arith.divf %722, %723 : vector<2x32xf32>
    %725 = math.tanh %710 : vector<2x32xf32>
    %726 = arith.negf %714 : vector<2x32xf32>
    %727 = math.exp %726 : vector<2x32xf32>
    %cst_483 = arith.constant 1.000000e+00 : f32
    %728 = vector.broadcast %cst_483 : f32 to vector<2x32xf32>
    %729 = arith.addf %728, %727 : vector<2x32xf32>
    %730 = arith.divf %728, %729 : vector<2x32xf32>
    %731 = arith.mulf %724, %610 : vector<2x32xf32>
    %732 = arith.mulf %719, %725 : vector<2x32xf32>
    %733 = arith.addf %731, %732 : vector<2x32xf32>
    %734 = math.tanh %733 : vector<2x32xf32>
    %735 = arith.mulf %730, %734 : vector<2x32xf32>
    %c0_484 = arith.constant 0 : index
    %c0_485 = arith.constant 0 : index
    %736 = vector.load %arg9[%c0_484, %c0_485] : memref<32x1xf32, #tpu.memory_space<vmem>>, vector<32x1xf32>
    %cst_486 = arith.constant dense<0.000000e+00> : vector<2x1xf32>
    %737 = tpu.matmul %735, %736, %cst_486 {dimension_numbers = #tpu.dot_dimension_numbers<[1], [0], [0], [1], [0, 0, 1, 1], [], []>} : vector<2x32xf32>, vector<32x1xf32>, vector<2x1xf32> -> vector<2x1xf32>
    %c0_487 = arith.constant 0 : index
    %c0_488 = arith.constant 0 : index
    %738 = vector.load %arg10[%c0_487, %c0_488] : memref<1x1xf32, #tpu.memory_space<vmem>>, vector<1x1xf32>
    %739 = vector.broadcast %738 : vector<1x1xf32> to vector<2x1xf32>
    %740 = arith.addf %737, %739 : vector<2x1xf32>
    %741 = arith.index_cast %c5_i32 : i32 to index
    %c0_489 = arith.constant 0 : index
    %c0_490 = arith.constant 0 : index
    %742 = vector.load %arg11[%741, %c0_489, %c0_490] : memref<8x2x1xf32, #tpu.memory_space<vmem>>, vector<1x2x1xf32>
    %743 = vector.shape_cast %742 : vector<1x2x1xf32> to vector<2x1xf32>
    %744 = vector.shape_cast %740 : vector<2x1xf32> to vector<1x2x1xf32>
    tpu.vector_store %arg11[%741, %c0_489, %c0_490], %744 {strides = array<i32>} : memref<8x2x1xf32, #tpu.memory_space<vmem>>, vector<1x2x1xf32>,
    %c6_i32 = arith.constant 6 : i32
    %745 = arith.index_cast %c6_i32 : i32 to index
    %c0_491 = arith.constant 0 : index
    %c0_492 = arith.constant 0 : index
    %746 = vector.load %arg1[%745, %c0_491, %c0_492] : memref<8x2x32xf32, #tpu.memory_space<vmem>>, vector<1x2x32xf32>
    %747 = vector.shape_cast %746 : vector<1x2x32xf32> to vector<2x32xf32>
    %748 = arith.index_cast %c6_i32 : i32 to index
    %c0_493 = arith.constant 0 : index
    %c0_494 = arith.constant 0 : index
    %749 = vector.load %arg2[%748, %c0_493, %c0_494] : memref<8x2x32xf32, #tpu.memory_space<vmem>>, vector<1x2x32xf32>
    %750 = vector.shape_cast %749 : vector<1x2x32xf32> to vector<2x32xf32>
    %751 = arith.index_cast %c6_i32 : i32 to index
    %c0_495 = arith.constant 0 : index
    %c0_496 = arith.constant 0 : index
    %752 = vector.load %arg3[%751, %c0_495, %c0_496] : memref<8x2x32xf32, #tpu.memory_space<vmem>>, vector<1x2x32xf32>
    %753 = vector.shape_cast %752 : vector<1x2x32xf32> to vector<2x32xf32>
    %754 = arith.index_cast %c6_i32 : i32 to index
    %c0_497 = arith.constant 0 : index
    %c0_498 = arith.constant 0 : index
    %755 = vector.load %arg4[%754, %c0_497, %c0_498] : memref<8x2x32xf32, #tpu.memory_space<vmem>>, vector<1x2x32xf32>
    %756 = vector.shape_cast %755 : vector<1x2x32xf32> to vector<2x32xf32>
    %c0_499 = arith.constant 0 : index
    %c0_500 = arith.constant 0 : index
    %c0_501 = arith.constant 0 : index
    %757 = vector.load %arg5[%c0_499, %c0_500, %c0_501] : memref<4x32x32xf32, #tpu.memory_space<vmem>>, vector<1x32x32xf32>
    %758 = vector.shape_cast %757 : vector<1x32x32xf32> to vector<32x32xf32>
    %cst_502 = arith.constant dense<0.000000e+00> : vector<2x32xf32>
    %759 = tpu.matmul %670, %758, %cst_502 {dimension_numbers = #tpu.dot_dimension_numbers<[1], [0], [0], [1], [0, 0, 1, 1], [], []>} : vector<2x32xf32>, vector<32x32xf32>, vector<2x32xf32> -> vector<2x32xf32>
    %760 = arith.addf %747, %759 : vector<2x32xf32>
    %c1_503 = arith.constant 1 : index
    %c0_504 = arith.constant 0 : index
    %c0_505 = arith.constant 0 : index
    %761 = vector.load %arg5[%c1_503, %c0_504, %c0_505] : memref<4x32x32xf32, #tpu.memory_space<vmem>>, vector<1x32x32xf32>
    %762 = vector.shape_cast %761 : vector<1x32x32xf32> to vector<32x32xf32>
    %cst_506 = arith.constant dense<0.000000e+00> : vector<2x32xf32>
    %763 = tpu.matmul %670, %762, %cst_506 {dimension_numbers = #tpu.dot_dimension_numbers<[1], [0], [0], [1], [0, 0, 1, 1], [], []>} : vector<2x32xf32>, vector<32x32xf32>, vector<2x32xf32> -> vector<2x32xf32>
    %764 = arith.addf %750, %763 : vector<2x32xf32>
    %c2_507 = arith.constant 2 : index
    %c0_508 = arith.constant 0 : index
    %c0_509 = arith.constant 0 : index
    %765 = vector.load %arg5[%c2_507, %c0_508, %c0_509] : memref<4x32x32xf32, #tpu.memory_space<vmem>>, vector<1x32x32xf32>
    %766 = vector.shape_cast %765 : vector<1x32x32xf32> to vector<32x32xf32>
    %cst_510 = arith.constant dense<0.000000e+00> : vector<2x32xf32>
    %767 = tpu.matmul %670, %766, %cst_510 {dimension_numbers = #tpu.dot_dimension_numbers<[1], [0], [0], [1], [0, 0, 1, 1], [], []>} : vector<2x32xf32>, vector<32x32xf32>, vector<2x32xf32> -> vector<2x32xf32>
    %768 = arith.addf %753, %767 : vector<2x32xf32>
    %c3_511 = arith.constant 3 : index
    %c0_512 = arith.constant 0 : index
    %c0_513 = arith.constant 0 : index
    %769 = vector.load %arg5[%c3_511, %c0_512, %c0_513] : memref<4x32x32xf32, #tpu.memory_space<vmem>>, vector<1x32x32xf32>
    %770 = vector.shape_cast %769 : vector<1x32x32xf32> to vector<32x32xf32>
    %cst_514 = arith.constant dense<0.000000e+00> : vector<2x32xf32>
    %771 = tpu.matmul %670, %770, %cst_514 {dimension_numbers = #tpu.dot_dimension_numbers<[1], [0], [0], [1], [0, 0, 1, 1], [], []>} : vector<2x32xf32>, vector<32x32xf32>, vector<2x32xf32> -> vector<2x32xf32>
    %772 = arith.addf %756, %771 : vector<2x32xf32>
    %773 = arith.negf %760 : vector<2x32xf32>
    %774 = math.exp %773 : vector<2x32xf32>
    %cst_515 = arith.constant 1.000000e+00 : f32
    %775 = vector.broadcast %cst_515 : f32 to vector<2x32xf32>
    %776 = arith.addf %775, %774 : vector<2x32xf32>
    %777 = arith.divf %775, %776 : vector<2x32xf32>
    %778 = arith.negf %764 : vector<2x32xf32>
    %779 = math.exp %778 : vector<2x32xf32>
    %cst_516 = arith.constant 1.000000e+00 : f32
    %780 = vector.broadcast %cst_516 : f32 to vector<2x32xf32>
    %781 = arith.addf %780, %779 : vector<2x32xf32>
    %782 = arith.divf %780, %781 : vector<2x32xf32>
    %783 = math.tanh %768 : vector<2x32xf32>
    %784 = arith.negf %772 : vector<2x32xf32>
    %785 = math.exp %784 : vector<2x32xf32>
    %cst_517 = arith.constant 1.000000e+00 : f32
    %786 = vector.broadcast %cst_517 : f32 to vector<2x32xf32>
    %787 = arith.addf %786, %785 : vector<2x32xf32>
    %788 = arith.divf %786, %787 : vector<2x32xf32>
    %789 = arith.mulf %782, %668 : vector<2x32xf32>
    %790 = arith.mulf %777, %783 : vector<2x32xf32>
    %791 = arith.addf %789, %790 : vector<2x32xf32>
    %792 = math.tanh %791 : vector<2x32xf32>
    %793 = arith.mulf %788, %792 : vector<2x32xf32>
    %c0_518 = arith.constant 0 : index
    %c0_519 = arith.constant 0 : index
    %c0_520 = arith.constant 0 : index
    %794 = vector.load %arg6[%c0_518, %c0_519, %c0_520] : memref<4x32x32xf32, #tpu.memory_space<vmem>>, vector<1x32x32xf32>
    %795 = vector.shape_cast %794 : vector<1x32x32xf32> to vector<32x32xf32>
    %cst_521 = arith.constant dense<0.000000e+00> : vector<2x32xf32>
    %796 = tpu.matmul %793, %795, %cst_521 {dimension_numbers = #tpu.dot_dimension_numbers<[1], [0], [0], [1], [0, 0, 1, 1], [], []>} : vector<2x32xf32>, vector<32x32xf32>, vector<2x32xf32> -> vector<2x32xf32>
    %c0_522 = arith.constant 0 : index
    %c0_523 = arith.constant 0 : index
    %c0_524 = arith.constant 0 : index
    %797 = vector.load %arg8[%c0_522, %c0_523, %c0_524] : memref<4x1x32xf32, #tpu.memory_space<vmem>>, vector<1x1x32xf32>
    %798 = vector.shape_cast %797 : vector<1x1x32xf32> to vector<1x32xf32>
    %799 = vector.broadcast %798 : vector<1x32xf32> to vector<2x32xf32>
    %800 = arith.addf %796, %799 : vector<2x32xf32>
    %c1_525 = arith.constant 1 : index
    %c0_526 = arith.constant 0 : index
    %c0_527 = arith.constant 0 : index
    %801 = vector.load %arg6[%c1_525, %c0_526, %c0_527] : memref<4x32x32xf32, #tpu.memory_space<vmem>>, vector<1x32x32xf32>
    %802 = vector.shape_cast %801 : vector<1x32x32xf32> to vector<32x32xf32>
    %cst_528 = arith.constant dense<0.000000e+00> : vector<2x32xf32>
    %803 = tpu.matmul %793, %802, %cst_528 {dimension_numbers = #tpu.dot_dimension_numbers<[1], [0], [0], [1], [0, 0, 1, 1], [], []>} : vector<2x32xf32>, vector<32x32xf32>, vector<2x32xf32> -> vector<2x32xf32>
    %c1_529 = arith.constant 1 : index
    %c0_530 = arith.constant 0 : index
    %c0_531 = arith.constant 0 : index
    %804 = vector.load %arg8[%c1_529, %c0_530, %c0_531] : memref<4x1x32xf32, #tpu.memory_space<vmem>>, vector<1x1x32xf32>
    %805 = vector.shape_cast %804 : vector<1x1x32xf32> to vector<1x32xf32>
    %806 = vector.broadcast %805 : vector<1x32xf32> to vector<2x32xf32>
    %807 = arith.addf %803, %806 : vector<2x32xf32>
    %c2_532 = arith.constant 2 : index
    %c0_533 = arith.constant 0 : index
    %c0_534 = arith.constant 0 : index
    %808 = vector.load %arg6[%c2_532, %c0_533, %c0_534] : memref<4x32x32xf32, #tpu.memory_space<vmem>>, vector<1x32x32xf32>
    %809 = vector.shape_cast %808 : vector<1x32x32xf32> to vector<32x32xf32>
    %cst_535 = arith.constant dense<0.000000e+00> : vector<2x32xf32>
    %810 = tpu.matmul %793, %809, %cst_535 {dimension_numbers = #tpu.dot_dimension_numbers<[1], [0], [0], [1], [0, 0, 1, 1], [], []>} : vector<2x32xf32>, vector<32x32xf32>, vector<2x32xf32> -> vector<2x32xf32>
    %c2_536 = arith.constant 2 : index
    %c0_537 = arith.constant 0 : index
    %c0_538 = arith.constant 0 : index
    %811 = vector.load %arg8[%c2_536, %c0_537, %c0_538] : memref<4x1x32xf32, #tpu.memory_space<vmem>>, vector<1x1x32xf32>
    %812 = vector.shape_cast %811 : vector<1x1x32xf32> to vector<1x32xf32>
    %813 = vector.broadcast %812 : vector<1x32xf32> to vector<2x32xf32>
    %814 = arith.addf %810, %813 : vector<2x32xf32>
    %c3_539 = arith.constant 3 : index
    %c0_540 = arith.constant 0 : index
    %c0_541 = arith.constant 0 : index
    %815 = vector.load %arg6[%c3_539, %c0_540, %c0_541] : memref<4x32x32xf32, #tpu.memory_space<vmem>>, vector<1x32x32xf32>
    %816 = vector.shape_cast %815 : vector<1x32x32xf32> to vector<32x32xf32>
    %cst_542 = arith.constant dense<0.000000e+00> : vector<2x32xf32>
    %817 = tpu.matmul %793, %816, %cst_542 {dimension_numbers = #tpu.dot_dimension_numbers<[1], [0], [0], [1], [0, 0, 1, 1], [], []>} : vector<2x32xf32>, vector<32x32xf32>, vector<2x32xf32> -> vector<2x32xf32>
    %c3_543 = arith.constant 3 : index
    %c0_544 = arith.constant 0 : index
    %c0_545 = arith.constant 0 : index
    %818 = vector.load %arg8[%c3_543, %c0_544, %c0_545] : memref<4x1x32xf32, #tpu.memory_space<vmem>>, vector<1x1x32xf32>
    %819 = vector.shape_cast %818 : vector<1x1x32xf32> to vector<1x32xf32>
    %820 = vector.broadcast %819 : vector<1x32xf32> to vector<2x32xf32>
    %821 = arith.addf %817, %820 : vector<2x32xf32>
    %c0_546 = arith.constant 0 : index
    %c0_547 = arith.constant 0 : index
    %c0_548 = arith.constant 0 : index
    %822 = vector.load %arg7[%c0_546, %c0_547, %c0_548] : memref<4x32x32xf32, #tpu.memory_space<vmem>>, vector<1x32x32xf32>
    %823 = vector.shape_cast %822 : vector<1x32x32xf32> to vector<32x32xf32>
    %cst_549 = arith.constant dense<0.000000e+00> : vector<2x32xf32>
    %824 = tpu.matmul %735, %823, %cst_549 {dimension_numbers = #tpu.dot_dimension_numbers<[1], [0], [0], [1], [0, 0, 1, 1], [], []>} : vector<2x32xf32>, vector<32x32xf32>, vector<2x32xf32> -> vector<2x32xf32>
    %825 = arith.addf %800, %824 : vector<2x32xf32>
    %c1_550 = arith.constant 1 : index
    %c0_551 = arith.constant 0 : index
    %c0_552 = arith.constant 0 : index
    %826 = vector.load %arg7[%c1_550, %c0_551, %c0_552] : memref<4x32x32xf32, #tpu.memory_space<vmem>>, vector<1x32x32xf32>
    %827 = vector.shape_cast %826 : vector<1x32x32xf32> to vector<32x32xf32>
    %cst_553 = arith.constant dense<0.000000e+00> : vector<2x32xf32>
    %828 = tpu.matmul %735, %827, %cst_553 {dimension_numbers = #tpu.dot_dimension_numbers<[1], [0], [0], [1], [0, 0, 1, 1], [], []>} : vector<2x32xf32>, vector<32x32xf32>, vector<2x32xf32> -> vector<2x32xf32>
    %829 = arith.addf %807, %828 : vector<2x32xf32>
    %c2_554 = arith.constant 2 : index
    %c0_555 = arith.constant 0 : index
    %c0_556 = arith.constant 0 : index
    %830 = vector.load %arg7[%c2_554, %c0_555, %c0_556] : memref<4x32x32xf32, #tpu.memory_space<vmem>>, vector<1x32x32xf32>
    %831 = vector.shape_cast %830 : vector<1x32x32xf32> to vector<32x32xf32>
    %cst_557 = arith.constant dense<0.000000e+00> : vector<2x32xf32>
    %832 = tpu.matmul %735, %831, %cst_557 {dimension_numbers = #tpu.dot_dimension_numbers<[1], [0], [0], [1], [0, 0, 1, 1], [], []>} : vector<2x32xf32>, vector<32x32xf32>, vector<2x32xf32> -> vector<2x32xf32>
    %833 = arith.addf %814, %832 : vector<2x32xf32>
    %c3_558 = arith.constant 3 : index
    %c0_559 = arith.constant 0 : index
    %c0_560 = arith.constant 0 : index
    %834 = vector.load %arg7[%c3_558, %c0_559, %c0_560] : memref<4x32x32xf32, #tpu.memory_space<vmem>>, vector<1x32x32xf32>
    %835 = vector.shape_cast %834 : vector<1x32x32xf32> to vector<32x32xf32>
    %cst_561 = arith.constant dense<0.000000e+00> : vector<2x32xf32>
    %836 = tpu.matmul %735, %835, %cst_561 {dimension_numbers = #tpu.dot_dimension_numbers<[1], [0], [0], [1], [0, 0, 1, 1], [], []>} : vector<2x32xf32>, vector<32x32xf32>, vector<2x32xf32> -> vector<2x32xf32>
    %837 = arith.addf %821, %836 : vector<2x32xf32>
    %838 = arith.negf %825 : vector<2x32xf32>
    %839 = math.exp %838 : vector<2x32xf32>
    %cst_562 = arith.constant 1.000000e+00 : f32
    %840 = vector.broadcast %cst_562 : f32 to vector<2x32xf32>
    %841 = arith.addf %840, %839 : vector<2x32xf32>
    %842 = arith.divf %840, %841 : vector<2x32xf32>
    %843 = arith.negf %829 : vector<2x32xf32>
    %844 = math.exp %843 : vector<2x32xf32>
    %cst_563 = arith.constant 1.000000e+00 : f32
    %845 = vector.broadcast %cst_563 : f32 to vector<2x32xf32>
    %846 = arith.addf %845, %844 : vector<2x32xf32>
    %847 = arith.divf %845, %846 : vector<2x32xf32>
    %848 = math.tanh %833 : vector<2x32xf32>
    %849 = arith.negf %837 : vector<2x32xf32>
    %850 = math.exp %849 : vector<2x32xf32>
    %cst_564 = arith.constant 1.000000e+00 : f32
    %851 = vector.broadcast %cst_564 : f32 to vector<2x32xf32>
    %852 = arith.addf %851, %850 : vector<2x32xf32>
    %853 = arith.divf %851, %852 : vector<2x32xf32>
    %854 = arith.mulf %847, %733 : vector<2x32xf32>
    %855 = arith.mulf %842, %848 : vector<2x32xf32>
    %856 = arith.addf %854, %855 : vector<2x32xf32>
    %857 = math.tanh %856 : vector<2x32xf32>
    %858 = arith.mulf %853, %857 : vector<2x32xf32>
    %c0_565 = arith.constant 0 : index
    %c0_566 = arith.constant 0 : index
    %859 = vector.load %arg9[%c0_565, %c0_566] : memref<32x1xf32, #tpu.memory_space<vmem>>, vector<32x1xf32>
    %cst_567 = arith.constant dense<0.000000e+00> : vector<2x1xf32>
    %860 = tpu.matmul %858, %859, %cst_567 {dimension_numbers = #tpu.dot_dimension_numbers<[1], [0], [0], [1], [0, 0, 1, 1], [], []>} : vector<2x32xf32>, vector<32x1xf32>, vector<2x1xf32> -> vector<2x1xf32>
    %c0_568 = arith.constant 0 : index
    %c0_569 = arith.constant 0 : index
    %861 = vector.load %arg10[%c0_568, %c0_569] : memref<1x1xf32, #tpu.memory_space<vmem>>, vector<1x1xf32>
    %862 = vector.broadcast %861 : vector<1x1xf32> to vector<2x1xf32>
    %863 = arith.addf %860, %862 : vector<2x1xf32>
    %864 = arith.index_cast %c6_i32 : i32 to index
    %c0_570 = arith.constant 0 : index
    %c0_571 = arith.constant 0 : index
    %865 = vector.load %arg11[%864, %c0_570, %c0_571] : memref<8x2x1xf32, #tpu.memory_space<vmem>>, vector<1x2x1xf32>
    %866 = vector.shape_cast %865 : vector<1x2x1xf32> to vector<2x1xf32>
    %867 = vector.shape_cast %863 : vector<2x1xf32> to vector<1x2x1xf32>
    tpu.vector_store %arg11[%864, %c0_570, %c0_571], %867 {strides = array<i32>} : memref<8x2x1xf32, #tpu.memory_space<vmem>>, vector<1x2x1xf32>,
    %c7_i32 = arith.constant 7 : i32
    %868 = arith.index_cast %c7_i32 : i32 to index
    %c0_572 = arith.constant 0 : index
    %c0_573 = arith.constant 0 : index
    %869 = vector.load %arg1[%868, %c0_572, %c0_573] : memref<8x2x32xf32, #tpu.memory_space<vmem>>, vector<1x2x32xf32>
    %870 = vector.shape_cast %869 : vector<1x2x32xf32> to vector<2x32xf32>
    %871 = arith.index_cast %c7_i32 : i32 to index
    %c0_574 = arith.constant 0 : index
    %c0_575 = arith.constant 0 : index
    %872 = vector.load %arg2[%871, %c0_574, %c0_575] : memref<8x2x32xf32, #tpu.memory_space<vmem>>, vector<1x2x32xf32>
    %873 = vector.shape_cast %872 : vector<1x2x32xf32> to vector<2x32xf32>
    %874 = arith.index_cast %c7_i32 : i32 to index
    %c0_576 = arith.constant 0 : index
    %c0_577 = arith.constant 0 : index
    %875 = vector.load %arg3[%874, %c0_576, %c0_577] : memref<8x2x32xf32, #tpu.memory_space<vmem>>, vector<1x2x32xf32>
    %876 = vector.shape_cast %875 : vector<1x2x32xf32> to vector<2x32xf32>
    %877 = arith.index_cast %c7_i32 : i32 to index
    %c0_578 = arith.constant 0 : index
    %c0_579 = arith.constant 0 : index
    %878 = vector.load %arg4[%877, %c0_578, %c0_579] : memref<8x2x32xf32, #tpu.memory_space<vmem>>, vector<1x2x32xf32>
    %879 = vector.shape_cast %878 : vector<1x2x32xf32> to vector<2x32xf32>
    %c0_580 = arith.constant 0 : index
    %c0_581 = arith.constant 0 : index
    %c0_582 = arith.constant 0 : index
    %880 = vector.load %arg5[%c0_580, %c0_581, %c0_582] : memref<4x32x32xf32, #tpu.memory_space<vmem>>, vector<1x32x32xf32>
    %881 = vector.shape_cast %880 : vector<1x32x32xf32> to vector<32x32xf32>
    %cst_583 = arith.constant dense<0.000000e+00> : vector<2x32xf32>
    %882 = tpu.matmul %793, %881, %cst_583 {dimension_numbers = #tpu.dot_dimension_numbers<[1], [0], [0], [1], [0, 0, 1, 1], [], []>} : vector<2x32xf32>, vector<32x32xf32>, vector<2x32xf32> -> vector<2x32xf32>
    %883 = arith.addf %870, %882 : vector<2x32xf32>
    %c1_584 = arith.constant 1 : index
    %c0_585 = arith.constant 0 : index
    %c0_586 = arith.constant 0 : index
    %884 = vector.load %arg5[%c1_584, %c0_585, %c0_586] : memref<4x32x32xf32, #tpu.memory_space<vmem>>, vector<1x32x32xf32>
    %885 = vector.shape_cast %884 : vector<1x32x32xf32> to vector<32x32xf32>
    %cst_587 = arith.constant dense<0.000000e+00> : vector<2x32xf32>
    %886 = tpu.matmul %793, %885, %cst_587 {dimension_numbers = #tpu.dot_dimension_numbers<[1], [0], [0], [1], [0, 0, 1, 1], [], []>} : vector<2x32xf32>, vector<32x32xf32>, vector<2x32xf32> -> vector<2x32xf32>
    %887 = arith.addf %873, %886 : vector<2x32xf32>
    %c2_588 = arith.constant 2 : index
    %c0_589 = arith.constant 0 : index
    %c0_590 = arith.constant 0 : index
    %888 = vector.load %arg5[%c2_588, %c0_589, %c0_590] : memref<4x32x32xf32, #tpu.memory_space<vmem>>, vector<1x32x32xf32>
    %889 = vector.shape_cast %888 : vector<1x32x32xf32> to vector<32x32xf32>
    %cst_591 = arith.constant dense<0.000000e+00> : vector<2x32xf32>
    %890 = tpu.matmul %793, %889, %cst_591 {dimension_numbers = #tpu.dot_dimension_numbers<[1], [0], [0], [1], [0, 0, 1, 1], [], []>} : vector<2x32xf32>, vector<32x32xf32>, vector<2x32xf32> -> vector<2x32xf32>
    %891 = arith.addf %876, %890 : vector<2x32xf32>
    %c3_592 = arith.constant 3 : index
    %c0_593 = arith.constant 0 : index
    %c0_594 = arith.constant 0 : index
    %892 = vector.load %arg5[%c3_592, %c0_593, %c0_594] : memref<4x32x32xf32, #tpu.memory_space<vmem>>, vector<1x32x32xf32>
    %893 = vector.shape_cast %892 : vector<1x32x32xf32> to vector<32x32xf32>
    %cst_595 = arith.constant dense<0.000000e+00> : vector<2x32xf32>
    %894 = tpu.matmul %793, %893, %cst_595 {dimension_numbers = #tpu.dot_dimension_numbers<[1], [0], [0], [1], [0, 0, 1, 1], [], []>} : vector<2x32xf32>, vector<32x32xf32>, vector<2x32xf32> -> vector<2x32xf32>
    %895 = arith.addf %879, %894 : vector<2x32xf32>
    %896 = arith.negf %883 : vector<2x32xf32>
    %897 = math.exp %896 : vector<2x32xf32>
    %cst_596 = arith.constant 1.000000e+00 : f32
    %898 = vector.broadcast %cst_596 : f32 to vector<2x32xf32>
    %899 = arith.addf %898, %897 : vector<2x32xf32>
    %900 = arith.divf %898, %899 : vector<2x32xf32>
    %901 = arith.negf %887 : vector<2x32xf32>
    %902 = math.exp %901 : vector<2x32xf32>
    %cst_597 = arith.constant 1.000000e+00 : f32
    %903 = vector.broadcast %cst_597 : f32 to vector<2x32xf32>
    %904 = arith.addf %903, %902 : vector<2x32xf32>
    %905 = arith.divf %903, %904 : vector<2x32xf32>
    %906 = math.tanh %891 : vector<2x32xf32>
    %907 = arith.negf %895 : vector<2x32xf32>
    %908 = math.exp %907 : vector<2x32xf32>
    %cst_598 = arith.constant 1.000000e+00 : f32
    %909 = vector.broadcast %cst_598 : f32 to vector<2x32xf32>
    %910 = arith.addf %909, %908 : vector<2x32xf32>
    %911 = arith.divf %909, %910 : vector<2x32xf32>
    %912 = arith.mulf %905, %791 : vector<2x32xf32>
    %913 = arith.mulf %900, %906 : vector<2x32xf32>
    %914 = arith.addf %912, %913 : vector<2x32xf32>
    %915 = math.tanh %914 : vector<2x32xf32>
    %916 = arith.mulf %911, %915 : vector<2x32xf32>
    %c0_599 = arith.constant 0 : index
    %c0_600 = arith.constant 0 : index
    %c0_601 = arith.constant 0 : index
    %917 = vector.load %arg6[%c0_599, %c0_600, %c0_601] : memref<4x32x32xf32, #tpu.memory_space<vmem>>, vector<1x32x32xf32>
    %918 = vector.shape_cast %917 : vector<1x32x32xf32> to vector<32x32xf32>
    %cst_602 = arith.constant dense<0.000000e+00> : vector<2x32xf32>
    %919 = tpu.matmul %916, %918, %cst_602 {dimension_numbers = #tpu.dot_dimension_numbers<[1], [0], [0], [1], [0, 0, 1, 1], [], []>} : vector<2x32xf32>, vector<32x32xf32>, vector<2x32xf32> -> vector<2x32xf32>
    %c0_603 = arith.constant 0 : index
    %c0_604 = arith.constant 0 : index
    %c0_605 = arith.constant 0 : index
    %920 = vector.load %arg8[%c0_603, %c0_604, %c0_605] : memref<4x1x32xf32, #tpu.memory_space<vmem>>, vector<1x1x32xf32>
    %921 = vector.shape_cast %920 : vector<1x1x32xf32> to vector<1x32xf32>
    %922 = vector.broadcast %921 : vector<1x32xf32> to vector<2x32xf32>
    %923 = arith.addf %919, %922 : vector<2x32xf32>
    %c1_606 = arith.constant 1 : index
    %c0_607 = arith.constant 0 : index
    %c0_608 = arith.constant 0 : index
    %924 = vector.load %arg6[%c1_606, %c0_607, %c0_608] : memref<4x32x32xf32, #tpu.memory_space<vmem>>, vector<1x32x32xf32>
    %925 = vector.shape_cast %924 : vector<1x32x32xf32> to vector<32x32xf32>
    %cst_609 = arith.constant dense<0.000000e+00> : vector<2x32xf32>
    %926 = tpu.matmul %916, %925, %cst_609 {dimension_numbers = #tpu.dot_dimension_numbers<[1], [0], [0], [1], [0, 0, 1, 1], [], []>} : vector<2x32xf32>, vector<32x32xf32>, vector<2x32xf32> -> vector<2x32xf32>
    %c1_610 = arith.constant 1 : index
    %c0_611 = arith.constant 0 : index
    %c0_612 = arith.constant 0 : index
    %927 = vector.load %arg8[%c1_610, %c0_611, %c0_612] : memref<4x1x32xf32, #tpu.memory_space<vmem>>, vector<1x1x32xf32>
    %928 = vector.shape_cast %927 : vector<1x1x32xf32> to vector<1x32xf32>
    %929 = vector.broadcast %928 : vector<1x32xf32> to vector<2x32xf32>
    %930 = arith.addf %926, %929 : vector<2x32xf32>
    %c2_613 = arith.constant 2 : index
    %c0_614 = arith.constant 0 : index
    %c0_615 = arith.constant 0 : index
    %931 = vector.load %arg6[%c2_613, %c0_614, %c0_615] : memref<4x32x32xf32, #tpu.memory_space<vmem>>, vector<1x32x32xf32>
    %932 = vector.shape_cast %931 : vector<1x32x32xf32> to vector<32x32xf32>
    %cst_616 = arith.constant dense<0.000000e+00> : vector<2x32xf32>
    %933 = tpu.matmul %916, %932, %cst_616 {dimension_numbers = #tpu.dot_dimension_numbers<[1], [0], [0], [1], [0, 0, 1, 1], [], []>} : vector<2x32xf32>, vector<32x32xf32>, vector<2x32xf32> -> vector<2x32xf32>
    %c2_617 = arith.constant 2 : index
    %c0_618 = arith.constant 0 : index
    %c0_619 = arith.constant 0 : index
    %934 = vector.load %arg8[%c2_617, %c0_618, %c0_619] : memref<4x1x32xf32, #tpu.memory_space<vmem>>, vector<1x1x32xf32>
    %935 = vector.shape_cast %934 : vector<1x1x32xf32> to vector<1x32xf32>
    %936 = vector.broadcast %935 : vector<1x32xf32> to vector<2x32xf32>
    %937 = arith.addf %933, %936 : vector<2x32xf32>
    %c3_620 = arith.constant 3 : index
    %c0_621 = arith.constant 0 : index
    %c0_622 = arith.constant 0 : index
    %938 = vector.load %arg6[%c3_620, %c0_621, %c0_622] : memref<4x32x32xf32, #tpu.memory_space<vmem>>, vector<1x32x32xf32>
    %939 = vector.shape_cast %938 : vector<1x32x32xf32> to vector<32x32xf32>
    %cst_623 = arith.constant dense<0.000000e+00> : vector<2x32xf32>
    %940 = tpu.matmul %916, %939, %cst_623 {dimension_numbers = #tpu.dot_dimension_numbers<[1], [0], [0], [1], [0, 0, 1, 1], [], []>} : vector<2x32xf32>, vector<32x32xf32>, vector<2x32xf32> -> vector<2x32xf32>
    %c3_624 = arith.constant 3 : index
    %c0_625 = arith.constant 0 : index
    %c0_626 = arith.constant 0 : index
    %941 = vector.load %arg8[%c3_624, %c0_625, %c0_626] : memref<4x1x32xf32, #tpu.memory_space<vmem>>, vector<1x1x32xf32>
    %942 = vector.shape_cast %941 : vector<1x1x32xf32> to vector<1x32xf32>
    %943 = vector.broadcast %942 : vector<1x32xf32> to vector<2x32xf32>
    %944 = arith.addf %940, %943 : vector<2x32xf32>
    %c0_627 = arith.constant 0 : index
    %c0_628 = arith.constant 0 : index
    %c0_629 = arith.constant 0 : index
    %945 = vector.load %arg7[%c0_627, %c0_628, %c0_629] : memref<4x32x32xf32, #tpu.memory_space<vmem>>, vector<1x32x32xf32>
    %946 = vector.shape_cast %945 : vector<1x32x32xf32> to vector<32x32xf32>
    %cst_630 = arith.constant dense<0.000000e+00> : vector<2x32xf32>
    %947 = tpu.matmul %858, %946, %cst_630 {dimension_numbers = #tpu.dot_dimension_numbers<[1], [0], [0], [1], [0, 0, 1, 1], [], []>} : vector<2x32xf32>, vector<32x32xf32>, vector<2x32xf32> -> vector<2x32xf32>
    %948 = arith.addf %923, %947 : vector<2x32xf32>
    %c1_631 = arith.constant 1 : index
    %c0_632 = arith.constant 0 : index
    %c0_633 = arith.constant 0 : index
    %949 = vector.load %arg7[%c1_631, %c0_632, %c0_633] : memref<4x32x32xf32, #tpu.memory_space<vmem>>, vector<1x32x32xf32>
    %950 = vector.shape_cast %949 : vector<1x32x32xf32> to vector<32x32xf32>
    %cst_634 = arith.constant dense<0.000000e+00> : vector<2x32xf32>
    %951 = tpu.matmul %858, %950, %cst_634 {dimension_numbers = #tpu.dot_dimension_numbers<[1], [0], [0], [1], [0, 0, 1, 1], [], []>} : vector<2x32xf32>, vector<32x32xf32>, vector<2x32xf32> -> vector<2x32xf32>
    %952 = arith.addf %930, %951 : vector<2x32xf32>
    %c2_635 = arith.constant 2 : index
    %c0_636 = arith.constant 0 : index
    %c0_637 = arith.constant 0 : index
    %953 = vector.load %arg7[%c2_635, %c0_636, %c0_637] : memref<4x32x32xf32, #tpu.memory_space<vmem>>, vector<1x32x32xf32>
    %954 = vector.shape_cast %953 : vector<1x32x32xf32> to vector<32x32xf32>
    %cst_638 = arith.constant dense<0.000000e+00> : vector<2x32xf32>
    %955 = tpu.matmul %858, %954, %cst_638 {dimension_numbers = #tpu.dot_dimension_numbers<[1], [0], [0], [1], [0, 0, 1, 1], [], []>} : vector<2x32xf32>, vector<32x32xf32>, vector<2x32xf32> -> vector<2x32xf32>
    %956 = arith.addf %937, %955 : vector<2x32xf32>
    %c3_639 = arith.constant 3 : index
    %c0_640 = arith.constant 0 : index
    %c0_641 = arith.constant 0 : index
    %957 = vector.load %arg7[%c3_639, %c0_640, %c0_641] : memref<4x32x32xf32, #tpu.memory_space<vmem>>, vector<1x32x32xf32>
    %958 = vector.shape_cast %957 : vector<1x32x32xf32> to vector<32x32xf32>
    %cst_642 = arith.constant dense<0.000000e+00> : vector<2x32xf32>
    %959 = tpu.matmul %858, %958, %cst_642 {dimension_numbers = #tpu.dot_dimension_numbers<[1], [0], [0], [1], [0, 0, 1, 1], [], []>} : vector<2x32xf32>, vector<32x32xf32>, vector<2x32xf32> -> vector<2x32xf32>
    %960 = arith.addf %944, %959 : vector<2x32xf32>
    %961 = arith.negf %948 : vector<2x32xf32>
    %962 = math.exp %961 : vector<2x32xf32>
    %cst_643 = arith.constant 1.000000e+00 : f32
    %963 = vector.broadcast %cst_643 : f32 to vector<2x32xf32>
    %964 = arith.addf %963, %962 : vector<2x32xf32>
    %965 = arith.divf %963, %964 : vector<2x32xf32>
    %966 = arith.negf %952 : vector<2x32xf32>
    %967 = math.exp %966 : vector<2x32xf32>
    %cst_644 = arith.constant 1.000000e+00 : f32
    %968 = vector.broadcast %cst_644 : f32 to vector<2x32xf32>
    %969 = arith.addf %968, %967 : vector<2x32xf32>
    %970 = arith.divf %968, %969 : vector<2x32xf32>
    %971 = math.tanh %956 : vector<2x32xf32>
    %972 = arith.negf %960 : vector<2x32xf32>
    %973 = math.exp %972 : vector<2x32xf32>
    %cst_645 = arith.constant 1.000000e+00 : f32
    %974 = vector.broadcast %cst_645 : f32 to vector<2x32xf32>
    %975 = arith.addf %974, %973 : vector<2x32xf32>
    %976 = arith.divf %974, %975 : vector<2x32xf32>
    %977 = arith.mulf %970, %856 : vector<2x32xf32>
    %978 = arith.mulf %965, %971 : vector<2x32xf32>
    %979 = arith.addf %977, %978 : vector<2x32xf32>
    %980 = math.tanh %979 : vector<2x32xf32>
    %981 = arith.mulf %976, %980 : vector<2x32xf32>
    %c0_646 = arith.constant 0 : index
    %c0_647 = arith.constant 0 : index
    %982 = vector.load %arg9[%c0_646, %c0_647] : memref<32x1xf32, #tpu.memory_space<vmem>>, vector<32x1xf32>
    %cst_648 = arith.constant dense<0.000000e+00> : vector<2x1xf32>
    %983 = tpu.matmul %981, %982, %cst_648 {dimension_numbers = #tpu.dot_dimension_numbers<[1], [0], [0], [1], [0, 0, 1, 1], [], []>} : vector<2x32xf32>, vector<32x1xf32>, vector<2x1xf32> -> vector<2x1xf32>
    %c0_649 = arith.constant 0 : index
    %c0_650 = arith.constant 0 : index
    %984 = vector.load %arg10[%c0_649, %c0_650] : memref<1x1xf32, #tpu.memory_space<vmem>>, vector<1x1xf32>
    %985 = vector.broadcast %984 : vector<1x1xf32> to vector<2x1xf32>
    %986 = arith.addf %983, %985 : vector<2x1xf32>
    %987 = arith.index_cast %c7_i32 : i32 to index
    %c0_651 = arith.constant 0 : index
    %c0_652 = arith.constant 0 : index
    %988 = vector.load %arg11[%987, %c0_651, %c0_652] : memref<8x2x1xf32, #tpu.memory_space<vmem>>, vector<1x2x1xf32>
    %989 = vector.shape_cast %988 : vector<1x2x1xf32> to vector<2x1xf32>
    %990 = vector.shape_cast %986 : vector<2x1xf32> to vector<1x2x1xf32>
    tpu.vector_store %arg11[%987, %c0_651, %c0_652], %990 {strides = array<i32>} : memref<8x2x1xf32, #tpu.memory_space<vmem>>, vector<1x2x1xf32>,
    %c8_i32 = arith.constant 8 : i32
    %c0_653 = arith.constant 0 : index
    %c0_654 = arith.constant 0 : index
    %991 = vector.load %arg12[%c0_653, %c0_654] : memref<2x32xf32, #tpu.memory_space<vmem>>, vector<2x32xf32>
    tpu.vector_store %arg12[%c0_653, %c0_654], %916 {strides = array<i32>} : memref<2x32xf32, #tpu.memory_space<vmem>>, vector<2x32xf32>,
    %c0_655 = arith.constant 0 : index
    %c0_656 = arith.constant 0 : index
    %992 = vector.load %arg13[%c0_655, %c0_656] : memref<2x32xf32, #tpu.memory_space<vmem>>, vector<2x32xf32>
    tpu.vector_store %arg13[%c0_655, %c0_656], %914 {strides = array<i32>} : memref<2x32xf32, #tpu.memory_space<vmem>>, vector<2x32xf32>,
    %c0_657 = arith.constant 0 : index
    %c0_658 = arith.constant 0 : index
    %993 = vector.load %arg14[%c0_657, %c0_658] : memref<2x32xf32, #tpu.memory_space<vmem>>, vector<2x32xf32>
    tpu.vector_store %arg14[%c0_657, %c0_658], %981 {strides = array<i32>} : memref<2x32xf32, #tpu.memory_space<vmem>>, vector<2x32xf32>,
    %c0_659 = arith.constant 0 : index
    %c0_660 = arith.constant 0 : index
    %994 = vector.load %arg15[%c0_659, %c0_660] : memref<2x32xf32, #tpu.memory_space<vmem>>, vector<2x32xf32>
    tpu.vector_store %arg15[%c0_659, %c0_660], %979 {strides = array<i32>} : memref<2x32xf32, #tpu.memory_space<vmem>>, vector<2x32xf32>,
    return
  }
  func.func @transform_0(%arg0: i32) -> (i32, i32, i32) {
    %c0_i32 = arith.constant 0 : i32
    %c0_i32_0 = arith.constant 0 : i32
    %c0_i32_1 = arith.constant 0 : i32
    return %arg0, %c0_i32, %c0_i32_0 : i32, i32, i32
  }
  func.func @transform_1(%arg0: i32) -> (i32, i32, i32) {
    %c0_i32 = arith.constant 0 : i32
    %c0_i32_0 = arith.constant 0 : i32
    %c0_i32_1 = arith.constant 0 : i32
    return %arg0, %c0_i32, %c0_i32_0 : i32, i32, i32
  }
  func.func @transform_2(%arg0: i32) -> (i32, i32, i32) {
    %c0_i32 = arith.constant 0 : i32
    %c0_i32_0 = arith.constant 0 : i32
    %c0_i32_1 = arith.constant 0 : i32
    return %arg0, %c0_i32, %c0_i32_0 : i32, i32, i32
  }
  func.func @transform_3(%arg0: i32) -> (i32, i32, i32) {
    %c0_i32 = arith.constant 0 : i32
    %c0_i32_0 = arith.constant 0 : i32
    %c0_i32_1 = arith.constant 0 : i32
    return %arg0, %c0_i32, %c0_i32_0 : i32, i32, i32
  }
  func.func @transform_4(%arg0: i32) -> (i32, i32, i32) {
    %c0_i32 = arith.constant 0 : i32
    %c0_i32_0 = arith.constant 0 : i32
    %c0_i32_1 = arith.constant 0 : i32
    %c0_i32_2 = arith.constant 0 : i32
    return %c0_i32, %c0_i32_0, %c0_i32_1 : i32, i32, i32
  }
  func.func @transform_5(%arg0: i32) -> (i32, i32, i32) {
    %c0_i32 = arith.constant 0 : i32
    %c0_i32_0 = arith.constant 0 : i32
    %c0_i32_1 = arith.constant 0 : i32
    %c0_i32_2 = arith.constant 0 : i32
    return %c0_i32, %c0_i32_0, %c0_i32_1 : i32, i32, i32
  }
  func.func @transform_6(%arg0: i32) -> (i32, i32, i32) {
    %c0_i32 = arith.constant 0 : i32
    %c0_i32_0 = arith.constant 0 : i32
    %c0_i32_1 = arith.constant 0 : i32
    %c0_i32_2 = arith.constant 0 : i32
    return %c0_i32, %c0_i32_0, %c0_i32_1 : i32, i32, i32
  }
  func.func @transform_7(%arg0: i32) -> (i32, i32, i32) {
    %c0_i32 = arith.constant 0 : i32
    %c0_i32_0 = arith.constant 0 : i32
    %c0_i32_1 = arith.constant 0 : i32
    %c0_i32_2 = arith.constant 0 : i32
    return %c0_i32, %c0_i32_0, %c0_i32_1 : i32, i32, i32
  }
  func.func @transform_8(%arg0: i32) -> (i32, i32) {
    %c0_i32 = arith.constant 0 : i32
    %c0_i32_0 = arith.constant 0 : i32
    %c0_i32_1 = arith.constant 0 : i32
    return %c0_i32, %c0_i32_0 : i32, i32
  }
  func.func @transform_9(%arg0: i32) -> (i32, i32) {
    %c0_i32 = arith.constant 0 : i32
    %c0_i32_0 = arith.constant 0 : i32
    %c0_i32_1 = arith.constant 0 : i32
    return %c0_i32, %c0_i32_0 : i32, i32
  }
  func.func @transform_10(%arg0: i32) -> (i32, i32, i32) {
    %c0_i32 = arith.constant 0 : i32
    %c0_i32_0 = arith.constant 0 : i32
    %c0_i32_1 = arith.constant 0 : i32
    return %arg0, %c0_i32, %c0_i32_0 : i32, i32, i32
  }
}

</mosaic_0001>

<bundles_post_ra>
// kernel: lstm_reg_forward.2
= control target key start
LH: loop header
LB: loop body
LE: loop exit
PB: predicated region body
PF: predicated region fallthrough
CT: control target
= control target key end

     0   :  { %vm28_vm0 = vcmask 1043456   ;;  %vm21_vm1 = vcmask 31744   ;;  %s104_s1 = inlined_call_operand.vmem [shape: f32[4,128], index: 1, kind: input, shape index: {}]   ;;  %s105_s0 = inlined_call_operand.vmem [shape: f32[16,4], index: 0, kind: input, shape index: {}]   ;;  %s106_s2 = inlined_call_operand.vmem [shape: f32[1,128], index: 2, kind: input, shape index: {}]   ;;  %s107_s3 = inlined_call_operand.vmem [shape: f32[16,128], index: 3, kind: output, shape index: {}]  }
   0x1   :  { %v16_v0 = vld [vmem:[%s104_s1] sm:$0xf]  ;;  %v15_v2 = vld [vmem:[%s105_s0 + $0x8] sm:$0xff] }
   0x2   :  { %v14_v1 = vld [vmem:[%s105_s0] sm:$0xff]  ;;  %61 = vmatpush.msk.msra.mxu0 %vm28_vm0, %v16_v0  ;;  %64 = vmatpush.msk.msra.mxu1 %vm28_vm0, %v16_v0 }
   0x3   :  { %62 = vmatmul.msk.f32.vlgmr.msra.gmra.mxu0 %vm21_vm1, %v14_v1  ;;  %63 = vmatmul.msk.f32.vlgmr.msra.gmra.mxu1 %vm21_vm1, %v15_v2  ;;  %v65_v3 = vld [vmem:[%s106_s2] ss:$0 sm:$0xff] }
  0x80   :  { %v49_v4 = vpop.f32.mrf.mxu0  ;;  %v52_v5 = vpop.f32.mrf.mxu1 }
  0x81   :  { %v50_v6 = vadd.f32 %v65_v3, %v49_v4  ;;  %v53_v7 = vadd.f32 %v65_v3, %v52_v5 }
  0x83   :  { %55 = vst [vmem:[%s107_s3] sm:$0xff] %v50_v6 }
  0x84   :  { %56 = vst [vmem:[%s107_s3 + $0x8] sm:$0xff] %v53_v7 }

// kernel: lstm_reg_forward.3
= control target key start
LH: loop header
LB: loop body
LE: loop exit
PB: predicated region body
PF: predicated region fallthrough
CT: control target
= control target key end

     0   :  { %vm41_vm0 = vcmask 254976   ;;  %v4726_v3 = vmov 0.0   ;;  %vm58_vm1 = vcmask 261120   ;;  %s6912_s4 = inlined_call_operand.vmem [shape: f32[4,32,32], index: 4, kind: input, shape index: {}]   ;;  %s6913_s7 = inlined_call_operand.vmem [shape: f32[4,1,32], index: 7, kind: input, shape index: {}]   ;;  %s6914_s0 = inlined_call_operand.vmem [shape: f32[8,2,32], index: 0, kind: input, shape index: {}]   ;;  %s6915_s1 = inlined_call_operand.vmem [shape: f32[8,2,32], index: 1, kind: input, shape index: {}]   ;;  %s6916_s3 = inlined_call_operand.vmem [shape: f32[8,2,32], index: 3, kind: input, shape index: {}]   ;;  %s6917_s5 = inlined_call_operand.vmem [shape: f32[4,32,32], index: 5, kind: input, shape index: {}]   ;;  %s6918_s2 = inlined_call_operand.vmem [shape: f32[8,2,32], index: 2, kind: input, shape index: {}]   ;;  %s6919_s6 = inlined_call_operand.vmem [shape: f32[4,32,32], index: 6, kind: input, shape index: {}]   ;;  %s6920_s8 = inlined_call_operand.vmem [shape: f32[32,1], index: 8, kind: input, shape index: {}]   ;;  %s6921_s9 = inlined_call_operand.<no memory space> [shape: f32[1,1], index: 9, kind: input, shape index: {}]   ;;  %s6922_s10 = inlined_call_operand.vmem [shape: f32[8,2,1], index: 10, kind: output, shape index: {}]  }
   0x1   :  { %v4785_v0 = vld [vmem:[%s6912_s4 + $0x18] sm:$0xff]  ;;  %42 = vst.msk [vmem:[#allocation2] sm:$0x3] %vm41_vm0, %v4726_v3  ;;  %v4803_v4 = vld [vmem:[%s6912_s4 + $0x10] sm:$0xff]  ;;  %v4820_v7 = vld [vmem:[%s6912_s4 + $0x8] sm:$0xff] }
   0x2   :  { %v4790_v1 = vld [vmem:[%s6912_s4 + $0x38] sm:$0xff]  ;;  %74 = vmatpush.msra.mxu0 %v4785_v0  ;;  %v4808_v5 = vld [vmem:[%s6912_s4 + $0x30] sm:$0xff]  ;;  %43 = vst.msk [vmem:[#allocation3] sm:$0x3] %vm41_vm0, %v4726_v3  ;;  %v4825_v8 = vld [vmem:[%s6912_s4 + $0x28] sm:$0xff] }
   0x3   :  { %v4795_v2 = vld [vmem:[%s6912_s4 + $0x78] sm:$0xff]  ;;  %100 = vmatpush.msra.mxu1 %v4790_v1  ;;  %v4813_v6 = vld [vmem:[%s6912_s4 + $0x70] sm:$0xff]  ;;  %44 = vst.msk [vmem:[#allocation4] sm:$0x3] %vm41_vm0, %v4726_v3  ;;  %v4833_v9 = vld [vmem:[%s6912_s4 + $0x68] sm:$0xff] }
   0x4   :  { %6934 = vst [vmem:[#allocation7_spill] sm:$0xff] %v4813_v6  ;;  %152 = vmatpush.msra.mxu3 %v4795_v2  ;;  %75 = vmatpush.msra.mxu0 %v4803_v4  ;;  %v4840_v10 = vld [vmem:[%s6912_s4] sm:$0xff]  ;;  %v4850_v12 = vld [vmem:[%s6912_s4 + $0x58] sm:$0xff]  ;;  %v4866_v15 = vld [vmem:[%s6912_s4 + $0x50] sm:$0xff] }
   0x5   :  { %101 = vmatpush.msra.mxu1 %v4808_v5  ;;  %6935 = vst [vmem:[#allocation8_spill] sm:$0xff] %v4833_v9  ;;  %v4845_v11 = vld [vmem:[%s6912_s4 + $0x20] sm:$0xff]  ;;  %126 = vmatpush.msra.mxu2 %v4850_v12  ;;  %v4875_v16 = vld [vmem:[%s6912_s4 + $0x48] sm:$0xff]  ;;  %v4898_v27 = vld [vmem:[%s6917_s5 + $0x18] sm:$0xff] }
   0x6   :  { %45 = vst.msk [vmem:[#allocation5] sm:$0x3] %vm41_vm0, %v4726_v3  ;;  %153 = vmatpush.msra.mxu3 %v4813_v6  ;;  %76 = vmatpush.msra.mxu0 %v4820_v7  ;;  %v4857_v13 = vld [vmem:[%s6912_s4 + $0x60] sm:$0xff]  ;;  %v4903_v28 = vld [vmem:[%s6917_s5 + $0x38] sm:$0xff]  ;;  %v4922_v33 = vld [vmem:[%s6917_s5 + $0x10] sm:$0xff] }
   0x7   :  { %102 = vmatpush.msra.mxu1 %v4825_v8  ;;  %6936 = vst [vmem:[#allocation9_spill] sm:$0xff] %v4857_v13  ;;  %127 = vmatpush.msra.mxu2 %v4866_v15  ;;  %v4881_v17 = vld [vmem:[%s6912_s4 + $0x40] sm:$0xff]  ;;  %v4908_v29 = vld [vmem:[%s6917_s5 + $0x58] sm:$0xff]  ;;  %v4927_v34 = vld [vmem:[%s6917_s5 + $0x30] sm:$0xff] }
   0x8   :  { %154 = vmatpush.msra.mxu3 %v4833_v9  ;;  %77 = vmatpush.msra.mxu0 %v4840_v10  ;;  %v46_v14 = vld [vmem:[#allocation2] sm:$0x3]  ;;  %v4915_v31 = vld [vmem:[%s6917_s5 + $0x78] sm:$0xff]  ;;  %v4932_v35 = vld [vmem:[%s6917_s5 + $0x50] sm:$0xff] }
   0x9   :  { %103 = vmatpush.msra.mxu1 %v4845_v11  ;;  %3930 = vmatmul.msk.f32.vlgmr.msra.gmra.mxu0 %vm58_vm1, %v46_v14  ;;  %v50_v18 = vld [vmem:[%s6914_s0] sm:$0x3]  ;;  %6937 = vst [vmem:[#allocation10_spill] sm:$0xff] %v4915_v31  ;;  %v4939_v36 = vld [vmem:[%s6917_s5 + $0x70] sm:$0xff]  ;;  %v4946_v38 = vld [vmem:[%s6917_s5 + $0x8] sm:$0xff] }
   0xa   :  { %155 = vmatpush.msra.mxu3 %v4857_v13  ;;  %3935 = vmatmul.msk.f32.vlgmr.msra.gmra.mxu1 %vm58_vm1, %v46_v14  ;;  %v51_v19 = vld [vmem:[%s6915_s1] sm:$0x3]  ;;  %6938 = vst [vmem:[#allocation11_spill] sm:$0xff] %v4939_v36  ;;  %v4951_v39 = vld [vmem:[%s6917_s5 + $0x28] sm:$0xff]  ;;  %v5002_v51 = vld [vmem:[%s6919_s6 + $0x18] sm:$0xff] }
   0xb   :  { %3945 = vmatmul.msk.f32.vlgmr.msra.gmra.mxu3 %vm58_vm1, %v46_v14  ;;  %128 = vmatpush.msra.mxu2 %v4875_v16  ;;  %v53_v26 = vld [vmem:[%s6916_s3] sm:$0x3]  ;;  %v4956_v40 = vld [vmem:[%s6917_s5 + $0x48] sm:$0xff]  ;;  %v5007_v52 = vld [vmem:[%s6919_s6 + $0x38] sm:$0xff] }
   0xc   :  { %247 = vmatpush.msrb.mxu0 %v4898_v27  ;;  %277 = vmatpush.msrb.mxu1 %v4903_v28  ;;  %v4963_v42 = vld [vmem:[%s6917_s5 + $0x68] sm:$0xff]  ;;  %v4968_v43 = vld [vmem:[%s6917_s5] sm:$0xff]  ;;  %v5012_v53 = vld [vmem:[%s6919_s6 + $0x58] sm:$0xff] }
   0xd   :  { %129 = vmatpush.msra.mxu2 %v4881_v17  ;;  %337 = vmatpush.msrb.mxu3 %v4915_v31  ;;  %6939 = vst [vmem:[#allocation12_spill] sm:$0xff] %v4963_v42  ;;  %v4973_v44 = vld [vmem:[%s6917_s5 + $0x20] sm:$0xff]  ;;  %v5020_v55 = vld [vmem:[%s6919_s6 + $0x78] sm:$0xff]  ;;  %v5025_v56 = vld [vmem:[%s6919_s6 + $0x10] sm:$0xff] }
   0xe   :  { %3940 = vmatmul.msk.f32.vlgmr.msra.gmra.mxu2 %vm58_vm1, %v46_v14  ;;  %248 = vmatpush.msrb.mxu0 %v4922_v33  ;;  %v4982_v47 = vld [vmem:[%s6917_s5 + $0x40] sm:$0xff]  ;;  %6941 = vst [vmem:[#allocation14_spill] sm:$0xff] %v5020_v55  ;;  %v5030_v57 = vld [vmem:[%s6919_s6 + $0x30] sm:$0xff]  ;;  %v5047_v60 = vld [vmem:[%s6919_s6 + $0x8] sm:$0xff] }
   0xf   :  { %307 = vmatpush.msrb.mxu2 %v4908_v29  ;;  %278 = vmatpush.msrb.mxu1 %v4927_v34  ;;  %v4987_v48 = vld [vmem:[%s6917_s5 + $0x60] sm:$0xff]  ;;  %v5037_v58 = vld [vmem:[%s6919_s6 + $0x50] sm:$0xff]  ;;  %v5054_v61 = vld [vmem:[%s6919_s6 + $0x28] sm:$0xff] }
  0x10   :  { %338 = vmatpush.msrb.mxu3 %v4939_v36  ;;  %249 = vmatpush.msrb.mxu0 %v4946_v38  ;;  %6940 = vst [vmem:[#allocation13_spill] sm:$0xff] %v4987_v48  ;;  %v52_v50 = vld [vmem:[%s6918_s2] sm:$0x3]  ;;  %v5042_v59 = vld [vmem:[%s6919_s6 + $0x70] sm:$0xff]  ;;  %v5059_v62 = vld [vmem:[%s6919_s6 + $0x48] sm:$0xff] }
  0x11   :  { %308 = vmatpush.msrb.mxu2 %v4932_v35  ;;  %279 = vmatpush.msrb.mxu1 %v4951_v39  ;;  %6942 = vst [vmem:[#allocation15_spill] sm:$0xff] %v5042_v59  ;;  %v5064_v63 = vld [vmem:[%s6919_s6 + $0x68] sm:$0xff] }
  0x12   :  { %339 = vmatpush.msrb.mxu3 %v4963_v42  ;;  %250 = vmatpush.msrb.mxu0 %v4968_v43  ;;  %6943 = vst [vmem:[#allocation16_spill] sm:$0xff] %v5064_v63 }
  0x13   :  { %309 = vmatpush.msrb.mxu2 %v4956_v40  ;;  %280 = vmatpush.msrb.mxu1 %v4973_v44 }
  0x14   :  { %340 = vmatpush.msrb.mxu3 %v4987_v48  ;;  %364 = vmatpush.msra.mxu0 %v5002_v51 }
  0x15   :  { %310 = vmatpush.msrb.mxu2 %v4982_v47  ;;  %390 = vmatpush.msra.mxu1 %v5007_v52 }
  0x16   :  { %442 = vmatpush.msra.mxu3 %v5020_v55  ;;  %365 = vmatpush.msra.mxu0 %v5025_v56  ;;  %v47_v55 = vld [vmem:[#allocation3] sm:$0x3] }
  0x17   :  { %416 = vmatpush.msra.mxu2 %v5012_v53  ;;  %391 = vmatpush.msra.mxu1 %v5030_v57 }
  0x18   :  { %443 = vmatpush.msra.mxu3 %v5042_v59  ;;  %366 = vmatpush.msra.mxu0 %v5047_v60 }
  0x19   :  { %417 = vmatpush.msra.mxu2 %v5037_v58  ;;  %392 = vmatpush.msra.mxu1 %v5054_v61 }
  0x1a   :  { %444 = vmatpush.msra.mxu3 %v5064_v63 }
  0x1b   :  { %418 = vmatpush.msra.mxu2 %v5059_v62 }
  0x86   :  { %v79_v20 = vpop.f32.mrf.mxu0 }
  0x87   :  { %v82_v21 = vadd.f32 %v79_v20, %v50_v18  ;;  %v105_v22 = vpop.f32.mrf.mxu1  ;;  %v5071_v18 = vld [vmem:[%s6919_s6] sm:$0xff] }
  0x88   :  { %v108_v23 = vadd.f32 %v105_v22, %v51_v19  ;;  %v5076_v19 = vld [vmem:[%s6919_s6 + $0x20] sm:$0xff]  ;;  %367 = vmatpush.msra.mxu0 %v5071_v18 }
  0x89   :  { %v3946_v24 = vmul.f32 -1.442695, %v82_v21  ;;  %v5083_v21 = vld [vmem:[%s6919_s6 + $0x40] sm:$0xff]  ;;  %393 = vmatpush.msra.mxu1 %v5076_v19 }
  0x8a   :  { %v3947_v25 = vmul.f32 -1.442695, %v108_v23  ;;  %v5088_v22 = vld [vmem:[%s6919_s6 + $0x60] sm:$0xff]  ;;  %419 = vmatpush.msra.mxu2 %v5083_v21 }
  0x8b   :  { %4470 = vpow2.f32 %v3946_v24  ;;  %6944 = vst [vmem:[#allocation17_spill] sm:$0xff] %v5088_v22  ;;  %445 = vmatpush.msra.mxu3 %v5088_v22 }
  0x8c   :  { %4472 = vpow2.f32 %v3947_v25 }
  0x8e   :  { %v157_v30 = vpop.f32.mrf.mxu3 }
  0x8f   :  { %v160_v32 = vadd.f32 %v157_v30, %v53_v26 }
  0x91   :  { %v3948_v37 = vmul.f32 -1.442695, %v160_v32  ;;  %v4471_v41 = vpop.eup %4470  ;;  %v131_v54 = vpop.f32.mrf.mxu2 }
  0x92   :  { %v4473_v45 = vpop.eup %4472  ;;  %v4975_v46 = vadd.f32 1.0, %v4471_v41  ;;  %v134_v14 = vadd.f32 %v131_v54, %v52_v50 }
  0x93   :  { %4474 = vpow2.f32 %v3948_v37  ;;  %v4989_v49 = vadd.f32 1.0, %v4473_v45 }
  0x94   :  { %4476 = vrcp.f32 %v4975_v46  ;;  %v176_v37 = vand.u32 2147483648, %v4975_v46  ;;  %v174_v50 = vand.u32 2147483647, %v4975_v46  ;;  %vm170_vm4 = vweird.f32 %v4975_v46 }
  0x95   :  { %4478 = vrcp.f32 %v4989_v49  ;;  %v195_v41 = vand.u32 2147483648, %v4989_v49  ;;  %vm189_vm5 = vweird.f32 %v4989_v49 }
  0x96   :  { %vm175_vm8 = vcmp.eq.f32.partialorder %v174_v50, 8.507059e+37 }
  0x99   :  { %v4475_v3 = vpop.eup %4474 }
  0x9a   :  { %v203_v20 = vadd.f32 1.0, %v4475_v3  ;;  %v4477_v23 = vpop.eup %4476  ;;  %v193_v3 = vand.u32 2147483647, %v4989_v49 }
  0x9b   :  { %v4479_v24 = vpop.eup %4478  ;;  %v166_v25 = vmul.f32 %v4477_v23, %v4975_v46  ;;  %vm171_vm2 = vweird.f32 %v4477_v23 }
  0x9c   :  { %4480 = vrcp.f32 %v203_v20  ;;  %v185_v26 = vmul.f32 %v4479_v24, %v4989_v49  ;;  %vm190_vm3 = vweird.f32 %v4479_v24  ;;  %vm172_vm6 = vmor %vm170_vm4, %vm171_vm2  ;;  %vm194_vm9 = vcmp.eq.f32.partialorder %v193_v3, 8.507059e+37 }
  0x9d   :  { %4482 = vtanh.f32 %v134_v14  ;;  %v167_v30 = vsub.f32 1.0, %v166_v25  ;;  %vm191_vm7 = vmor %vm189_vm5, %vm190_vm3  ;;  %v215_v6 = vand.u32 2147483648, %v203_v20  ;;  %vm209_vm11 = vweird.f32 %v203_v20 }
  0x9e   :  { %v186_v32 = vsub.f32 1.0, %v185_v26  ;;  %v177_v26 = vor.u32 1.1754944e-38, %v176_v37  ;;  %v213_v37 = vand.u32 2147483647, %v203_v20 }
  0x9f   :  { %v168_v45 = vmul.f32 %v4477_v23, %v167_v30  ;;  %v196_v30 = vor.u32 1.1754944e-38, %v195_v41  ;;  %v216_v41 = vor.u32 1.1754944e-38, %v215_v6  ;;  %v48_v6 = vld [vmem:[#allocation4] sm:$0x3] }
  0xa0   :  { %v187_v54 = vmul.f32 %v4479_v24, %v186_v32  ;;  %vm214_vm13 = vcmp.eq.f32.partialorder %v213_v37, 8.507059e+37 }
  0xa1   :  { %v169_v14 = vadd.f32 %v4477_v23, %v168_v45 }
  0xa2   :  { %v4481_v63 = vpop.eup %4480  ;;  %v188_v22 = vadd.f32 %v4479_v24, %v187_v54 }
  0xa3   :  { %v4483_v59 = vpop.eup %4482  ;;  %v205_v25 = vmul.f32 %v4481_v63, %v203_v20  ;;  %v173_v48 = vsel %vm172_vm6, %v4477_v23, %v169_v14  ;;  %vm210_vm10 = vweird.f32 %v4481_v63  ;;  %v6946_v14 = vld [vmem:[#allocation8_spill] sm:$0xff] }
  0xa4   :  { %v178_v42 = vsel %vm175_vm8, %v177_v26, %v173_v48  ;;  %v192_v36 = vsel %vm191_vm7, %v4479_v24, %v188_v22  ;;  %vm211_vm12 = vmor %vm209_vm11, %vm210_vm10 }
  0xa5   :  { %v206_v32 = vsub.f32 1.0, %v205_v25  ;;  %v197_v31 = vsel %vm194_vm9, %v196_v30, %v192_v36  ;;  %v220_v45 = vmul.f32 %v4483_v59, %v178_v42 }
  0xa6   :  { %v219_v46 = vmul.f32 %v197_v31, %v47_v55 }
  0xa7   :  { %v207_v13 = vmul.f32 %v4481_v63, %v206_v32  ;;  %v6947_v32 = vld [vmem:[#allocation9_spill] sm:$0xff] }
  0xa8   :  { %v5104_v9 = vadd.f32 %v220_v45, %v219_v46 }
  0xa9   :  { %v208_v49 = vadd.f32 %v4481_v63, %v207_v13 }
  0xaa   :  { %4484 = vtanh.f32 %v5104_v9 }
  0xab   :  { %v212_v23 = vsel %vm211_vm12, %v4481_v63, %v208_v49  ;;  %v5196_v63 = vld [vmem:[%s6920_s8] sm:$0xff]  ;;  %vm545_vm12 = vcmask 1024  }
  0xac   :  { %v217_v22 = vsel %vm214_vm13, %v216_v41, %v212_v23 }
  0xb0   :  { %v4485_v48 = vpop.eup %4484 }
  0xb1   :  { %v5107_v24 = vmul.f32 %v4485_v48, %v217_v22 }
  0xb3   :  { %3949 = vmatmul.msk.f32.vlgmr.msrb.gmra.mxu0 %vm58_vm1, %v5107_v24  ;;  %3955 = vmatmul.msk.f32.vlgmr.msrb.gmra.mxu1 %vm58_vm1, %v5107_v24 }
  0xb4   :  { %3961 = vmatmul.msk.f32.vlgmr.msrb.gmra.mxu2 %vm58_vm1, %v5107_v24  ;;  %3967 = vmatmul.msk.f32.vlgmr.msrb.gmra.mxu3 %vm58_vm1, %v5107_v24 }
  0xb5   :  { %571 = vmatpush.msrb.mxu1 %v4785_v0  ;;  %596 = vmatpush.msrb.mxu2 %v4790_v1 }
  0xb6   :  { %621 = vmatpush.msrb.mxu3 %v4850_v12 }
  0xb7   :  { %572 = vmatpush.msrb.mxu1 %v4803_v4  ;;  %597 = vmatpush.msrb.mxu2 %v4808_v5 }
  0xb8   :  { %622 = vmatpush.msrb.mxu3 %v4866_v15 }
  0xb9   :  { %573 = vmatpush.msrb.mxu1 %v4820_v7  ;;  %598 = vmatpush.msrb.mxu2 %v4825_v8 }
  0xba   :  { %623 = vmatpush.msrb.mxu3 %v4875_v16 }
  0xbb   :  { %3968 = vmatmul.msk.f32.vlgmr.msra.gmra.mxu0 %vm58_vm1, %v48_v6  ;;  %3973 = vmatmul.msk.f32.vlgmr.msra.gmra.mxu1 %vm58_vm1, %v48_v6 }
  0xbc   :  { %3978 = vmatmul.msk.f32.vlgmr.msra.gmra.mxu2 %vm58_vm1, %v48_v6  ;;  %3983 = vmatmul.msk.f32.vlgmr.msra.gmra.mxu3 %vm58_vm1, %v48_v6 }
  0xbd   :  { %574 = vmatpush.msrb.mxu1 %v4840_v10  ;;  %599 = vmatpush.msrb.mxu2 %v4845_v11 }
  0xbe   :  { %624 = vmatpush.msrb.mxu3 %v4881_v17 }
  0xbf   :  { %769 = vmatpush.msra.mxu2 %v4903_v28  ;;  %741 = vmatpush.msra.mxu1 %v4898_v27  ;;  %v4430_v28 = vld [vmem:[%s6913_s7] ss:$0 sm:$0xff] }
  0xc0   :  { %797 = vmatpush.msra.mxu3 %v4908_v29  ;;  %v4431_v29 = vld [vmem:[%s6913_s7 + $0x1] ss:$0 sm:$0xff] }
  0xc1   :  { %770 = vmatpush.msra.mxu2 %v4927_v34  ;;  %742 = vmatpush.msra.mxu1 %v4922_v33 }
  0xc2   :  { %798 = vmatpush.msra.mxu3 %v4932_v35 }
  0xc3   :  { %771 = vmatpush.msra.mxu2 %v4951_v39  ;;  %3992 = vmatmul.msk.f32.vlgmr.msrb.gmra.mxu1 %vm58_vm1, %v5107_v24 }
  0xc4   :  { %799 = vmatpush.msra.mxu3 %v4956_v40  ;;  %3997 = vmatmul.msk.f32.vlgmr.msrb.gmra.mxu2 %vm58_vm1, %v5107_v24  ;;  %v4433_v40 = vld [vmem:[%s6913_s7 + $0x3] ss:$0 sm:$0xff] }
  0xc5   :  { %4002 = vmatmul.msk.f32.vlgmr.msrb.gmra.mxu3 %vm58_vm1, %v5107_v24  ;;  %743 = vmatpush.msra.mxu1 %v4946_v38 }
  0xc6   :  { %772 = vmatpush.msra.mxu2 %v4973_v44  ;;  %800 = vmatpush.msra.mxu3 %v4982_v47 }
  0xc7   :  { %744 = vmatpush.msra.mxu1 %v4968_v43 }
  0xc8   :  { %874 = vmatpush.msrb.mxu2 %v5007_v52  ;;  %899 = vmatpush.msrb.mxu3 %v5012_v53  ;;  %v5175_v53 = vld [vmem:[%s6920_s8 + $0x18] sm:$0xff] }
  0xc9   :  { %849 = vmatpush.msrb.mxu1 %v5002_v51  ;;  %537 = vmatpush.msrb.mxu0 %v5175_v53 }
  0xca   :  { %875 = vmatpush.msrb.mxu2 %v5030_v57  ;;  %900 = vmatpush.msrb.mxu3 %v5037_v58 }
  0xcb   :  { %850 = vmatpush.msrb.mxu1 %v5025_v56  ;;  %v5181_v56 = vld [vmem:[%s6920_s8 + $0x10] sm:$0xff] }
  0xcc   :  { %876 = vmatpush.msrb.mxu2 %v5054_v61  ;;  %901 = vmatpush.msrb.mxu3 %v5059_v62  ;;  %v4432_v62 = vld [vmem:[%s6913_s7 + $0x2] ss:$0 sm:$0xff] }
  0xcd   :  { %851 = vmatpush.msrb.mxu1 %v5047_v60  ;;  %538 = vmatpush.msrb.mxu0 %v5181_v56  ;;  %v5187_v60 = vld [vmem:[%s6920_s8 + $0x8] sm:$0xff] }
  0xce   :  { %877 = vmatpush.msrb.mxu2 %v5076_v19  ;;  %902 = vmatpush.msrb.mxu3 %v5083_v21  ;;  %v6945_v21 = vld [vmem:[#allocation7_spill] sm:$0xff] }
  0xcf   :  { %852 = vmatpush.msrb.mxu1 %v5071_v18  ;;  %539 = vmatpush.msrb.mxu0 %v5187_v60 }
  0xd1   :  { %540 = vmatpush.msrb.mxu0 %v5196_v63 }
  0xd3   :  { %646 = vmatpush.msra.mxu0 %v4795_v2  ;;  %v15_v2 = vstv %s6921_s9 }
  0xd4   :  { %16 = vst [vmem:[#allocation6] sm:$0x1] %v15_v2 }
  0xd5   :  { %647 = vmatpush.msra.mxu0 %v6945_v21  ;;  %v6951_v21 = vld [vmem:[#allocation13_spill] sm:$0xff] }
  0xd7   :  { %648 = vmatpush.msra.mxu0 %v6946_v14  ;;  %v6955_v14 = vld [vmem:[#allocation17_spill] sm:$0xff] }
  0xd9   :  { %649 = vmatpush.msra.mxu0 %v6947_v32 }
 0x130   :  { %v252_v13 = vpop.f32.mrf.mxu0  ;;  %v282_v27 = vpop.f32.mrf.mxu1 }
 0x131   :  { %v253_v31 = vadd.f32 %v4430_v28, %v252_v13  ;;  %v283_v33 = vadd.f32 %v4431_v29, %v282_v27 }
 0x137   :  { %v342_v34 = vpop.f32.mrf.mxu3  ;;  %v312_v47 = vpop.f32.mrf.mxu2 }
 0x138   :  { %v369_v35 = vpop.f32.mrf.mxu0  ;;  %v395_v36 = vpop.f32.mrf.mxu1  ;;  %v343_v44 = vadd.f32 %v4433_v40, %v342_v34  ;;  %v313_v20 = vadd.f32 %v4432_v62, %v312_v47 }
 0x139   :  { %v372_v38 = vadd.f32 %v369_v35, %v253_v31  ;;  %v398_v39 = vadd.f32 %v395_v36, %v283_v33  ;;  %v49_v33 = vld [vmem:[#allocation5] sm:$0x3] }
 0x13b   :  { %v3984_v42 = vmul.f32 -1.442695, %v372_v38  ;;  %v3985_v43 = vmul.f32 -1.442695, %v398_v39 }
 0x13d   :  { %4486 = vpow2.f32 %v3984_v42 }
 0x13e   :  { %4488 = vpow2.f32 %v3985_v43 }
 0x13f   :  { %v447_v51 = vpop.f32.mrf.mxu3  ;;  %v421_v18 = vpop.f32.mrf.mxu2 }
 0x140   :  { %v450_v52 = vadd.f32 %v447_v51, %v343_v44  ;;  %v424_v3 = vadd.f32 %v421_v18, %v313_v20  ;;  %v6948_v18 = vld [vmem:[#allocation10_spill] sm:$0xff]  ;;  %v6950_v20 = vld [vmem:[#allocation12_spill] sm:$0xff]  ;;  %v576_v32 = vpop.f32.mrf.mxu1 }
 0x142   :  { %v3986_v55 = vmul.f32 -1.442695, %v450_v52 }
 0x143   :  { %v4487_v57 = vpop.eup %4486 }
 0x144   :  { %v4489_v58 = vpop.eup %4488  ;;  %v454_v59 = vadd.f32 1.0, %v4487_v57  ;;  %4490 = vpow2.f32 %v3986_v55 }
 0x145   :  { %v473_v61 = vadd.f32 1.0, %v4489_v58 }
 0x146   :  { %4492 = vrcp.f32 %v454_v59  ;;  %v466_v49 = vand.u32 2147483648, %v454_v59  ;;  %v464_v41 = vand.u32 2147483647, %v454_v59  ;;  %vm460_vm2 = vweird.f32 %v454_v59 }
 0x147   :  { %4494 = vrcp.f32 %v473_v61  ;;  %v485_v37 = vand.u32 2147483648, %v473_v61  ;;  %v483_v22 = vand.u32 2147483647, %v473_v61  ;;  %vm479_vm3 = vweird.f32 %v473_v61 }
 0x148   :  { %v467_v27 = vor.u32 1.1754944e-38, %v466_v49  ;;  %vm465_vm6 = vcmp.eq.f32.partialorder %v464_v41, 8.507059e+37 }
 0x149   :  { %v486_v31 = vor.u32 1.1754944e-38, %v485_v37  ;;  %vm484_vm7 = vcmp.eq.f32.partialorder %v483_v22, 8.507059e+37 }
 0x14a   :  { %v4491_v19 = vpop.eup %4490 }
 0x14b   :  { %v493_v50 = vadd.f32 1.0, %v4491_v19  ;;  %v6949_v19 = vld [vmem:[#allocation11_spill] sm:$0xff] }
 0x14c   :  { %v4493_v54 = vpop.eup %4492 }
 0x14d   :  { %v4495_v25 = vpop.eup %4494  ;;  %v456_v26 = vmul.f32 %v4493_v54, %v454_v59  ;;  %4496 = vrcp.f32 %v493_v50  ;;  %vm461_vm14 = vweird.f32 %v4493_v54  ;;  %v505_v52 = vand.u32 2147483648, %v493_v50 }
 0x14e   :  { %v475_v30 = vmul.f32 %v4495_v25, %v473_v61  ;;  %4498 = vtanh.f32 %v424_v3  ;;  %vm480_vm15 = vweird.f32 %v4495_v25  ;;  %vm462_vm4 = vmor %vm460_vm2, %vm461_vm14  ;;  %vm499_vm9 = vweird.f32 %v493_v50  ;;  %v6954_v3 = vld [vmem:[#allocation16_spill] sm:$0xff] }
 0x14f   :  { %v457_v45 = vsub.f32 1.0, %v456_v26  ;;  %vm481_vm5 = vmor %vm479_vm3, %vm480_vm15  ;;  %v503_v55 = vand.u32 2147483647, %v493_v50  ;;  %v506_v58 = vor.u32 1.1754944e-38, %v505_v52  ;;  %v601_v26 = vpop.f32.mrf.mxu2 }
 0x150   :  { %v476_v46 = vsub.f32 1.0, %v475_v30  ;;  %v3988_v30 = vld [vmem:[%s6914_s0 + $0x2] sm:$0x3] }
 0x151   :  { %v458_v23 = vmul.f32 %v4493_v54, %v457_v45  ;;  %vm504_vm11 = vcmp.eq.f32.partialorder %v503_v55, 8.507059e+37 }
 0x152   :  { %v477_v48 = vmul.f32 %v4495_v25, %v476_v46 }
 0x153   :  { %v4497_v6 = vpop.eup %4496  ;;  %v459_v13 = vadd.f32 %v4493_v54, %v458_v23 }
 0x154   :  { %v478_v28 = vadd.f32 %v4495_v25, %v477_v48  ;;  %v495_v29 = vmul.f32 %v4497_v6, %v493_v50  ;;  %v4499_v35 = vpop.eup %4498  ;;  %vm500_vm8 = vweird.f32 %v4497_v6  ;;  %v6952_v50 = vld [vmem:[#allocation14_spill] sm:$0xff] }
 0x155   :  { %v463_v34 = vsel %vm462_vm4, %v4493_v54, %v459_v13  ;;  %vm501_vm10 = vmor %vm499_vm9, %vm500_vm8  ;;  %v6953_v54 = vld [vmem:[#allocation15_spill] sm:$0xff]  ;;  %v4434_v48 = vld [vmem:[#allocation6] ss:$0 sm:$0xff] }
 0x156   :  { %v468_v36 = vsel %vm465_vm6, %v467_v27, %v463_v34  ;;  %v482_v38 = vsel %vm481_vm5, %v4495_v25, %v478_v28  ;;  %v496_v39 = vsub.f32 1.0, %v495_v29  ;;  %v3989_v25 = vld [vmem:[%s6915_s1 + $0x2] sm:$0x3] }
 0x157   :  { %v487_v40 = vsel %vm484_vm7, %v486_v31, %v482_v38  ;;  %v510_v42 = vmul.f32 %v4499_v35, %v468_v36  ;;  %v604_v45 = vadd.f32 %v3989_v25, %v601_v26 }
 0x158   :  { %v509_v43 = vmul.f32 %v487_v40, %v49_v33  ;;  %v497_v44 = vmul.f32 %v4497_v6, %v496_v39  ;;  %v3991_v33 = vld [vmem:[%s6916_s3 + $0x2] sm:$0x3] }
 0x159   :  { %v4009_v46 = vmul.f32 -1.442695, %v604_v45  ;;  %v3990_v40 = vld [vmem:[%s6918_s2 + $0x2] sm:$0x3] }
 0x15a   :  { %v5206_v47 = vadd.f32 %v510_v42, %v509_v43  ;;  %v498_v51 = vadd.f32 %v4497_v6, %v497_v44  ;;  %v626_v42 = vpop.f32.mrf.mxu3 }
 0x15b   :  { %v629_v52 = vadd.f32 %v3990_v40, %v626_v42  ;;  %v5312_v42 = vld [vmem:[%s6912_s4 + $0x68] sm:$0xff] }
 0x15c   :  { %4500 = vtanh.f32 %v5206_v47  ;;  %v502_v57 = vsel %vm501_vm10, %v4497_v6, %v498_v51 }
 0x15d   :  { %v507_v61 = vsel %vm504_vm11, %v506_v58, %v502_v57  ;;  %4502 = vpow2.f32 %v4009_v46 }
 0x162   :  { %v4501_v59 = vpop.eup %4500 }
 0x163   :  { %v5209_v62 = vmul.f32 %v4501_v59, %v507_v61  ;;  %v4503_v2 = vpop.eup %4502 }
 0x164   :  { %v677_v23 = vadd.f32 1.0, %v4503_v2 }
 0x165   :  { %3987 = vmatmul.msk.f32.vlgmr.msrb.gmra.mxu0 %vm58_vm1, %v5209_v62 }
 0x166   :  { %825 = vmatpush.msrb.mxu0 %v6948_v18  ;;  %v689_v51 = vand.u32 2147483648, %v677_v23  ;;  %vm683_vm14 = vweird.f32 %v677_v23  ;;  %v687_v57 = vand.u32 2147483647, %v677_v23 }
 0x168   :  { %826 = vmatpush.msrb.mxu0 %v6949_v19  ;;  %v690_v19 = vor.u32 1.1754944e-38, %v689_v51  ;;  %vm688_vm5 = vcmp.eq.f32.partialorder %v687_v57, 8.507059e+37 }
 0x16a   :  { %827 = vmatpush.msrb.mxu0 %v6950_v20 }
 0x16c   :  { %828 = vmatpush.msrb.mxu0 %v6951_v21 }
 0x16d   :  { %4007 = vmatmul.msk.f32.vlgmr.msra.gmra.mxu0 %vm58_vm1, %v5107_v24  ;;  %v579_v24 = vadd.f32 %v3988_v30, %v576_v32 }
 0x16e   :  { %924 = vmatpush.msra.mxu0 %v6952_v50 }
 0x16f   :  { %v4008_v49 = vmul.f32 -1.442695, %v579_v24 }
 0x170   :  { %925 = vmatpush.msra.mxu0 %v6953_v54 }
 0x171   :  { %4504 = vpow2.f32 %v4008_v49 }
 0x172   :  { %926 = vmatpush.msra.mxu0 %v6954_v3  ;;  %4506 = vrcp.f32 %v677_v23 }
 0x174   :  { %927 = vmatpush.msra.mxu0 %v6955_v14 }
 0x177   :  { %v4505_v37 = vpop.eup %4504 }
 0x178   :  { %v658_v41 = vadd.f32 1.0, %v4505_v37  ;;  %v4507_v22 = vpop.eup %4506 }
 0x179   :  { %v679_v28 = vmul.f32 %v4507_v22, %v677_v23  ;;  %vm684_vm13 = vweird.f32 %v4507_v22 }
 0x17a   :  { %4508 = vrcp.f32 %v658_v41  ;;  %vm685_vm2 = vmor %vm683_vm14, %vm684_vm13  ;;  %v670_v58 = vand.u32 2147483648, %v658_v41  ;;  %vm664_vm3 = vweird.f32 %v658_v41  ;;  %v668_v59 = vand.u32 2147483647, %v658_v41 }
 0x17b   :  { %v680_v31 = vsub.f32 1.0, %v679_v28 }
 0x17c   :  { %v671_v50 = vor.u32 1.1754944e-38, %v670_v58  ;;  %vm669_vm6 = vcmp.eq.f32.partialorder %v668_v59, 8.507059e+37 }
 0x17d   :  { %v681_v38 = vmul.f32 %v4507_v22, %v680_v31 }
 0x17f   :  { %v682_v44 = vadd.f32 %v4507_v22, %v681_v38  ;;  %v5301_v38 = vld [vmem:[%s6912_s4 + $0x78] sm:$0xff] }
 0x180   :  { %v4509_v13 = vpop.eup %4508 }
 0x181   :  { %v660_v29 = vmul.f32 %v4509_v13, %v658_v41  ;;  %vm665_vm15 = vweird.f32 %v4509_v13  ;;  %v686_v61 = vsel %vm685_vm2, %v4507_v22, %v682_v44 }
 0x182   :  { %vm666_vm4 = vmor %vm664_vm3, %vm665_vm15  ;;  %v691_v54 = vsel %vm688_vm5, %v690_v19, %v686_v61 }
 0x183   :  { %v661_v34 = vsub.f32 1.0, %v660_v29  ;;  %v713_v14 = vmul.f32 %v691_v54, %v5104_v9 }
 0x185   :  { %v662_v43 = vmul.f32 %v4509_v13, %v661_v34 }
 0x187   :  { %v663_v55 = vadd.f32 %v4509_v13, %v662_v43 }
 0x189   :  { %v667_v20 = vsel %vm666_vm4, %v4509_v13, %v663_v55 }
 0x18a   :  { %v672_v3 = vsel %vm669_vm6, %v671_v50, %v667_v20 }
 0x1e2   :  { %v542_v6 = vpop.f32.mrf.mxu0 }
 0x1e3   :  { %v543_v27 = vadd.f32 %v4434_v48, %v542_v6 }
 0x1e5   :  { %546 = vst.msk [vmem:[%s6922_s10] sm:$0x3] %vm545_vm12, %v543_v27 }
 0x1ea   :  { %v651_v35 = vpop.f32.mrf.mxu0 }
 0x1eb   :  { %v654_v36 = vadd.f32 %v3991_v33, %v651_v35 }
 0x1ed   :  { %v4010_v39 = vmul.f32 -1.442695, %v654_v36  ;;  %v4438_v36 = vld [vmem:[%s6913_s7 + $0x2] ss:$0 sm:$0xff] }
 0x1ef   :  { %4510 = vpow2.f32 %v4010_v39  ;;  %v5306_v39 = vld [vmem:[%s6912_s4 + $0x70] sm:$0xff] }
 0x1f0   :  { %4512 = vtanh.f32 %v629_v52  ;;  %v5318_v52 = vld [vmem:[%s6912_s4 + $0x60] sm:$0xff] }
 0x1f5   :  { %v4511_v18 = vpop.eup %4510 }
 0x1f6   :  { %v697_v21 = vadd.f32 1.0, %v4511_v18  ;;  %v4513_v25 = vpop.eup %4512 }
 0x1f7   :  { %v714_v26 = vmul.f32 %v4513_v25, %v672_v3 }
 0x1f8   :  { %4514 = vrcp.f32 %v697_v21  ;;  %v709_v46 = vand.u32 2147483648, %v697_v21  ;;  %v707_v2 = vand.u32 2147483647, %v697_v21  ;;  %vm703_vm8 = vweird.f32 %v697_v21 }
 0x1f9   :  { %v5240_v32 = vadd.f32 %v714_v26, %v713_v14 }
 0x1fa   :  { %v710_v23 = vor.u32 1.1754944e-38, %v709_v46  ;;  %vm708_vm10 = vcmp.eq.f32.partialorder %v707_v2, 8.507059e+37 }
 0x1fb   :  { %4516 = vtanh.f32 %v5240_v32 }
 0x1fe   :  { %v4515_v30 = vpop.eup %4514 }
 0x1ff   :  { %v699_v45 = vmul.f32 %v4515_v30, %v697_v21  ;;  %vm704_vm7 = vweird.f32 %v4515_v30 }
 0x200   :  { %vm705_vm9 = vmor %vm703_vm8, %vm704_vm7 }
 0x201   :  { %v700_v24 = vsub.f32 1.0, %v699_v45  ;;  %v4517_v9 = vpop.eup %4516 }
 0x203   :  { %v701_v49 = vmul.f32 %v4515_v30, %v700_v24 }
 0x205   :  { %v702_v37 = vadd.f32 %v4515_v30, %v701_v49 }
 0x207   :  { %v706_v41 = vsel %vm705_vm9, %v4515_v30, %v702_v37 }
 0x208   :  { %v711_v48 = vsel %vm708_vm10, %v710_v23, %v706_v41 }
 0x209   :  { %v5243_v22 = vmul.f32 %v4517_v9, %v711_v48 }
 0x20b   :  { %4011 = vmatmul.msk.f32.vlgmr.msra.gmra.mxu1 %vm58_vm1, %v5243_v22  ;;  %4017 = vmatmul.msk.f32.vlgmr.msra.gmra.mxu2 %vm58_vm1, %v5243_v22 }
 0x20c   :  { %4023 = vmatmul.msk.f32.vlgmr.msra.gmra.mxu3 %vm58_vm1, %v5243_v22  ;;  %4029 = vmatmul.msk.f32.vlgmr.msrb.gmra.mxu0 %vm58_vm1, %v5243_v22 }
 0x20d   :  { %1053 = vmatpush.msra.mxu2 %v4785_v0  ;;  %1078 = vmatpush.msra.mxu3 %v4790_v1 }
 0x20e   :  { %1103 = vmatpush.msrb.mxu0 %v4850_v12  ;;  %1019 = vmatpush.msra.mxu1 %v5175_v53  ;;  %v4437_v12 = vld [vmem:[%s6913_s7 + $0x1] ss:$0 sm:$0xff] }
 0x20f   :  { %1054 = vmatpush.msra.mxu2 %v4803_v4  ;;  %1079 = vmatpush.msra.mxu3 %v4808_v5  ;;  %v4435_v4 = vld [vmem:[%s6913_s7] ss:$0 sm:$0xff]  ;;  %v4436_v5 = vld [vmem:[%s6913_s7 + $0x3] ss:$0 sm:$0xff] }
 0x210   :  { %1104 = vmatpush.msrb.mxu0 %v4866_v15  ;;  %1020 = vmatpush.msra.mxu1 %v5181_v56 }
 0x211   :  { %1055 = vmatpush.msra.mxu2 %v4820_v7  ;;  %1080 = vmatpush.msra.mxu3 %v4825_v8 }
 0x212   :  { %1105 = vmatpush.msrb.mxu0 %v4875_v16  ;;  %1021 = vmatpush.msra.mxu1 %v5187_v60 }
 0x213   :  { %4030 = vmatmul.msk.f32.vlgmr.msrb.gmra.mxu1 %vm58_vm1, %v5209_v62  ;;  %4035 = vmatmul.msk.f32.vlgmr.msrb.gmra.mxu2 %vm58_vm1, %v5209_v62 }
 0x214   :  { %4040 = vmatmul.msk.f32.vlgmr.msrb.gmra.mxu3 %vm58_vm1, %v5209_v62  ;;  %4045 = vmatmul.msk.f32.vlgmr.msra.gmra.mxu0 %vm58_vm1, %v5209_v62 }
 0x215   :  { %1056 = vmatpush.msra.mxu2 %v4840_v10  ;;  %1081 = vmatpush.msra.mxu3 %v4845_v11 }
 0x216   :  { %1106 = vmatpush.msrb.mxu0 %v4881_v17  ;;  %1022 = vmatpush.msra.mxu1 %v5196_v63 }
 0x218   :  { %1128 = vmatpush.msrb.mxu1 %v5301_v38 }
 0x21a   :  { %1129 = vmatpush.msrb.mxu1 %v5306_v39 }
 0x21b   :  { %4055 = vmatmul.msk.f32.vlgmr.msra.gmra.mxu2 %vm58_vm1, %v5243_v22 }
 0x21c   :  { %4060 = vmatmul.msk.f32.vlgmr.msra.gmra.mxu3 %vm58_vm1, %v5243_v22  ;;  %4065 = vmatmul.msk.f32.vlgmr.msrb.gmra.mxu0 %vm58_vm1, %v5243_v22 }
 0x21d   :  { %1130 = vmatpush.msrb.mxu1 %v5312_v42 }
 0x21f   :  { %1131 = vmatpush.msrb.mxu1 %v5318_v52 }
 0x288   :  { %v746_v0 = vpop.f32.mrf.mxu1 }
 0x289   :  { %v830_v1 = vpop.f32.mrf.mxu0  ;;  %v747_v8 = vadd.f32 %v4435_v4, %v746_v0 }
 0x28a   :  { %v831_v10 = vadd.f32 %v4436_v5, %v830_v1 }
 0x28e   :  { %v774_v7 = vpop.f32.mrf.mxu2 }
 0x28f   :  { %v775_v60 = vadd.f32 %v4437_v12, %v774_v7  ;;  %v802_v29 = vpop.f32.mrf.mxu3 }
 0x290   :  { %v854_v11 = vpop.f32.mrf.mxu1  ;;  %v803_v51 = vadd.f32 %v4438_v36, %v802_v29  ;;  %v5368_v36 = vld [vmem:[%s6917_s5 + $0x38] sm:$0xff] }
 0x291   :  { %v857_v15 = vadd.f32 %v854_v11, %v747_v8  ;;  %v929_v16 = vpop.f32.mrf.mxu0  ;;  %v4051_v11 = vld [vmem:[%s6914_s0 + $0x4] sm:$0x3]  ;;  %1251 = vmatpush.msrb.mxu3 %v5368_v36 }
 0x292   :  { %v932_v17 = vadd.f32 %v929_v16, %v831_v10 }
 0x293   :  { %v4046_v53 = vmul.f32 -1.442695, %v857_v15  ;;  %v4052_v15 = vld [vmem:[%s6915_s1 + $0x4] sm:$0x3] }
 0x294   :  { %v4048_v56 = vmul.f32 -1.442695, %v932_v17 }
 0x295   :  { %4518 = vpow2.f32 %v4046_v53 }
 0x296   :  { %4520 = vpow2.f32 %v4048_v56  ;;  %v879_v63 = vpop.f32.mrf.mxu2 }
 0x297   :  { %v882_v62 = vadd.f32 %v879_v63, %v775_v60  ;;  %v904_v44 = vpop.f32.mrf.mxu3 }
 0x298   :  { %v907_v59 = vadd.f32 %v904_v44, %v803_v51  ;;  %v4054_v51 = vld [vmem:[%s6916_s3 + $0x4] sm:$0x3] }
 0x299   :  { %v4047_v6 = vmul.f32 -1.442695, %v882_v62 }
 0x29b   :  { %v4519_v13 = vpop.eup %4518  ;;  %4522 = vpow2.f32 %v4047_v6 }
 0x29c   :  { %v4521_v27 = vpop.eup %4520  ;;  %v936_v28 = vadd.f32 1.0, %v4519_v13  ;;  %v4439_v13 = vld [vmem:[#allocation6] ss:$0 sm:$0xff] }
 0x29d   :  { %v5292_v31 = vadd.f32 1.0, %v4521_v27 }
 0x29e   :  { %4524 = vrcp.f32 %v936_v28  ;;  %v948_v20 = vand.u32 2147483648, %v936_v28  ;;  %vm942_vm13 = vweird.f32 %v936_v28  ;;  %v946_v50 = vand.u32 2147483647, %v936_v28  ;;  %v1058_v12 = vpop.f32.mrf.mxu2 }
 0x29f   :  { %4526 = vrcp.f32 %v5292_v31  ;;  %v987_v1 = vand.u32 2147483648, %v5292_v31  ;;  %vm981_vm7 = vweird.f32 %v5292_v31  ;;  %v985_v4 = vand.u32 2147483647, %v5292_v31  ;;  %v1083_v16 = vpop.f32.mrf.mxu3 }
 0x2a0   :  { %v949_v30 = vor.u32 1.1754944e-38, %v948_v20  ;;  %vm947_vm3 = vcmp.eq.f32.partialorder %v946_v50, 8.507059e+37  ;;  %v1061_v17 = vadd.f32 %v4051_v11, %v1058_v12  ;;  %v1086_v53 = vadd.f32 %v4052_v15, %v1083_v16  ;;  %v5415_v20 = vld [vmem:[%s6917_s5 + $0x8] sm:$0xff] }
 0x2a1   :  { %v4523_v33 = vpop.eup %4522  ;;  %v988_v7 = vor.u32 1.1754944e-38, %v987_v1  ;;  %vm986_vm9 = vcmp.eq.f32.partialorder %v985_v4, 8.507059e+37  ;;  %v5493_v1 = vld [vmem:[%s6919_s6 + $0x30] sm:$0xff]  ;;  %v5518_v12 = vld [vmem:[%s6919_s6 + $0x8] sm:$0xff] }
 0x2a2   :  { %v955_v34 = vadd.f32 1.0, %v4523_v33  ;;  %v4071_v56 = vmul.f32 -1.442695, %v1061_v17  ;;  %v4072_v60 = vmul.f32 -1.442695, %v1086_v53  ;;  %v5523_v15 = vld [vmem:[%s6919_s6 + $0x28] sm:$0xff] }
 0x2a4   :  { %v4525_v35 = vpop.eup %4524  ;;  %4528 = vrcp.f32 %v955_v34  ;;  %v967_v54 = vand.u32 2147483648, %v955_v34  ;;  %v965_v25 = vand.u32 2147483647, %v955_v34  ;;  %vm961_vm2 = vweird.f32 %v955_v34 }
 0x2a5   :  { %v938_v40 = vmul.f32 %v4525_v35, %v936_v28  ;;  %v4527_v55 = vpop.eup %4526  ;;  %vm943_vm11 = vweird.f32 %v4525_v35  ;;  %4530 = vtanh.f32 %v907_v59  ;;  %v5400_v59 = vld [vmem:[%s6917_s5 + $0x50] sm:$0xff] }
 0x2a6   :  { %v977_v19 = vmul.f32 %v4527_v55, %v5292_v31  ;;  %vm944_vm14 = vmor %vm942_vm13, %vm943_vm11  ;;  %v968_v24 = vor.u32 1.1754944e-38, %v967_v54  ;;  %vm966_vm5 = vcmp.eq.f32.partialorder %v965_v25, 8.507059e+37  ;;  %vm982_vm6 = vweird.f32 %v4527_v55  ;;  %v5427_v54 = vld [vmem:[%s6917_s5 + $0x48] sm:$0xff]  ;;  %v1108_v25 = vpop.f32.mrf.mxu0 }
 0x2a7   :  { %v939_v43 = vsub.f32 1.0, %v938_v40  ;;  %vm983_vm8 = vmor %vm981_vm7, %vm982_vm6  ;;  %v5373_v40 = vld [vmem:[%s6917_s5 + $0x58] sm:$0xff] }
 0x2a8   :  { %v978_v26 = vsub.f32 1.0, %v977_v19  ;;  %1279 = vmatpush.msra.mxu0 %v5373_v40  ;;  %v5410_v19 = vld [vmem:[%s6917_s5 + $0x70] sm:$0xff] }
 0x2a9   :  { %v940_v57 = vmul.f32 %v4525_v35, %v939_v43 }
 0x2aa   :  { %v4529_v58 = vpop.eup %4528  ;;  %v979_v37 = vmul.f32 %v4527_v55, %v978_v26  ;;  %1280 = vmatpush.msra.mxu0 %v5400_v59 }
 0x2ab   :  { %v957_v61 = vmul.f32 %v4529_v58, %v955_v34  ;;  %v941_v18 = vadd.f32 %v4525_v35, %v940_v57  ;;  %vm962_vm15 = vweird.f32 %v4529_v58  ;;  %v4531_v2 = vpop.eup %4530  ;;  %v5390_v57 = vld [vmem:[%s6917_s5 + $0x10] sm:$0xff] }
 0x2ac   :  { %vm963_vm4 = vmor %vm961_vm2, %vm962_vm15  ;;  %v980_v0 = vadd.f32 %v4527_v55, %v979_v37  ;;  %1281 = vmatpush.msra.mxu0 %v5427_v54  ;;  %v5468_v37 = vld [vmem:[%s6919_s6 + $0x38] sm:$0xff] }
 0x2ad   :  { %v958_v21 = vsub.f32 1.0, %v957_v61  ;;  %v945_v14 = vsel %vm944_vm14, %v4525_v35, %v941_v18  ;;  %v5363_v35 = vld [vmem:[%s6917_s5 + $0x18] sm:$0xff]  ;;  %v4053_v61 = vld [vmem:[%s6918_s2 + $0x4] sm:$0x3] }
 0x2ae   :  { %v950_v46 = vsel %vm947_vm3, %v949_v30, %v945_v14  ;;  %v984_v5 = vsel %vm983_vm8, %v4527_v55, %v980_v0  ;;  %1223 = vmatpush.msrb.mxu2 %v5363_v35  ;;  %v5383_v55 = vld [vmem:[%s6917_s5 + $0x78] sm:$0xff]  ;;  %v5437_v14 = vld [vmem:[%s6917_s5] sm:$0xff]  ;;  %v5488_v0 = vld [vmem:[%s6919_s6 + $0x10] sm:$0xff] }
 0x2af   :  { %v959_v3 = vmul.f32 %v4529_v58, %v958_v21  ;;  %v992_v9 = vmul.f32 %v4531_v2, %v950_v46  ;;  %v989_v10 = vsel %vm986_vm9, %v988_v7, %v984_v5  ;;  %v5420_v21 = vld [vmem:[%s6917_s5 + $0x28] sm:$0xff]  ;;  %v5456_v46 = vld [vmem:[%s6917_s5 + $0x60] sm:$0xff]  ;;  %v5463_v2 = vld [vmem:[%s6919_s6 + $0x18] sm:$0xff] }
 0x2b0   :  { %1224 = vmatpush.msrb.mxu2 %v5390_v57  ;;  %v5503_v7 = vld [vmem:[%s6919_s6 + $0x50] sm:$0xff] }
 0x2b1   :  { %v960_v45 = vadd.f32 %v4529_v58, %v959_v3  ;;  %v5432_v3 = vld [vmem:[%s6917_s5 + $0x68] sm:$0xff] }
 0x2b2   :  { %1225 = vmatpush.msrb.mxu2 %v5415_v20 }
 0x2b3   :  { %v964_v49 = vsel %vm963_vm4, %v4529_v58, %v960_v45  ;;  %v5395_v58 = vld [vmem:[%s6917_s5 + $0x30] sm:$0xff]  ;;  %v5446_v45 = vld [vmem:[%s6917_s5 + $0x20] sm:$0xff] }
 0x2b4   :  { %v969_v23 = vsel %vm966_vm5, %v968_v24, %v964_v49  ;;  %1252 = vmatpush.msrb.mxu3 %v5395_v58  ;;  %v5451_v24 = vld [vmem:[%s6917_s5 + $0x40] sm:$0xff]  ;;  %1226 = vmatpush.msrb.mxu2 %v5437_v14 }
 0x2b5   :  { %v991_v41 = vmul.f32 %v969_v23, %v5206_v47  ;;  %v5475_v23 = vld [vmem:[%s6919_s6 + $0x58] sm:$0xff]  ;;  %1282 = vmatpush.msra.mxu0 %v5451_v24 }
 0x2b6   :  { %1253 = vmatpush.msrb.mxu3 %v5420_v21  ;;  %1331 = vmatpush.msra.mxu2 %v5463_v2 }
 0x2b7   :  { %v5324_v48 = vadd.f32 %v992_v9, %v991_v41  ;;  %v5480_v41 = vld [vmem:[%s6919_s6 + $0x78] sm:$0xff]  ;;  %v1111_v9 = vadd.f32 %v4053_v61, %v1108_v25  ;;  %1381 = vmatpush.msrb.mxu0 %v5475_v23 }
 0x2b8   :  { %1254 = vmatpush.msrb.mxu3 %v5446_v45  ;;  %1332 = vmatpush.msra.mxu2 %v5488_v0 }
 0x2b9   :  { %4532 = vtanh.f32 %v5324_v48  ;;  %1382 = vmatpush.msrb.mxu0 %v5503_v7 }
 0x2ba   :  { %4534 = vpow2.f32 %v4071_v56  ;;  %1356 = vmatpush.msra.mxu3 %v5468_v37  ;;  %v5539_v56 = vld [vmem:[%s6919_s6 + $0x48] sm:$0xff]  ;;  %1333 = vmatpush.msra.mxu2 %v5518_v12 }
 0x2bb   :  { %4536 = vpow2.f32 %v4072_v60  ;;  %v5544_v60 = vld [vmem:[%s6919_s6 + $0x68] sm:$0xff]  ;;  %1383 = vmatpush.msrb.mxu0 %v5539_v56 }
 0x2bc   :  { %1357 = vmatpush.msra.mxu3 %v5493_v1 }
 0x2be   :  { %1358 = vmatpush.msra.mxu3 %v5523_v15 }
 0x2bf   :  { %v4533_v8 = vpop.eup %4532 }
 0x2c0   :  { %v5330_v47 = vmul.f32 %v4533_v8, %v989_v10  ;;  %v4535_v63 = vpop.eup %4534  ;;  %v5508_v8 = vld [vmem:[%s6919_s6 + $0x70] sm:$0xff] }
 0x2c1   :  { %v4537_v62 = vpop.eup %4536  ;;  %v5342_v6 = vadd.f32 1.0, %v4535_v63  ;;  %v5602_v63 = vld [vmem:[%s6912_s4 + $0x38] sm:$0xff] }
 0x2c2   :  { %4049 = vmatmul.msk.f32.vlgmr.msra.gmra.mxu1 %vm58_vm1, %v5330_v47 }
 0x2c3   :  { %4538 = vrcp.f32 %v5342_v6  ;;  %1307 = vmatpush.msra.mxu1 %v5383_v55  ;;  %vm1146_vm13 = vweird.f32 %v5342_v6  ;;  %v1152_v10 = vand.u32 2147483648, %v5342_v6  ;;  %v1150_v17 = vand.u32 2147483647, %v5342_v6 }
 0x2c5   :  { %1308 = vmatpush.msra.mxu1 %v5410_v19  ;;  %vm1151_vm3 = vcmp.eq.f32.partialorder %v1150_v17, 8.507059e+37 }
 0x2c7   :  { %1309 = vmatpush.msra.mxu1 %v5432_v3 }
 0x2c9   :  { %v5348_v27 = vpop.eup %4538  ;;  %1310 = vmatpush.msra.mxu1 %v5456_v46 }
 0x2ca   :  { %4070 = vmatmul.msk.f32.vlgmr.msrb.gmra.mxu1 %vm58_vm1, %v5243_v22  ;;  %v5344_v22 = vadd.f32 1.0, %v4537_v62  ;;  %v1142_v33 = vmul.f32 %v5348_v27, %v5342_v6  ;;  %vm1147_vm10 = vweird.f32 %v5348_v27  ;;  %v5557_v62 = vld [vmem:[%s6919_s6] sm:$0xff] }
 0x2cb   :  { %1406 = vmatpush.msrb.mxu1 %v5480_v41  ;;  %vm5527_vm14 = vmor %vm1146_vm13, %vm1147_vm10  ;;  %v5562_v6 = vld [vmem:[%s6919_s6 + $0x20] sm:$0xff]  ;;  %1334 = vmatpush.msra.mxu2 %v5557_v62 }
 0x2cc   :  { %4540 = vrcp.f32 %v5344_v22  ;;  %v1143_v43 = vsub.f32 1.0, %v1142_v33  ;;  %v1171_v11 = vand.u32 2147483648, %v5344_v22  ;;  %vm1165_vm15 = vweird.f32 %v5344_v22  ;;  %1359 = vmatpush.msra.mxu3 %v5562_v6 }
 0x2cd   :  { %v1169_v53 = vand.u32 2147483647, %v5344_v22  ;;  %1407 = vmatpush.msrb.mxu1 %v5508_v8 }
 0x2ce   :  { %v1144_v26 = vmul.f32 %v5348_v27, %v1143_v43 }
 0x2cf   :  { %1408 = vmatpush.msrb.mxu1 %v5544_v60  ;;  %vm1170_vm4 = vcmp.eq.f32.partialorder %v1169_v53, 8.507059e+37  ;;  %v5597_v53 = vld [vmem:[%s6912_s4 + $0x18] sm:$0xff] }
 0x2d0   :  { %v1145_v4 = vadd.f32 %v5348_v27, %v1144_v26 }
 0x2d2   :  { %v5350_v28 = vpop.eup %4540 }
 0x2d3   :  { %v1161_v34 = vmul.f32 %v5350_v28, %v5344_v22  ;;  %vm1166_vm11 = vweird.f32 %v5350_v28  ;;  %v1149_v22 = vsel %vm5527_vm14, %v5348_v27, %v1145_v4  ;;  %v1153_v27 = vor.u32 1.1754944e-38, %v1152_v10 }
 0x2d4   :  { %vm5548_vm2 = vmor %vm1165_vm15, %vm1166_vm11 }
 0x2d5   :  { %v1162_v44 = vsub.f32 1.0, %v1161_v34  ;;  %v1172_v34 = vor.u32 1.1754944e-38, %v1171_v11  ;;  %v1154_v43 = vsel %vm1151_vm3, %v1153_v27, %v1149_v22  ;;  %v5611_v22 = vld [vmem:[%s6912_s4 + $0x58] sm:$0xff]  ;;  %v5632_v27 = vld [vmem:[%s6912_s4 + $0x50] sm:$0xff] }
 0x2d7   :  { %v1163_v30 = vmul.f32 %v5350_v28, %v1162_v44 }
 0x2d9   :  { %v1164_v5 = vadd.f32 %v5350_v28, %v1163_v30 }
 0x33f   :  { %v1024_v29 = vpop.f32.mrf.mxu1 }
 0x340   :  { %v1025_v31 = vadd.f32 %v4439_v13, %v1024_v29  ;;  %v1168_v13 = vsel %vm5548_vm2, %v5350_v28, %v1164_v5  ;;  %v5575_v29 = vld [vmem:[%s6919_s6 + $0x40] sm:$0xff] }
 0x341   :  { %v1173_v44 = vsel %vm1170_vm4, %v1172_v34, %v1168_v13  ;;  %1384 = vmatpush.msrb.mxu0 %v5575_v29  ;;  %v5620_v13 = vld [vmem:[%s6912_s4 + $0x10] sm:$0xff]  ;;  %v5638_v34 = vld [vmem:[%s6912_s4 + $0x8] sm:$0xff] }
 0x342   :  { %4050 = vst.msk [vmem:[%s6922_s10 + $0x2] sm:$0x3] %vm545_vm12, %v1025_v31  ;;  %v5580_v31 = vld [vmem:[%s6919_s6 + $0x60] sm:$0xff] }
 0x343   :  { %1409 = vmatpush.msrb.mxu1 %v5580_v31 }
 0x347   :  { %v1133_v18 = vpop.f32.mrf.mxu1 }
 0x348   :  { %v1136_v50 = vadd.f32 %v4054_v51, %v1133_v18  ;;  %v1195_v18 = vmul.f32 %v1173_v44, %v5240_v32  ;;  %v5659_v44 = vld [vmem:[%s6912_s4] sm:$0xff] }
 0x34a   :  { %v4073_v49 = vmul.f32 -1.442695, %v1136_v50 }
 0x34c   :  { %4542 = vpow2.f32 %v4073_v49 }
 0x34d   :  { %4544 = vtanh.f32 %v1111_v9 }
 0x352   :  { %v4543_v33 = vpop.eup %4542 }
 0x353   :  { %v1179_v28 = vadd.f32 1.0, %v4543_v33  ;;  %v4545_v51 = vpop.eup %4544  ;;  %v5625_v33 = vld [vmem:[%s6912_s4 + $0x30] sm:$0xff] }
 0x354   :  { %v1196_v61 = vmul.f32 %v4545_v51, %v1154_v43  ;;  %v5650_v43 = vld [vmem:[%s6912_s4 + $0x48] sm:$0xff]  ;;  %v5664_v51 = vld [vmem:[%s6912_s4 + $0x20] sm:$0xff] }
 0x355   :  { %4546 = vrcp.f32 %v1179_v28  ;;  %v1191_v49 = vand.u32 2147483648, %v1179_v28  ;;  %v1189_v4 = vand.u32 2147483647, %v1179_v28  ;;  %vm1185_vm6 = vweird.f32 %v1179_v28 }
 0x356   :  { %v5589_v25 = vadd.f32 %v1196_v61, %v1195_v18  ;;  %v5673_v61 = vld [vmem:[%s6912_s4 + $0x40] sm:$0xff] }
 0x357   :  { %v1192_v10 = vor.u32 1.1754944e-38, %v1191_v49  ;;  %vm1190_vm8 = vcmp.eq.f32.partialorder %v1189_v4, 8.507059e+37  ;;  %v4440_v49 = vld [vmem:[%s6913_s7 + $0x2] ss:$0 sm:$0xff] }
 0x358   :  { %4548 = vtanh.f32 %v5589_v25 }
 0x35b   :  { %v4547_v50 = vpop.eup %4546 }
 0x35c   :  { %v1181_v26 = vmul.f32 %v4547_v50, %v1179_v28  ;;  %vm1186_vm5 = vweird.f32 %v4547_v50  ;;  %v5643_v28 = vld [vmem:[%s6912_s4 + $0x28] sm:$0xff] }
 0x35d   :  { %vm1187_vm7 = vmor %vm1185_vm6, %vm1186_vm5 }
 0x35e   :  { %v1182_v30 = vsub.f32 1.0, %v1181_v26  ;;  %v4549_v16 = vpop.eup %4548  ;;  %v5743_v26 = vld [vmem:[%s6920_s8] sm:$0xff] }
 0x360   :  { %v1183_v9 = vmul.f32 %v4547_v50, %v1182_v30 }
 0x362   :  { %v1184_v5 = vadd.f32 %v4547_v50, %v1183_v9 }
 0x364   :  { %v1188_v11 = vsel %vm1187_vm7, %v4547_v50, %v1184_v5 }
 0x365   :  { %v1193_v17 = vsel %vm1190_vm8, %v1192_v10, %v1188_v11 }
 0x366   :  { %v5592_v32 = vmul.f32 %v4549_v16, %v1193_v17 }
 0x368   :  { %4074 = vmatmul.msk.f32.vlgmr.msrb.gmra.mxu2 %vm58_vm1, %v5592_v32  ;;  %4080 = vmatmul.msk.f32.vlgmr.msrb.gmra.mxu3 %vm58_vm1, %v5592_v32 }
 0x369   :  { %4086 = vmatmul.msk.f32.vlgmr.msra.gmra.mxu0 %vm58_vm1, %v5592_v32  ;;  %4092 = vmatmul.msk.f32.vlgmr.msra.gmra.mxu1 %vm58_vm1, %v5592_v32 }
 0x36a   :  { %1535 = vmatpush.msrb.mxu3 %v5597_v53  ;;  %1560 = vmatpush.msra.mxu0 %v5602_v63 }
 0x36b   :  { %1585 = vmatpush.msra.mxu1 %v5611_v22 }
 0x36c   :  { %1536 = vmatpush.msrb.mxu3 %v5620_v13  ;;  %1561 = vmatpush.msra.mxu0 %v5625_v33 }
 0x36d   :  { %1586 = vmatpush.msra.mxu1 %v5632_v27 }
 0x36e   :  { %1537 = vmatpush.msrb.mxu3 %v5638_v34  ;;  %1562 = vmatpush.msra.mxu0 %v5643_v28 }
 0x36f   :  { %1587 = vmatpush.msra.mxu1 %v5650_v43 }
 0x370   :  { %4093 = vmatmul.msk.f32.vlgmr.msra.gmra.mxu2 %vm58_vm1, %v5330_v47  ;;  %4098 = vmatmul.msk.f32.vlgmr.msra.gmra.mxu3 %vm58_vm1, %v5330_v47 }
 0x371   :  { %4103 = vmatmul.msk.f32.vlgmr.msrb.gmra.mxu0 %vm58_vm1, %v5330_v47  ;;  %4108 = vmatmul.msk.f32.vlgmr.msrb.gmra.mxu1 %vm58_vm1, %v5330_v47 }
 0x372   :  { %1538 = vmatpush.msrb.mxu3 %v5659_v44  ;;  %1563 = vmatpush.msra.mxu0 %v5664_v51 }
 0x373   :  { %1588 = vmatpush.msra.mxu1 %v5673_v61 }
 0x374   :  { %1705 = vmatpush.msra.mxu3 %v5363_v35  ;;  %1733 = vmatpush.msrb.mxu0 %v5368_v36  ;;  %v4441_v35 = vld [vmem:[%s6913_s7 + $0x3] ss:$0 sm:$0xff] }
 0x375   :  { %1761 = vmatpush.msrb.mxu1 %v5373_v40 }
 0x376   :  { %1706 = vmatpush.msra.mxu3 %v5390_v57  ;;  %1734 = vmatpush.msrb.mxu0 %v5395_v58  ;;  %v4442_v58 = vld [vmem:[%s6913_s7] ss:$0 sm:$0xff] }
 0x377   :  { %1762 = vmatpush.msrb.mxu1 %v5400_v59  ;;  %v4443_v59 = vld [vmem:[%s6913_s7 + $0x1] ss:$0 sm:$0xff] }
 0x378   :  { %1707 = vmatpush.msra.mxu3 %v5415_v20  ;;  %1735 = vmatpush.msrb.mxu0 %v5420_v21 }
 0x379   :  { %4118 = vmatmul.msk.f32.vlgmr.msrb.gmra.mxu3 %vm58_vm1, %v5592_v32  ;;  %4123 = vmatmul.msk.f32.vlgmr.msra.gmra.mxu0 %vm58_vm1, %v5592_v32 }
 0x37a   :  { %4128 = vmatmul.msk.f32.vlgmr.msra.gmra.mxu1 %vm58_vm1, %v5592_v32  ;;  %1708 = vmatpush.msra.mxu3 %v5437_v14 }
 0x37b   :  { %1763 = vmatpush.msrb.mxu1 %v5427_v54  ;;  %1736 = vmatpush.msrb.mxu0 %v5446_v45 }
 0x37c   :  { %1813 = vmatpush.msrb.mxu3 %v5463_v2 }
 0x37d   :  { %1764 = vmatpush.msrb.mxu1 %v5451_v24  ;;  %1838 = vmatpush.msra.mxu0 %v5468_v37 }
 0x37e   :  { %1814 = vmatpush.msrb.mxu3 %v5488_v0 }
 0x37f   :  { %1863 = vmatpush.msra.mxu1 %v5475_v23  ;;  %1839 = vmatpush.msra.mxu0 %v5493_v1 }
 0x380   :  { %1815 = vmatpush.msrb.mxu3 %v5518_v12 }
 0x381   :  { %1864 = vmatpush.msra.mxu1 %v5503_v7  ;;  %1840 = vmatpush.msra.mxu0 %v5523_v15  ;;  %v5724_v15 = vld [vmem:[%s6920_s8 + $0x18] sm:$0xff] }
 0x382   :  { %1816 = vmatpush.msrb.mxu3 %v5557_v62  ;;  %1501 = vmatpush.msrb.mxu2 %v5724_v15  ;;  %v5732_v62 = vld [vmem:[%s6920_s8 + $0x10] sm:$0xff] }
 0x383   :  { %1865 = vmatpush.msra.mxu1 %v5539_v56  ;;  %1841 = vmatpush.msra.mxu0 %v5562_v6 }
 0x384   :  { %1502 = vmatpush.msrb.mxu2 %v5732_v62 }
 0x385   :  { %1866 = vmatpush.msra.mxu1 %v5575_v29  ;;  %v5738_v29 = vld [vmem:[%s6920_s8 + $0x8] sm:$0xff] }
 0x386   :  { %1503 = vmatpush.msrb.mxu2 %v5738_v29 }
 0x388   :  { %1504 = vmatpush.msrb.mxu2 %v5743_v26 }
 0x38a   :  { %1610 = vmatpush.msra.mxu2 %v5301_v38 }
 0x38c   :  { %1611 = vmatpush.msra.mxu2 %v5306_v39 }
 0x38e   :  { %1612 = vmatpush.msra.mxu2 %v5312_v42 }
 0x390   :  { %1613 = vmatpush.msra.mxu2 %v5318_v52 }
 0x3e6   :  { %v1312_v47 = vpop.f32.mrf.mxu1  ;;  %v1284_v12 = vpop.f32.mrf.mxu0 }
 0x3e7   :  { %v1313_v57 = vadd.f32 %v4441_v35, %v1312_v47  ;;  %v1285_v4 = vadd.f32 %v4440_v49, %v1284_v12 }
 0x3eb   :  { %v1228_v36 = vpop.f32.mrf.mxu2  ;;  %v1256_v40 = vpop.f32.mrf.mxu3 }
 0x3ec   :  { %v1229_v14 = vadd.f32 %v4442_v58, %v1228_v36  ;;  %v1257_v45 = vadd.f32 %v4443_v59, %v1256_v40 }
 0x3ee   :  { %v1411_v20 = vpop.f32.mrf.mxu1  ;;  %v1386_v9 = vpop.f32.mrf.mxu0 }
 0x3ef   :  { %v1414_v21 = vadd.f32 %v1411_v20, %v1313_v57  ;;  %v1389_v11 = vadd.f32 %v1386_v9, %v1285_v4 }
 0x3f1   :  { %v4111_v54 = vmul.f32 -1.442695, %v1414_v21 }
 0x3f3   :  { %4550 = vpow2.f32 %v4111_v54  ;;  %v1336_v24 = vpop.f32.mrf.mxu2  ;;  %v1361_v2 = vpop.f32.mrf.mxu3 }
 0x3f4   :  { %v1339_v37 = vadd.f32 %v1336_v24, %v1229_v14  ;;  %v1364_v23 = vadd.f32 %v1361_v2, %v1257_v45 }
 0x3f6   :  { %v4109_v0 = vmul.f32 -1.442695, %v1339_v37  ;;  %v4110_v1 = vmul.f32 -1.442695, %v1364_v23 }
 0x3f8   :  { %4552 = vpow2.f32 %v4109_v0 }
 0x3f9   :  { %v4551_v7 = vpop.eup %4550  ;;  %4554 = vpow2.f32 %v4110_v1 }
 0x3fa   :  { %v5726_v56 = vadd.f32 1.0, %v4551_v7 }
 0x3fc   :  { %4556 = vrcp.f32 %v5726_v56  ;;  %vm1463_vm5 = vweird.f32 %v5726_v56 }
 0x3fe   :  { %v4553_v6 = vpop.eup %4552 }
 0x3ff   :  { %v4555_v18 = vpop.eup %4554  ;;  %v1418_v50 = vadd.f32 1.0, %v4553_v6 }
 0x400   :  { %v1437_v30 = vadd.f32 1.0, %v4555_v18  ;;  %v1469_v18 = vand.u32 2147483648, %v5726_v56 }
 0x401   :  { %4558 = vrcp.f32 %v1418_v50  ;;  %v1430_v40 = vand.u32 2147483648, %v1418_v50  ;;  %v1428_v58 = vand.u32 2147483647, %v1418_v50  ;;  %vm1424_vm11 = vweird.f32 %v1418_v50 }
 0x402   :  { %4560 = vrcp.f32 %v1437_v30  ;;  %v4557_v5 = vpop.eup %4556  ;;  %v1449_v39 = vand.u32 2147483648, %v1437_v30  ;;  %v1447_v20 = vand.u32 2147483647, %v1437_v30  ;;  %vm1443_vm14 = vweird.f32 %v1437_v30 }
 0x403   :  { %v1459_v35 = vmul.f32 %v4557_v5, %v5726_v56  ;;  %4562 = vtanh.f32 %v1389_v11  ;;  %v1431_v54 = vor.u32 1.1754944e-38, %v1430_v40  ;;  %vm1429_vm15 = vcmp.eq.f32.partialorder %v1428_v58, 8.507059e+37  ;;  %v4444_v11 = vld [vmem:[#allocation6] ss:$0 sm:$0xff] }
 0x404   :  { %v1450_v45 = vor.u32 1.1754944e-38, %v1449_v39  ;;  %vm1448_vm3 = vcmp.eq.f32.partialorder %v1447_v20, 8.507059e+37  ;;  %vm1464_vm4 = vweird.f32 %v4557_v5  ;;  %v1470_v49 = vor.u32 1.1754944e-38, %v1469_v18  ;;  %v4116_v20 = vld [vmem:[%s6918_s2 + $0x6] sm:$0x3] }
 0x405   :  { %v1460_v21 = vsub.f32 1.0, %v1459_v35  ;;  %vm1465_vm6 = vmor %vm1463_vm5, %vm1464_vm4 }
 0x407   :  { %v4559_v10 = vpop.eup %4558  ;;  %v1461_v23 = vmul.f32 %v4557_v5, %v1460_v21  ;;  %v1590_v21 = vpop.f32.mrf.mxu1 }
 0x408   :  { %v4561_v16 = vpop.eup %4560  ;;  %v1420_v17 = vmul.f32 %v4559_v10, %v1418_v50  ;;  %vm1425_vm9 = vweird.f32 %v4559_v10  ;;  %v1467_v50 = vand.u32 2147483647, %v5726_v56 }
 0x409   :  { %v1439_v47 = vmul.f32 %v4561_v16, %v1437_v30  ;;  %vm1444_vm10 = vweird.f32 %v4561_v16  ;;  %vm1426_vm13 = vmor %vm1424_vm11, %vm1425_vm9  ;;  %v4563_v24 = vpop.eup %4562  ;;  %v1462_v6 = vadd.f32 %v4557_v5, %v1461_v23 }
 0x40a   :  { %v1421_v36 = vsub.f32 1.0, %v1420_v17  ;;  %vm1445_vm2 = vmor %vm1443_vm14, %vm1444_vm10  ;;  %vm1468_vm7 = vcmp.eq.f32.partialorder %v1467_v50, 8.507059e+37 }
 0x40b   :  { %v1440_v38 = vsub.f32 1.0, %v1439_v47  ;;  %v1466_v30 = vsel %vm1465_vm6, %v4557_v5, %v1462_v6 }
 0x40c   :  { %v1422_v57 = vmul.f32 %v4559_v10, %v1421_v36  ;;  %v1471_v4 = vsel %vm1468_vm7, %v1470_v49, %v1466_v30 }
 0x40d   :  { %v1441_v59 = vmul.f32 %v4561_v16, %v1440_v38 }
 0x40e   :  { %v1423_v42 = vadd.f32 %v4559_v10, %v1422_v57  ;;  %v4117_v57 = vld [vmem:[%s6916_s3 + $0x6] sm:$0x3] }
 0x40f   :  { %v1442_v14 = vadd.f32 %v4561_v16, %v1441_v59 }
 0x410   :  { %v1427_v52 = vsel %vm1426_vm13, %v4559_v10, %v1423_v42 }
 0x411   :  { %v1432_v2 = vsel %vm1429_vm15, %v1431_v54, %v1427_v52  ;;  %v1446_v37 = vsel %vm1445_vm2, %v4561_v16, %v1442_v14  ;;  %v1593_v52 = vadd.f32 %v4116_v20, %v1590_v21  ;;  %v4446_v21 = vld [vmem:[%s6913_s7 + $0x2] ss:$0 sm:$0xff] }
 0x412   :  { %v1474_v0 = vmul.f32 %v4563_v24, %v1432_v2  ;;  %v1451_v1 = vsel %vm1448_vm3, %v1450_v45, %v1446_v37 }
 0x413   :  { %v1473_v7 = vmul.f32 %v1451_v1, %v5324_v48  ;;  %v4114_v48 = vld [vmem:[%s6914_s0 + $0x6] sm:$0x3] }
 0x415   :  { %v5757_v12 = vadd.f32 %v1474_v0, %v1473_v7 }
 0x417   :  { %4564 = vtanh.f32 %v5757_v12 }
 0x41d   :  { %v4565_v9 = vpop.eup %4564 }
 0x41e   :  { %v5763_v10 = vmul.f32 %v4565_v9, %v1471_v4 }
 0x420   :  { %4112 = vmatmul.msk.f32.vlgmr.msrb.gmra.mxu2 %vm58_vm1, %v5763_v10 }
 0x421   :  { %1789 = vmatpush.msrb.mxu2 %v5383_v55  ;;  %v1540_v55 = vpop.f32.mrf.mxu3 }
 0x423   :  { %1790 = vmatpush.msrb.mxu2 %v5410_v19  ;;  %v4115_v19 = vld [vmem:[%s6915_s1 + $0x6] sm:$0x3] }
 0x425   :  { %1791 = vmatpush.msrb.mxu2 %v5432_v3  ;;  %v1565_v3 = vpop.f32.mrf.mxu0 }
 0x427   :  { %1792 = vmatpush.msrb.mxu2 %v5456_v46  ;;  %v1543_v46 = vadd.f32 %v4114_v48, %v1540_v55 }
 0x428   :  { %4133 = vmatmul.msk.f32.vlgmr.msra.gmra.mxu2 %vm58_vm1, %v5592_v32  ;;  %v1568_v32 = vadd.f32 %v4115_v19, %v1565_v3 }
 0x429   :  { %1888 = vmatpush.msra.mxu2 %v5480_v41  ;;  %v4134_v56 = vmul.f32 -1.442695, %v1543_v46 }
 0x42a   :  { %v4135_v41 = vmul.f32 -1.442695, %v1568_v32 }
 0x42b   :  { %1889 = vmatpush.msra.mxu2 %v5508_v8  ;;  %4566 = vpow2.f32 %v4134_v56 }
 0x42c   :  { %4568 = vpow2.f32 %v4135_v41 }
 0x42d   :  { %1890 = vmatpush.msra.mxu2 %v5544_v60 }
 0x42f   :  { %1891 = vmatpush.msra.mxu2 %v5580_v31 }
 0x431   :  { %v4567_v8 = vpop.eup %4566 }
 0x432   :  { %v4569_v60 = vpop.eup %4568  ;;  %v1622_v5 = vadd.f32 1.0, %v4567_v8 }
 0x433   :  { %v1641_v31 = vadd.f32 1.0, %v4569_v60 }
 0x434   :  { %4570 = vrcp.f32 %v1622_v5  ;;  %v1634_v24 = vand.u32 2147483648, %v1622_v5  ;;  %vm1628_vm10 = vweird.f32 %v1622_v5  ;;  %v1632_v37 = vand.u32 2147483647, %v1622_v5 }
 0x435   :  { %4572 = vrcp.f32 %v1641_v31  ;;  %v1653_v23 = vand.u32 2147483648, %v1641_v31  ;;  %vm1647_vm13 = vweird.f32 %v1641_v31  ;;  %v1651_v0 = vand.u32 2147483647, %v1641_v31 }
 0x436   :  { %v1635_v6 = vor.u32 1.1754944e-38, %v1634_v24  ;;  %vm1633_vm15 = vcmp.eq.f32.partialorder %v1632_v37, 8.507059e+37 }
 0x437   :  { %v1654_v30 = vor.u32 1.1754944e-38, %v1653_v23  ;;  %vm1652_vm2 = vcmp.eq.f32.partialorder %v1651_v0, 8.507059e+37 }
 0x43a   :  { %v4571_v16 = vpop.eup %4570 }
 0x43b   :  { %v4573_v47 = vpop.eup %4572  ;;  %v1624_v36 = vmul.f32 %v4571_v16, %v1622_v5  ;;  %vm1629_vm8 = vweird.f32 %v4571_v16 }
 0x43c   :  { %v1643_v40 = vmul.f32 %v4573_v47, %v1641_v31  ;;  %vm1648_vm9 = vweird.f32 %v4573_v47  ;;  %vm1630_vm11 = vmor %vm1628_vm10, %vm1629_vm8 }
 0x43d   :  { %v1625_v38 = vsub.f32 1.0, %v1624_v36  ;;  %vm1649_vm14 = vmor %vm1647_vm13, %vm1648_vm9 }
 0x43e   :  { %v1644_v58 = vsub.f32 1.0, %v1643_v40 }
 0x43f   :  { %v1626_v42 = vmul.f32 %v4571_v16, %v1625_v38 }
 0x440   :  { %v1645_v14 = vmul.f32 %v4573_v47, %v1644_v58  ;;  %v5849_v58 = vld [vmem:[%s6912_s4 + $0x78] sm:$0xff] }
 0x441   :  { %v1627_v45 = vadd.f32 %v4571_v16, %v1626_v42  ;;  %v5863_v42 = vld [vmem:[%s6912_s4 + $0x68] sm:$0xff] }
 0x442   :  { %v1646_v2 = vadd.f32 %v4573_v47, %v1645_v14  ;;  %v5869_v14 = vld [vmem:[%s6912_s4 + $0x60] sm:$0xff] }
 0x443   :  { %v1631_v1 = vsel %vm1630_vm11, %v4571_v16, %v1627_v45 }
 0x444   :  { %v1650_v18 = vsel %vm1649_vm14, %v4573_v47, %v1646_v2  ;;  %v1636_v49 = vsel %vm1633_vm15, %v1635_v6, %v1631_v1 }
 0x445   :  { %v1655_v4 = vsel %vm1652_vm2, %v1654_v30, %v1650_v18 }
 0x446   :  { %v1677_v55 = vmul.f32 %v1655_v4, %v5589_v25 }
 0x4a3   :  { %v1506_v17 = vpop.f32.mrf.mxu2 }
 0x4a4   :  { %v1507_v35 = vadd.f32 %v4444_v11, %v1506_v17 }
 0x4a6   :  { %4113 = vst.msk [vmem:[%s6922_s10 + $0x4] sm:$0x3] %vm545_vm12, %v1507_v35 }
 0x4ab   :  { %v1615_v39 = vpop.f32.mrf.mxu2 }
 0x4ac   :  { %v1618_v59 = vadd.f32 %v4117_v57, %v1615_v39  ;;  %v5854_v39 = vld [vmem:[%s6912_s4 + $0x70] sm:$0xff] }
 0x4ae   :  { %v4136_v54 = vmul.f32 -1.442695, %v1618_v59 }
 0x4b0   :  { %4574 = vpow2.f32 %v4136_v54 }
 0x4b1   :  { %4576 = vtanh.f32 %v1593_v52 }
 0x4b6   :  { %v4575_v7 = vpop.eup %4574 }
 0x4b7   :  { %v1661_v50 = vadd.f32 1.0, %v4575_v7  ;;  %v4577_v9 = vpop.eup %4576 }
 0x4b8   :  { %v1678_v48 = vmul.f32 %v4577_v9, %v1636_v49 }
 0x4b9   :  { %4578 = vrcp.f32 %v1661_v50  ;;  %v1673_v56 = vand.u32 2147483648, %v1661_v50  ;;  %v1671_v8 = vand.u32 2147483647, %v1661_v50  ;;  %vm1667_vm4 = vweird.f32 %v1661_v50 }
 0x4ba   :  { %v5794_v3 = vadd.f32 %v1678_v48, %v1677_v55 }
 0x4bb   :  { %v1674_v5 = vor.u32 1.1754944e-38, %v1673_v56  ;;  %vm1672_vm6 = vcmp.eq.f32.partialorder %v1671_v8, 8.507059e+37 }
 0x4bc   :  { %4580 = vtanh.f32 %v5794_v3 }
 0x4bf   :  { %v4579_v19 = vpop.eup %4578 }
 0x4c0   :  { %v1663_v46 = vmul.f32 %v4579_v19, %v1661_v50  ;;  %vm1668_vm3 = vweird.f32 %v4579_v19 }
 0x4c1   :  { %vm1669_vm5 = vmor %vm1667_vm4, %vm1668_vm3 }
 0x4c2   :  { %v1664_v32 = vsub.f32 1.0, %v1663_v46  ;;  %v4581_v11 = vpop.eup %4580 }
 0x4c4   :  { %v1665_v41 = vmul.f32 %v4579_v19, %v1664_v32 }
 0x4c6   :  { %v1666_v60 = vadd.f32 %v4579_v19, %v1665_v41 }
 0x4c8   :  { %v1670_v31 = vsel %vm1669_vm5, %v4579_v19, %v1666_v60 }
 0x4c9   :  { %v1675_v16 = vsel %vm1672_vm6, %v1674_v5, %v1670_v31 }
 0x4ca   :  { %v5797_v25 = vmul.f32 %v4581_v11, %v1675_v16 }
 0x4cc   :  { %4137 = vmatmul.msk.f32.vlgmr.msra.gmra.mxu3 %vm58_vm1, %v5797_v25  ;;  %4143 = vmatmul.msk.f32.vlgmr.msrb.gmra.mxu0 %vm58_vm1, %v5797_v25 }
 0x4cd   :  { %4149 = vmatmul.msk.f32.vlgmr.msrb.gmra.mxu1 %vm58_vm1, %v5797_v25  ;;  %4155 = vmatmul.msk.f32.vlgmr.msrb.gmra.mxu2 %vm58_vm1, %v5797_v25 }
 0x4ce   :  { %2017 = vmatpush.msrb.mxu0 %v5597_v53  ;;  %2042 = vmatpush.msrb.mxu1 %v5602_v63  ;;  %v4445_v63 = vld [vmem:[%s6913_s7 + $0x1] ss:$0 sm:$0xff] }
 0x4cf   :  { %2067 = vmatpush.msrb.mxu2 %v5611_v22  ;;  %1983 = vmatpush.msra.mxu3 %v5724_v15 }
 0x4d0   :  { %2018 = vmatpush.msrb.mxu0 %v5620_v13  ;;  %2043 = vmatpush.msrb.mxu1 %v5625_v33 }
 0x4d1   :  { %2068 = vmatpush.msrb.mxu2 %v5632_v27  ;;  %1984 = vmatpush.msra.mxu3 %v5732_v62 }
 0x4d2   :  { %2019 = vmatpush.msrb.mxu0 %v5638_v34  ;;  %2044 = vmatpush.msrb.mxu1 %v5643_v28  ;;  %v4447_v34 = vld [vmem:[%s6913_s7] ss:$0 sm:$0xff] }
 0x4d3   :  { %2069 = vmatpush.msrb.mxu2 %v5650_v43  ;;  %1985 = vmatpush.msra.mxu3 %v5738_v29  ;;  %v4448_v43 = vld [vmem:[%s6913_s7 + $0x3] ss:$0 sm:$0xff] }
 0x4d4   :  { %4156 = vmatmul.msk.f32.vlgmr.msrb.gmra.mxu3 %vm58_vm1, %v5763_v10  ;;  %4161 = vmatmul.msk.f32.vlgmr.msra.gmra.mxu0 %vm58_vm1, %v5763_v10 }
 0x4d5   :  { %4166 = vmatmul.msk.f32.vlgmr.msra.gmra.mxu1 %vm58_vm1, %v5763_v10  ;;  %4171 = vmatmul.msk.f32.vlgmr.msra.gmra.mxu2 %vm58_vm1, %v5763_v10 }
 0x4d6   :  { %2020 = vmatpush.msrb.mxu0 %v5659_v44  ;;  %2045 = vmatpush.msrb.mxu1 %v5664_v51 }
 0x4d7   :  { %2070 = vmatpush.msrb.mxu2 %v5673_v61  ;;  %1986 = vmatpush.msra.mxu3 %v5743_v26 }
 0x4d9   :  { %2092 = vmatpush.msrb.mxu3 %v5849_v58 }
 0x4db   :  { %2093 = vmatpush.msrb.mxu3 %v5854_v39 }
 0x4dc   :  { %4181 = vmatmul.msk.f32.vlgmr.msrb.gmra.mxu0 %vm58_vm1, %v5797_v25 }
 0x4dd   :  { %4186 = vmatmul.msk.f32.vlgmr.msrb.gmra.mxu1 %vm58_vm1, %v5797_v25  ;;  %4191 = vmatmul.msk.f32.vlgmr.msrb.gmra.mxu2 %vm58_vm1, %v5797_v25 }
 0x4de   :  { %2094 = vmatpush.msrb.mxu3 %v5863_v42 }
 0x4e0   :  { %2095 = vmatpush.msrb.mxu3 %v5869_v14 }
 0x549   :  { %v1738_v53 = vpop.f32.mrf.mxu0 }
 0x54a   :  { %v1739_v13 = vadd.f32 %v4445_v63, %v1738_v53  ;;  %v1766_v36 = vpop.f32.mrf.mxu1 }
 0x54b   :  { %v1767_v24 = vadd.f32 %v4446_v21, %v1766_v36  ;;  %v5915_v21 = vld [vmem:[%s6917_s5 + $0x38] sm:$0xff] }
 0x54c   :  { %2215 = vmatpush.msra.mxu1 %v5915_v21 }
 0x54f   :  { %v1710_v22 = vpop.f32.mrf.mxu3 }
 0x550   :  { %v1794_v33 = vpop.f32.mrf.mxu2  ;;  %v1711_v51 = vadd.f32 %v4447_v34, %v1710_v22 }
 0x551   :  { %v1843_v27 = vpop.f32.mrf.mxu0  ;;  %v1795_v61 = vadd.f32 %v4448_v43, %v1794_v33 }
 0x552   :  { %v1846_v28 = vadd.f32 %v1843_v27, %v1739_v13  ;;  %v1868_v45 = vpop.f32.mrf.mxu1 }
 0x553   :  { %v1871_v23 = vadd.f32 %v1868_v45, %v1767_v24  ;;  %v4180_v24 = vld [vmem:[%s6916_s3 + $0x8] sm:$0x3] }
 0x554   :  { %v4173_v44 = vmul.f32 -1.442695, %v1846_v28 }
 0x556   :  { %4582 = vpow2.f32 %v4173_v44  ;;  %v4178_v44 = vld [vmem:[%s6915_s1 + $0x8] sm:$0x3] }
 0x557   :  { %v1818_v15 = vpop.f32.mrf.mxu3 }
 0x558   :  { %v1821_v62 = vadd.f32 %v1818_v15, %v1711_v51  ;;  %v1893_v29 = vpop.f32.mrf.mxu2 }
 0x559   :  { %v1896_v26 = vadd.f32 %v1893_v29, %v1795_v61  ;;  %v2022_v43 = vpop.f32.mrf.mxu0 }
 0x55a   :  { %v4172_v10 = vmul.f32 -1.442695, %v1821_v62  ;;  %v2047_v51 = vpop.f32.mrf.mxu1 }
 0x55b   :  { %v4174_v17 = vmul.f32 -1.442695, %v1896_v26  ;;  %v2050_v15 = vadd.f32 %v4178_v44, %v2047_v51  ;;  %v6070_v44 = vld [vmem:[%s6919_s6 + $0x28] sm:$0xff] }
 0x55c   :  { %v4583_v47 = vpop.eup %4582  ;;  %4584 = vpow2.f32 %v4172_v10 }
 0x55d   :  { %v1919_v35 = vadd.f32 1.0, %v4583_v47  ;;  %4586 = vpow2.f32 %v4174_v17  ;;  %v4198_v29 = vmul.f32 -1.442695, %v2050_v15  ;;  %v4449_v47 = vld [vmem:[#allocation6] ss:$0 sm:$0xff] }
 0x55f   :  { %4588 = vrcp.f32 %v1919_v35  ;;  %v1931_v6 = vand.u32 2147483648, %v1919_v35  ;;  %vm1925_vm8 = vweird.f32 %v1919_v35  ;;  %v1929_v50 = vand.u32 2147483647, %v1919_v35 }
 0x561   :  { %v1932_v55 = vor.u32 1.1754944e-38, %v1931_v6  ;;  %vm1930_vm11 = vcmp.eq.f32.partialorder %v1929_v50, 8.507059e+37  ;;  %v5957_v6 = vld [vmem:[%s6917_s5 + $0x70] sm:$0xff]  ;;  %v5967_v50 = vld [vmem:[%s6917_s5 + $0x28] sm:$0xff] }
 0x562   :  { %v4585_v40 = vpop.eup %4584 }
 0x563   :  { %v4587_v38 = vpop.eup %4586  ;;  %v1900_v57 = vadd.f32 1.0, %v4585_v40 }
 0x564   :  { %v1939_v59 = vadd.f32 1.0, %v4587_v38 }
 0x565   :  { %v4589_v20 = vpop.eup %4588  ;;  %4590 = vrcp.f32 %v1900_v57  ;;  %v1912_v49 = vand.u32 2147483648, %v1900_v57  ;;  %v1910_v48 = vand.u32 2147483647, %v1900_v57  ;;  %vm1906_vm13 = vweird.f32 %v1900_v57 }
 0x566   :  { %v1921_v54 = vmul.f32 %v4589_v20, %v1919_v35  ;;  %4592 = vrcp.f32 %v1939_v59  ;;  %vm1926_vm7 = vweird.f32 %v4589_v20  ;;  %v1951_v63 = vand.u32 2147483648, %v1939_v59 }
 0x567   :  { %vm1927_vm9 = vmor %vm1925_vm8, %vm1926_vm7  ;;  %4594 = vtanh.f32 %v1871_v23  ;;  %v1913_v56 = vor.u32 1.1754944e-38, %v1912_v49  ;;  %vm1911_vm15 = vcmp.eq.f32.partialorder %v1910_v48, 8.507059e+37  ;;  %vm1945_vm3 = vweird.f32 %v1939_v59  ;;  %v5942_v23 = vld [vmem:[%s6917_s5 + $0x30] sm:$0xff]  ;;  %v5974_v49 = vld [vmem:[%s6917_s5 + $0x48] sm:$0xff] }
 0x568   :  { %v1922_v52 = vsub.f32 1.0, %v1921_v54  ;;  %v1949_v22 = vand.u32 2147483647, %v1939_v59  ;;  %v1952_v33 = vor.u32 1.1754944e-38, %v1951_v63  ;;  %v5920_v54 = vld [vmem:[%s6917_s5 + $0x58] sm:$0xff]  ;;  %2216 = vmatpush.msra.mxu1 %v5942_v23  ;;  %v6040_v63 = vld [vmem:[%s6919_s6 + $0x30] sm:$0xff] }
 0x569   :  { %2243 = vmatpush.msra.mxu2 %v5920_v54 }
 0x56a   :  { %v1923_v2 = vmul.f32 %v4589_v20, %v1922_v52  ;;  %vm1950_vm5 = vcmp.eq.f32.partialorder %v1949_v22, 8.507059e+37  ;;  %2217 = vmatpush.msra.mxu1 %v5967_v50 }
 0x56b   :  { %v4591_v37 = vpop.eup %4590 }
 0x56c   :  { %v4593_v0 = vpop.eup %4592  ;;  %v1924_v1 = vadd.f32 %v4589_v20, %v1923_v2  ;;  %v1902_v7 = vmul.f32 %v4591_v37, %v1900_v57  ;;  %vm1907_vm10 = vweird.f32 %v4591_v37  ;;  %v5930_v2 = vld [vmem:[%s6917_s5 + $0x78] sm:$0xff] }
 0x56d   :  { %v1941_v18 = vmul.f32 %v4593_v0, %v1939_v59  ;;  %vm1908_vm14 = vmor %vm1906_vm13, %vm1907_vm10  ;;  %v4595_v8 = vpop.eup %4594  ;;  %vm1946_vm2 = vweird.f32 %v4593_v0 }
 0x56e   :  { %v1903_v30 = vsub.f32 1.0, %v1902_v7  ;;  %v1928_v9 = vsel %vm1927_vm9, %v4589_v20, %v1924_v1  ;;  %vm1947_vm4 = vmor %vm1945_vm3, %vm1946_vm2  ;;  %v5910_v20 = vld [vmem:[%s6917_s5 + $0x18] sm:$0xff]  ;;  %v4179_v1 = vld [vmem:[%s6918_s2 + $0x8] sm:$0x3] }
 0x56f   :  { %v1942_v19 = vsub.f32 1.0, %v1941_v18  ;;  %v1933_v32 = vsel %vm1930_vm11, %v1932_v55, %v1928_v9  ;;  %2187 = vmatpush.msra.mxu0 %v5910_v20  ;;  %v5962_v18 = vld [vmem:[%s6917_s5 + $0x8] sm:$0xff]  ;;  %v2072_v55 = vpop.f32.mrf.mxu2 }
 0x570   :  { %v1904_v4 = vmul.f32 %v4591_v37, %v1903_v30  ;;  %v1955_v31 = vmul.f32 %v1933_v32, %v5757_v12  ;;  %v4177_v12 = vld [vmem:[%s6914_s0 + $0x8] sm:$0x3]  ;;  %v5998_v32 = vld [vmem:[%s6917_s5 + $0x40] sm:$0xff] }
 0x571   :  { %v1943_v5 = vmul.f32 %v4593_v0, %v1942_v19  ;;  %v2025_v61 = vadd.f32 %v4177_v12, %v2022_v43  ;;  %v5979_v9 = vld [vmem:[%s6917_s5 + $0x68] sm:$0xff] }
 0x572   :  { %v1905_v46 = vadd.f32 %v4591_v37, %v1904_v4  ;;  %v5984_v4 = vld [vmem:[%s6917_s5] sm:$0xff]  ;;  %v6065_v43 = vld [vmem:[%s6919_s6 + $0x8] sm:$0xff] }
 0x573   :  { %v1944_v53 = vadd.f32 %v4593_v0, %v1943_v5  ;;  %v4197_v62 = vmul.f32 -1.442695, %v2025_v61  ;;  %v6022_v5 = vld [vmem:[%s6919_s6 + $0x58] sm:$0xff] }
 0x574   :  { %v1909_v41 = vsel %vm1908_vm14, %v4591_v37, %v1905_v46  ;;  %v5937_v37 = vld [vmem:[%s6917_s5 + $0x10] sm:$0xff]  ;;  %v5993_v46 = vld [vmem:[%s6917_s5 + $0x20] sm:$0xff] }
 0x575   :  { %v1914_v60 = vsel %vm1911_vm15, %v1913_v56, %v1909_v41  ;;  %v1948_v13 = vsel %vm1947_vm4, %v4593_v0, %v1944_v53  ;;  %v5947_v0 = vld [vmem:[%s6917_s5 + $0x50] sm:$0xff]  ;;  %2188 = vmatpush.msra.mxu0 %v5937_v37  ;;  %v6003_v56 = vld [vmem:[%s6917_s5 + $0x60] sm:$0xff]  ;;  %2218 = vmatpush.msra.mxu1 %v5993_v46 }
 0x576   :  { %v1956_v11 = vmul.f32 %v4595_v8, %v1914_v60  ;;  %v1953_v34 = vsel %vm1950_vm5, %v1952_v33, %v1948_v13  ;;  %2244 = vmatpush.msra.mxu2 %v5947_v0  ;;  %v6010_v8 = vld [vmem:[%s6919_s6 + $0x18] sm:$0xff]  ;;  %v6035_v53 = vld [vmem:[%s6919_s6 + $0x10] sm:$0xff] }
 0x577   :  { %2189 = vmatpush.msra.mxu0 %v5962_v18  ;;  %v6015_v60 = vld [vmem:[%s6919_s6 + $0x38] sm:$0xff]  ;;  %v6050_v33 = vld [vmem:[%s6919_s6 + $0x50] sm:$0xff] }
 0x578   :  { %v5874_v16 = vadd.f32 %v1956_v11, %v1955_v31  ;;  %2245 = vmatpush.msra.mxu2 %v5974_v49  ;;  %v6027_v31 = vld [vmem:[%s6919_s6 + $0x78] sm:$0xff]  ;;  %v2075_v11 = vadd.f32 %v4179_v1, %v2072_v55  ;;  %2320 = vmatpush.msrb.mxu1 %v6015_v60 }
 0x579   :  { %2190 = vmatpush.msra.mxu0 %v5984_v4 }
 0x57a   :  { %4596 = vtanh.f32 %v5874_v16  ;;  %2246 = vmatpush.msra.mxu2 %v5998_v32  ;;  %2321 = vmatpush.msrb.mxu1 %v6040_v63 }
 0x57b   :  { %4598 = vpow2.f32 %v4197_v62  ;;  %2295 = vmatpush.msrb.mxu0 %v6010_v8  ;;  %v6086_v62 = vld [vmem:[%s6919_s6 + $0x48] sm:$0xff] }
 0x57c   :  { %4600 = vpow2.f32 %v4198_v29  ;;  %2345 = vmatpush.msrb.mxu2 %v6022_v5  ;;  %v6091_v29 = vld [vmem:[%s6919_s6 + $0x68] sm:$0xff]  ;;  %2322 = vmatpush.msrb.mxu1 %v6070_v44 }
 0x57d   :  { %2296 = vmatpush.msrb.mxu0 %v6035_v53 }
 0x57e   :  { %2346 = vmatpush.msrb.mxu2 %v6050_v33 }
 0x57f   :  { %2297 = vmatpush.msrb.mxu0 %v6065_v43 }
 0x580   :  { %v4597_v27 = vpop.eup %4596  ;;  %2347 = vmatpush.msrb.mxu2 %v6086_v62 }
 0x581   :  { %v5877_v28 = vmul.f32 %v4597_v27, %v1953_v34  ;;  %v4599_v26 = vpop.eup %4598  ;;  %v6055_v27 = vld [vmem:[%s6919_s6 + $0x70] sm:$0xff] }
 0x582   :  { %v4601_v10 = vpop.eup %4600  ;;  %v5889_v17 = vadd.f32 1.0, %v4599_v26  ;;  %v6149_v26 = vld [vmem:[%s6912_s4 + $0x38] sm:$0xff] }
 0x583   :  { %4175 = vmatmul.msk.f32.vlgmr.msra.gmra.mxu3 %vm58_vm1, %v5877_v28 }
 0x584   :  { %4602 = vrcp.f32 %v5889_v17  ;;  %2271 = vmatpush.msra.mxu3 %v5930_v2  ;;  %vm2110_vm8 = vweird.f32 %v5889_v17  ;;  %v2116_v12 = vand.u32 2147483648, %v5889_v17  ;;  %v2114_v61 = vand.u32 2147483647, %v5889_v17 }
 0x586   :  { %2272 = vmatpush.msra.mxu3 %v5957_v6  ;;  %vm2115_vm13 = vcmp.eq.f32.partialorder %v2114_v61, 8.507059e+37 }
 0x588   :  { %2273 = vmatpush.msra.mxu3 %v5979_v9 }
 0x58a   :  { %v5895_v35 = vpop.eup %4602  ;;  %2274 = vmatpush.msra.mxu3 %v6003_v56 }
 0x58b   :  { %4196 = vmatmul.msk.f32.vlgmr.msrb.gmra.mxu3 %vm58_vm1, %v5797_v25  ;;  %v5891_v25 = vadd.f32 1.0, %v4601_v10  ;;  %v2106_v57 = vmul.f32 %v5895_v35, %v5889_v17  ;;  %vm2111_vm6 = vweird.f32 %v5895_v35  ;;  %v6104_v10 = vld [vmem:[%s6919_s6] sm:$0xff] }
 0x58c   :  { %2370 = vmatpush.msrb.mxu3 %v6027_v31  ;;  %vm6075_vm10 = vmor %vm2110_vm8, %vm2111_vm6  ;;  %v6109_v17 = vld [vmem:[%s6919_s6 + $0x20] sm:$0xff]  ;;  %2298 = vmatpush.msrb.mxu0 %v6104_v10 }
 0x58d   :  { %4604 = vrcp.f32 %v5891_v25  ;;  %v2107_v52 = vsub.f32 1.0, %v2106_v57  ;;  %v2135_v34 = vand.u32 2147483648, %v5891_v25  ;;  %vm2129_vm9 = vweird.f32 %v5891_v25  ;;  %2323 = vmatpush.msrb.mxu1 %v6109_v17 }
 0x58e   :  { %v2133_v15 = vand.u32 2147483647, %v5891_v25  ;;  %2371 = vmatpush.msrb.mxu3 %v6055_v27 }
 0x58f   :  { %v2108_v19 = vmul.f32 %v5895_v35, %v2107_v52 }
 0x590   :  { %2372 = vmatpush.msrb.mxu3 %v6091_v29  ;;  %vm2134_vm14 = vcmp.eq.f32.partialorder %v2133_v15, 8.507059e+37  ;;  %v6144_v15 = vld [vmem:[%s6912_s4 + $0x18] sm:$0xff] }
 0x591   :  { %v2109_v22 = vadd.f32 %v5895_v35, %v2108_v19 }
 0x593   :  { %v5897_v36 = vpop.eup %4604 }
 0x594   :  { %v2125_v59 = vmul.f32 %v5897_v36, %v5891_v25  ;;  %vm2130_vm7 = vweird.f32 %v5897_v36  ;;  %v2113_v25 = vsel %vm6075_vm10, %v5895_v35, %v2109_v22  ;;  %v2136_v35 = vor.u32 1.1754944e-38, %v2135_v34 }
 0x595   :  { %vm6095_vm11 = vmor %vm2129_vm9, %vm2130_vm7 }
 0x596   :  { %v2126_v45 = vsub.f32 1.0, %v2125_v59  ;;  %v2117_v59 = vor.u32 1.1754944e-38, %v2116_v12 }
 0x598   :  { %v2127_v48 = vmul.f32 %v5897_v36, %v2126_v45  ;;  %v2118_v52 = vsel %vm2115_vm13, %v2117_v59, %v2113_v25  ;;  %v6158_v25 = vld [vmem:[%s6912_s4 + $0x58] sm:$0xff]  ;;  %v6185_v59 = vld [vmem:[%s6912_s4 + $0x8] sm:$0xff] }
 0x59a   :  { %v2128_v13 = vadd.f32 %v5897_v36, %v2127_v48 }
 0x606   :  { %v1988_v40 = vpop.f32.mrf.mxu3 }
 0x607   :  { %v1989_v38 = vadd.f32 %v4449_v47, %v1988_v40  ;;  %v2132_v47 = vsel %vm6095_vm11, %v5897_v36, %v2128_v13  ;;  %v6122_v40 = vld [vmem:[%s6919_s6 + $0x40] sm:$0xff] }
 0x608   :  { %v2137_v45 = vsel %vm2134_vm14, %v2136_v35, %v2132_v47  ;;  %2348 = vmatpush.msrb.mxu2 %v6122_v40  ;;  %v6167_v47 = vld [vmem:[%s6912_s4 + $0x10] sm:$0xff] }
 0x609   :  { %4176 = vst.msk [vmem:[%s6922_s10 + $0x6] sm:$0x3] %vm545_vm12, %v1989_v38  ;;  %v6127_v38 = vld [vmem:[%s6919_s6 + $0x60] sm:$0xff]  ;;  %v2159_v1 = vmul.f32 %v2137_v45, %v5794_v3  ;;  %v6179_v35 = vld [vmem:[%s6912_s4 + $0x50] sm:$0xff] }
 0x60a   :  { %2373 = vmatpush.msrb.mxu3 %v6127_v38  ;;  %v6206_v45 = vld [vmem:[%s6912_s4] sm:$0xff] }
 0x60e   :  { %v2097_v7 = vpop.f32.mrf.mxu3 }
 0x60f   :  { %v2100_v30 = vadd.f32 %v4180_v24, %v2097_v7 }
 0x611   :  { %v4199_v41 = vmul.f32 -1.442695, %v2100_v30 }
 0x613   :  { %4606 = vpow2.f32 %v4199_v41 }
 0x614   :  { %4608 = vtanh.f32 %v2075_v11 }
 0x619   :  { %v4607_v57 = vpop.eup %4606 }
 0x61a   :  { %v2143_v36 = vadd.f32 1.0, %v4607_v57  ;;  %v4609_v24 = vpop.eup %4608  ;;  %v6172_v57 = vld [vmem:[%s6912_s4 + $0x30] sm:$0xff] }
 0x61b   :  { %v2160_v7 = vmul.f32 %v4609_v24, %v2118_v52  ;;  %v6197_v52 = vld [vmem:[%s6912_s4 + $0x48] sm:$0xff]  ;;  %v6211_v24 = vld [vmem:[%s6912_s4 + $0x20] sm:$0xff] }
 0x61c   :  { %4610 = vrcp.f32 %v2143_v36  ;;  %v2155_v41 = vand.u32 2147483648, %v2143_v36  ;;  %v2153_v22 = vand.u32 2147483647, %v2143_v36  ;;  %vm2149_vm2 = vweird.f32 %v2143_v36 }
 0x61d   :  { %v6136_v48 = vadd.f32 %v2160_v7, %v2159_v1  ;;  %v6220_v1 = vld [vmem:[%s6912_s4 + $0x40] sm:$0xff] }
 0x61e   :  { %v2156_v34 = vor.u32 1.1754944e-38, %v2155_v41  ;;  %vm2154_vm4 = vcmp.eq.f32.partialorder %v2153_v22, 8.507059e+37 }
 0x61f   :  { %4612 = vtanh.f32 %v6136_v48 }
 0x622   :  { %v4611_v30 = vpop.eup %4610 }
 0x623   :  { %v2145_v55 = vmul.f32 %v4611_v30, %v2143_v36  ;;  %vm2150_vm15 = vweird.f32 %v4611_v30  ;;  %v6190_v36 = vld [vmem:[%s6912_s4 + $0x28] sm:$0xff] }
 0x624   :  { %vm2151_vm3 = vmor %vm2149_vm2, %vm2150_vm15 }
 0x625   :  { %v2146_v19 = vsub.f32 1.0, %v2145_v55  ;;  %v4613_v51 = vpop.eup %4612  ;;  %v6292_v55 = vld [vmem:[%s6920_s8] sm:$0xff] }
 0x627   :  { %v2147_v11 = vmul.f32 %v4611_v30, %v2146_v19 }
 0x629   :  { %v2148_v13 = vadd.f32 %v4611_v30, %v2147_v11 }
 0x62b   :  { %v2152_v12 = vsel %vm2151_vm3, %v4611_v30, %v2148_v13  ;;  %v4452_v30 = vld [vmem:[%s6913_s7 + $0x2] ss:$0 sm:$0xff] }
 0x62c   :  { %v2157_v3 = vsel %vm2154_vm4, %v2156_v34, %v2152_v12 }
 0x62d   :  { %v6139_v61 = vmul.f32 %v4613_v51, %v2157_v3 }
 0x62f   :  { %4200 = vmatmul.msk.f32.vlgmr.msra.gmra.mxu0 %vm58_vm1, %v6139_v61  ;;  %4206 = vmatmul.msk.f32.vlgmr.msra.gmra.mxu1 %vm58_vm1, %v6139_v61 }
 0x630   :  { %4212 = vmatmul.msk.f32.vlgmr.msra.gmra.mxu2 %vm58_vm1, %v6139_v61  ;;  %4218 = vmatmul.msk.f32.vlgmr.msra.gmra.mxu3 %vm58_vm1, %v6139_v61 }
 0x631   :  { %2499 = vmatpush.msra.mxu1 %v6144_v15  ;;  %2524 = vmatpush.msra.mxu2 %v6149_v26 }
 0x632   :  { %2549 = vmatpush.msra.mxu3 %v6158_v25 }
 0x633   :  { %2500 = vmatpush.msra.mxu1 %v6167_v47  ;;  %2525 = vmatpush.msra.mxu2 %v6172_v57 }
 0x634   :  { %2550 = vmatpush.msra.mxu3 %v6179_v35 }
 0x635   :  { %2501 = vmatpush.msra.mxu1 %v6185_v59  ;;  %2526 = vmatpush.msra.mxu2 %v6190_v36 }
 0x636   :  { %2551 = vmatpush.msra.mxu3 %v6197_v52 }
 0x637   :  { %4219 = vmatmul.msk.f32.vlgmr.msrb.gmra.mxu0 %vm58_vm1, %v5877_v28  ;;  %4224 = vmatmul.msk.f32.vlgmr.msrb.gmra.mxu1 %vm58_vm1, %v5877_v28 }
 0x638   :  { %4229 = vmatmul.msk.f32.vlgmr.msrb.gmra.mxu2 %vm58_vm1, %v5877_v28  ;;  %4234 = vmatmul.msk.f32.vlgmr.msrb.gmra.mxu3 %vm58_vm1, %v5877_v28 }
 0x639   :  { %2502 = vmatpush.msra.mxu1 %v6206_v45  ;;  %2527 = vmatpush.msra.mxu2 %v6211_v24 }
 0x63a   :  { %2552 = vmatpush.msra.mxu3 %v6220_v1 }
 0x63b   :  { %2697 = vmatpush.msrb.mxu2 %v5915_v21  ;;  %2669 = vmatpush.msrb.mxu1 %v5910_v20  ;;  %v4450_v21 = vld [vmem:[%s6913_s7] ss:$0 sm:$0xff] }
 0x63c   :  { %2725 = vmatpush.msrb.mxu3 %v5920_v54  ;;  %v4451_v54 = vld [vmem:[%s6913_s7 + $0x1] ss:$0 sm:$0xff] }
 0x63d   :  { %2698 = vmatpush.msrb.mxu2 %v5942_v23  ;;  %2670 = vmatpush.msrb.mxu1 %v5937_v37 }
 0x63e   :  { %2726 = vmatpush.msrb.mxu3 %v5947_v0 }
 0x63f   :  { %2699 = vmatpush.msrb.mxu2 %v5967_v50  ;;  %4244 = vmatmul.msk.f32.vlgmr.msra.gmra.mxu1 %vm58_vm1, %v6139_v61 }
 0x640   :  { %2727 = vmatpush.msrb.mxu3 %v5974_v49  ;;  %4249 = vmatmul.msk.f32.vlgmr.msra.gmra.mxu2 %vm58_vm1, %v6139_v61 }
 0x641   :  { %4254 = vmatmul.msk.f32.vlgmr.msra.gmra.mxu3 %vm58_vm1, %v6139_v61  ;;  %2671 = vmatpush.msrb.mxu1 %v5962_v18 }
 0x642   :  { %2700 = vmatpush.msrb.mxu2 %v5993_v46  ;;  %2728 = vmatpush.msrb.mxu3 %v5998_v32  ;;  %v4453_v46 = vld [vmem:[%s6913_s7 + $0x3] ss:$0 sm:$0xff] }
 0x643   :  { %2672 = vmatpush.msrb.mxu1 %v5984_v4 }
 0x644   :  { %2802 = vmatpush.msra.mxu2 %v6015_v60  ;;  %2827 = vmatpush.msra.mxu3 %v6022_v5 }
 0x645   :  { %2777 = vmatpush.msra.mxu1 %v6010_v8 }
 0x646   :  { %2803 = vmatpush.msra.mxu2 %v6040_v63  ;;  %2828 = vmatpush.msra.mxu3 %v6050_v33  ;;  %v6271_v33 = vld [vmem:[%s6920_s8 + $0x18] sm:$0xff] }
 0x647   :  { %2778 = vmatpush.msra.mxu1 %v6035_v53  ;;  %2465 = vmatpush.msra.mxu0 %v6271_v33 }
 0x648   :  { %2804 = vmatpush.msra.mxu2 %v6070_v44  ;;  %2829 = vmatpush.msra.mxu3 %v6086_v62  ;;  %v6277_v44 = vld [vmem:[%s6920_s8 + $0x10] sm:$0xff] }
 0x649   :  { %2779 = vmatpush.msra.mxu1 %v6065_v43  ;;  %2466 = vmatpush.msra.mxu0 %v6277_v44 }
 0x64a   :  { %2805 = vmatpush.msra.mxu2 %v6109_v17  ;;  %2830 = vmatpush.msra.mxu3 %v6122_v40  ;;  %v6283_v40 = vld [vmem:[%s6920_s8 + $0x8] sm:$0xff] }
 0x64b   :  { %2780 = vmatpush.msra.mxu1 %v6104_v10  ;;  %2467 = vmatpush.msra.mxu0 %v6283_v40 }
 0x64d   :  { %2468 = vmatpush.msra.mxu0 %v6292_v55 }
 0x64f   :  { %2574 = vmatpush.msrb.mxu0 %v5849_v58 }
 0x651   :  { %2575 = vmatpush.msrb.mxu0 %v5854_v39 }
 0x653   :  { %2576 = vmatpush.msrb.mxu0 %v5863_v42 }
 0x655   :  { %2577 = vmatpush.msrb.mxu0 %v5869_v14 }
 0x6ac   :  { %v2192_v28 = vpop.f32.mrf.mxu0  ;;  %v2220_v20 = vpop.f32.mrf.mxu1 }
 0x6ad   :  { %v2193_v37 = vadd.f32 %v4450_v21, %v2192_v28  ;;  %v2221_v23 = vadd.f32 %v4451_v54, %v2220_v20 }
 0x6b3   :  { %v2276_v0 = vpop.f32.mrf.mxu3  ;;  %v2248_v5 = vpop.f32.mrf.mxu2 }
 0x6b4   :  { %v2300_v18 = vpop.f32.mrf.mxu0  ;;  %v2325_v50 = vpop.f32.mrf.mxu1  ;;  %v2277_v60 = vadd.f32 %v4453_v46, %v2276_v0  ;;  %v2249_v11 = vadd.f32 %v4452_v30, %v2248_v5 }
 0x6b5   :  { %v2303_v49 = vadd.f32 %v2300_v18, %v2193_v37  ;;  %v2328_v4 = vadd.f32 %v2325_v50, %v2221_v23 }
 0x6b7   :  { %v4235_v32 = vmul.f32 -1.442695, %v2303_v49  ;;  %v4236_v8 = vmul.f32 -1.442695, %v2328_v4 }
 0x6b9   :  { %4614 = vpow2.f32 %v4235_v32 }
 0x6ba   :  { %4616 = vpow2.f32 %v4236_v8 }
 0x6bb   :  { %v2375_v53 = vpop.f32.mrf.mxu3  ;;  %v2350_v19 = vpop.f32.mrf.mxu2 }
 0x6bc   :  { %v2378_v63 = vadd.f32 %v2375_v53, %v2277_v60  ;;  %v2353_v34 = vadd.f32 %v2350_v19, %v2249_v11 }
 0x6be   :  { %v4237_v43 = vmul.f32 -1.442695, %v2378_v63 }
 0x6bf   :  { %v4615_v62 = vpop.eup %4614 }
 0x6c0   :  { %v4617_v10 = vpop.eup %4616  ;;  %v2382_v17 = vadd.f32 1.0, %v4615_v62  ;;  %4618 = vpow2.f32 %v4237_v43 }
 0x6c1   :  { %v2401_v7 = vadd.f32 1.0, %v4617_v10 }
 0x6c2   :  { %4620 = vrcp.f32 %v2382_v17  ;;  %v2394_v21 = vand.u32 2147483648, %v2382_v17  ;;  %v2392_v37 = vand.u32 2147483647, %v2382_v17  ;;  %vm2388_vm7 = vweird.f32 %v2382_v17 }
 0x6c3   :  { %4622 = vrcp.f32 %v2401_v7  ;;  %v2413_v58 = vand.u32 2147483648, %v2401_v7  ;;  %v2411_v23 = vand.u32 2147483647, %v2401_v7  ;;  %vm2407_vm8 = vweird.f32 %v2401_v7 }
 0x6c4   :  { %v2395_v42 = vor.u32 1.1754944e-38, %v2394_v21  ;;  %vm2393_vm11 = vcmp.eq.f32.partialorder %v2392_v37, 8.507059e+37  ;;  %v4243_v37 = vld [vmem:[%s6916_s3 + $0xa] sm:$0x3] }
 0x6c5   :  { %v2414_v14 = vor.u32 1.1754944e-38, %v2413_v58  ;;  %vm2412_vm13 = vcmp.eq.f32.partialorder %v2411_v23, 8.507059e+37 }
 0x6c6   :  { %v4619_v41 = vpop.eup %4618 }
 0x6c7   :  { %v2421_v22 = vadd.f32 1.0, %v4619_v41 }
 0x6c8   :  { %v4621_v13 = vpop.eup %4620 }
 0x6c9   :  { %v4623_v12 = vpop.eup %4622  ;;  %v2384_v51 = vmul.f32 %v4621_v13, %v2382_v17  ;;  %4624 = vrcp.f32 %v2421_v22  ;;  %vm2389_vm5 = vweird.f32 %v4621_v13  ;;  %v2433_v17 = vand.u32 2147483648, %v2421_v22 }
 0x6ca   :  { %v2403_v3 = vmul.f32 %v4623_v12, %v2401_v7  ;;  %4626 = vtanh.f32 %v2353_v34  ;;  %vm2408_vm6 = vweird.f32 %v4623_v12  ;;  %vm2390_vm9 = vmor %vm2388_vm7, %vm2389_vm5  ;;  %vm2427_vm15 = vweird.f32 %v2421_v22 }
 0x6cb   :  { %v2385_v28 = vsub.f32 1.0, %v2384_v51  ;;  %vm2409_vm10 = vmor %vm2407_vm8, %vm2408_vm6  ;;  %v2431_v7 = vand.u32 2147483647, %v2421_v22  ;;  %v2434_v19 = vor.u32 1.1754944e-38, %v2433_v17 }
 0x6cc   :  { %v2404_v20 = vsub.f32 1.0, %v2403_v3 }
 0x6cd   :  { %v2386_v54 = vmul.f32 %v4621_v13, %v2385_v28  ;;  %vm2432_vm3 = vcmp.eq.f32.partialorder %v2431_v7, 8.507059e+37 }
 0x6ce   :  { %v2405_v39 = vmul.f32 %v4623_v12, %v2404_v20 }
 0x6cf   :  { %v4625_v0 = vpop.eup %4624  ;;  %v2387_v18 = vadd.f32 %v4621_v13, %v2386_v54 }
 0x6d0   :  { %v2406_v50 = vadd.f32 %v4623_v12, %v2405_v39  ;;  %v2423_v49 = vmul.f32 %v4625_v0, %v2421_v22  ;;  %v4627_v46 = vpop.eup %4626  ;;  %vm2428_vm14 = vweird.f32 %v4625_v0 }
 0x6d1   :  { %v2391_v4 = vsel %vm2390_vm9, %v4621_v13, %v2387_v18  ;;  %vm2429_vm2 = vmor %vm2427_vm15, %vm2428_vm14 }
 0x6d2   :  { %v2396_v32 = vsel %vm2393_vm11, %v2395_v42, %v2391_v4  ;;  %v2410_v8 = vsel %vm2409_vm10, %v4623_v12, %v2406_v50  ;;  %v2424_v60 = vsub.f32 1.0, %v2423_v49  ;;  %v4454_v12 = vld [vmem:[#allocation6] ss:$0 sm:$0xff]  ;;  %v4242_v50 = vld [vmem:[%s6918_s2 + $0xa] sm:$0x3]  ;;  %v2554_v49 = vpop.f32.mrf.mxu3 }
 0x6d3   :  { %v2415_v5 = vsel %vm2412_vm13, %v2414_v14, %v2410_v8  ;;  %v2438_v53 = vmul.f32 %v4627_v46, %v2396_v32  ;;  %v2557_v32 = vadd.f32 %v4242_v50, %v2554_v49  ;;  %v6406_v49 = vld [vmem:[%s6912_s4 + $0x68] sm:$0xff] }
 0x6d4   :  { %v2437_v63 = vmul.f32 %v2415_v5, %v5874_v16  ;;  %v2425_v43 = vmul.f32 %v4625_v0, %v2424_v60  ;;  %v4241_v16 = vld [vmem:[%s6915_s1 + $0xa] sm:$0x3] }
 0x6d6   :  { %v6300_v62 = vadd.f32 %v2438_v53, %v2437_v63  ;;  %v2426_v10 = vadd.f32 %v4625_v0, %v2425_v43 }
 0x6d8   :  { %4628 = vtanh.f32 %v6300_v62  ;;  %v2430_v30 = vsel %vm2429_vm2, %v4625_v0, %v2426_v10 }
 0x6d9   :  { %v2435_v11 = vsel %vm2432_vm3, %v2434_v19, %v2430_v30 }
 0x6de   :  { %v4629_v41 = vpop.eup %4628 }
 0x6df   :  { %v6303_v13 = vmul.f32 %v4629_v41, %v2435_v11 }
 0x6e1   :  { %4238 = vmatmul.msk.f32.vlgmr.msra.gmra.mxu0 %vm58_vm1, %v6303_v13 }
 0x6e2   :  { %2753 = vmatpush.msra.mxu0 %v5930_v2  ;;  %v2529_v2 = vpop.f32.mrf.mxu2 }
 0x6e4   :  { %2754 = vmatpush.msra.mxu0 %v5957_v6  ;;  %v4240_v6 = vld [vmem:[%s6914_s0 + $0xa] sm:$0x3] }
 0x6e6   :  { %2755 = vmatpush.msra.mxu0 %v5979_v9  ;;  %v2504_v9 = vpop.f32.mrf.mxu1 }
 0x6e8   :  { %2756 = vmatpush.msra.mxu0 %v6003_v56  ;;  %v2532_v56 = vadd.f32 %v4241_v16, %v2529_v2 }
 0x6e9   :  { %4259 = vmatmul.msk.f32.vlgmr.msrb.gmra.mxu0 %vm58_vm1, %v6139_v61  ;;  %v2507_v61 = vadd.f32 %v4240_v6, %v2504_v9 }
 0x6ea   :  { %2852 = vmatpush.msrb.mxu0 %v6027_v31  ;;  %v4261_v22 = vmul.f32 -1.442695, %v2532_v56 }
 0x6eb   :  { %v4260_v31 = vmul.f32 -1.442695, %v2507_v61 }
 0x6ec   :  { %2853 = vmatpush.msrb.mxu0 %v6055_v27  ;;  %4630 = vpow2.f32 %v4261_v22 }
 0x6ed   :  { %4632 = vpow2.f32 %v4260_v31 }
 0x6ee   :  { %2854 = vmatpush.msrb.mxu0 %v6091_v29 }
 0x6f0   :  { %2855 = vmatpush.msrb.mxu0 %v6127_v38 }
 0x6f2   :  { %v4631_v27 = vpop.eup %4630 }
 0x6f3   :  { %v4633_v29 = vpop.eup %4632  ;;  %v2605_v34 = vadd.f32 1.0, %v4631_v27 }
 0x6f4   :  { %v2586_v38 = vadd.f32 1.0, %v4633_v29 }
 0x6f5   :  { %4634 = vrcp.f32 %v2605_v34  ;;  %v2617_v46 = vand.u32 2147483648, %v2605_v34  ;;  %vm2611_vm5 = vweird.f32 %v2605_v34  ;;  %v2615_v60 = vand.u32 2147483647, %v2605_v34 }
 0x6f6   :  { %4636 = vrcp.f32 %v2586_v38  ;;  %v2598_v5 = vand.u32 2147483648, %v2586_v38  ;;  %vm2592_vm8 = vweird.f32 %v2586_v38  ;;  %v2596_v53 = vand.u32 2147483647, %v2586_v38 }
 0x6f7   :  { %v2618_v10 = vor.u32 1.1754944e-38, %v2617_v46  ;;  %vm2616_vm10 = vcmp.eq.f32.partialorder %v2615_v60, 8.507059e+37 }
 0x6f8   :  { %v2599_v30 = vor.u32 1.1754944e-38, %v2598_v5  ;;  %vm2597_vm11 = vcmp.eq.f32.partialorder %v2596_v53, 8.507059e+37 }
 0x6fb   :  { %v4635_v51 = vpop.eup %4634 }
 0x6fc   :  { %v4637_v28 = vpop.eup %4636  ;;  %v2607_v21 = vmul.f32 %v4635_v51, %v2605_v34  ;;  %vm2612_vm4 = vweird.f32 %v4635_v51 }
 0x6fd   :  { %v2588_v58 = vmul.f32 %v4637_v28, %v2586_v38  ;;  %vm2593_vm6 = vweird.f32 %v4637_v28  ;;  %vm2613_vm7 = vmor %vm2611_vm5, %vm2612_vm4 }
 0x6fe   :  { %v2608_v54 = vsub.f32 1.0, %v2607_v21  ;;  %vm2594_vm9 = vmor %vm2592_vm8, %vm2593_vm6 }
 0x6ff   :  { %v2589_v39 = vsub.f32 1.0, %v2588_v58 }
 0x700   :  { %v2609_v18 = vmul.f32 %v4635_v51, %v2608_v54 }
 0x701   :  { %v2590_v14 = vmul.f32 %v4637_v28, %v2589_v39 }
 0x702   :  { %v2610_v4 = vadd.f32 %v4635_v51, %v2609_v18  ;;  %v6395_v18 = vld [vmem:[%s6912_s4 + $0x78] sm:$0xff] }
 0x703   :  { %v2591_v8 = vadd.f32 %v4637_v28, %v2590_v14 }
 0x704   :  { %v2614_v63 = vsel %vm2613_vm7, %v4635_v51, %v2610_v4 }
 0x705   :  { %v2595_v17 = vsel %vm2594_vm9, %v4637_v28, %v2591_v8  ;;  %v2619_v19 = vsel %vm2616_vm10, %v2618_v10, %v2614_v63 }
 0x706   :  { %v2600_v41 = vsel %vm2597_vm11, %v2599_v30, %v2595_v17  ;;  %v2641_v11 = vmul.f32 %v2619_v19, %v6136_v48 }
 0x75e   :  { %v2470_v3 = vpop.f32.mrf.mxu0 }
 0x75f   :  { %v2471_v20 = vadd.f32 %v4454_v12, %v2470_v3 }
 0x761   :  { %4239 = vst.msk [vmem:[%s6922_s10 + $0x8] sm:$0x3] %vm545_vm12, %v2471_v20 }
 0x766   :  { %v2579_v23 = vpop.f32.mrf.mxu0 }
 0x767   :  { %v2582_v0 = vadd.f32 %v4243_v37, %v2579_v23 }
 0x769   :  { %v4262_v42 = vmul.f32 -1.442695, %v2582_v0  ;;  %v4458_v0 = vld [vmem:[%s6913_s7 + $0x2] ss:$0 sm:$0xff] }
 0x76b   :  { %4638 = vpow2.f32 %v4262_v42  ;;  %v6400_v42 = vld [vmem:[%s6912_s4 + $0x70] sm:$0xff] }
 0x76c   :  { %4640 = vtanh.f32 %v2557_v32  ;;  %v6412_v32 = vld [vmem:[%s6912_s4 + $0x60] sm:$0xff] }
 0x771   :  { %v4639_v43 = vpop.eup %4638 }
 0x772   :  { %v2625_v7 = vadd.f32 1.0, %v4639_v43  ;;  %v4641_v16 = vpop.eup %4640 }
 0x773   :  { %v2642_v2 = vmul.f32 %v4641_v16, %v2600_v41 }
 0x774   :  { %4642 = vrcp.f32 %v2625_v7  ;;  %v2637_v22 = vand.u32 2147483648, %v2625_v7  ;;  %v2635_v27 = vand.u32 2147483647, %v2625_v7  ;;  %vm2631_vm14 = vweird.f32 %v2625_v7 }
 0x775   :  { %v6334_v9 = vadd.f32 %v2642_v2, %v2641_v11 }
 0x776   :  { %v2638_v34 = vor.u32 1.1754944e-38, %v2637_v22  ;;  %vm2636_vm2 = vcmp.eq.f32.partialorder %v2635_v27, 8.507059e+37 }
 0x777   :  { %4644 = vtanh.f32 %v6334_v9 }
 0x77a   :  { %v4643_v6 = vpop.eup %4642 }
 0x77b   :  { %v2627_v56 = vmul.f32 %v4643_v6, %v2625_v7  ;;  %vm2632_vm13 = vweird.f32 %v4643_v6 }
 0x77c   :  { %vm2633_vm15 = vmor %vm2631_vm14, %vm2632_vm13 }
 0x77d   :  { %v2628_v61 = vsub.f32 1.0, %v2627_v56  ;;  %v4645_v48 = vpop.eup %4644 }
 0x77f   :  { %v2629_v31 = vmul.f32 %v4643_v6, %v2628_v61 }
 0x781   :  { %v2630_v29 = vadd.f32 %v4643_v6, %v2629_v31 }
 0x783   :  { %v2634_v38 = vsel %vm2633_vm15, %v4643_v6, %v2630_v29 }
 0x784   :  { %v2639_v12 = vsel %vm2636_vm2, %v2638_v34, %v2634_v38 }
 0x785   :  { %v6337_v51 = vmul.f32 %v4645_v48, %v2639_v12 }
 0x787   :  { %4263 = vmatmul.msk.f32.vlgmr.msrb.gmra.mxu1 %vm58_vm1, %v6337_v51  ;;  %4269 = vmatmul.msk.f32.vlgmr.msrb.gmra.mxu2 %vm58_vm1, %v6337_v51 }
 0x788   :  { %4275 = vmatmul.msk.f32.vlgmr.msrb.gmra.mxu3 %vm58_vm1, %v6337_v51  ;;  %4281 = vmatmul.msk.f32.vlgmr.msra.gmra.mxu0 %vm58_vm1, %v6337_v51 }
 0x789   :  { %2981 = vmatpush.msrb.mxu2 %v6144_v15  ;;  %3006 = vmatpush.msrb.mxu3 %v6149_v26 }
 0x78a   :  { %3031 = vmatpush.msra.mxu0 %v6158_v25  ;;  %2947 = vmatpush.msrb.mxu1 %v6271_v33  ;;  %v4455_v25 = vld [vmem:[%s6913_s7] ss:$0 sm:$0xff] }
 0x78b   :  { %2982 = vmatpush.msrb.mxu2 %v6167_v47  ;;  %3007 = vmatpush.msrb.mxu3 %v6172_v57  ;;  %v4456_v47 = vld [vmem:[%s6913_s7 + $0x3] ss:$0 sm:$0xff] }
 0x78c   :  { %3032 = vmatpush.msra.mxu0 %v6179_v35  ;;  %2948 = vmatpush.msrb.mxu1 %v6277_v44 }
 0x78d   :  { %2983 = vmatpush.msrb.mxu2 %v6185_v59  ;;  %3008 = vmatpush.msrb.mxu3 %v6190_v36 }
 0x78e   :  { %3033 = vmatpush.msra.mxu0 %v6197_v52  ;;  %2949 = vmatpush.msrb.mxu1 %v6283_v40  ;;  %v4457_v52 = vld [vmem:[%s6913_s7 + $0x1] ss:$0 sm:$0xff] }
 0x78f   :  { %4282 = vmatmul.msk.f32.vlgmr.msra.gmra.mxu1 %vm58_vm1, %v6303_v13  ;;  %4287 = vmatmul.msk.f32.vlgmr.msra.gmra.mxu2 %vm58_vm1, %v6303_v13 }
 0x790   :  { %4292 = vmatmul.msk.f32.vlgmr.msra.gmra.mxu3 %vm58_vm1, %v6303_v13  ;;  %4297 = vmatmul.msk.f32.vlgmr.msrb.gmra.mxu0 %vm58_vm1, %v6303_v13 }
 0x791   :  { %2984 = vmatpush.msrb.mxu2 %v6206_v45  ;;  %3009 = vmatpush.msrb.mxu3 %v6211_v24 }
 0x792   :  { %3034 = vmatpush.msra.mxu0 %v6220_v1  ;;  %2950 = vmatpush.msrb.mxu1 %v6292_v55 }
 0x794   :  { %3056 = vmatpush.msra.mxu1 %v6395_v18 }
 0x796   :  { %3057 = vmatpush.msra.mxu1 %v6400_v42 }
 0x797   :  { %4307 = vmatmul.msk.f32.vlgmr.msrb.gmra.mxu2 %vm58_vm1, %v6337_v51 }
 0x798   :  { %4312 = vmatmul.msk.f32.vlgmr.msrb.gmra.mxu3 %vm58_vm1, %v6337_v51  ;;  %4317 = vmatmul.msk.f32.vlgmr.msra.gmra.mxu0 %vm58_vm1, %v6337_v51 }
 0x799   :  { %3058 = vmatpush.msra.mxu1 %v6406_v49 }
 0x79b   :  { %3059 = vmatpush.msra.mxu1 %v6412_v32 }
 0x804   :  { %v2674_v15 = vpop.f32.mrf.mxu1 }
 0x805   :  { %v2758_v26 = vpop.f32.mrf.mxu0  ;;  %v2675_v35 = vadd.f32 %v4455_v25, %v2674_v15 }
 0x806   :  { %v2759_v59 = vadd.f32 %v4456_v47, %v2758_v26 }
 0x80a   :  { %v2702_v57 = vpop.f32.mrf.mxu2 }
 0x80b   :  { %v2703_v40 = vadd.f32 %v4457_v52, %v2702_v57  ;;  %v2730_v58 = vpop.f32.mrf.mxu3 }
 0x80c   :  { %v2782_v36 = vpop.f32.mrf.mxu1  ;;  %v2731_v46 = vadd.f32 %v4458_v0, %v2730_v58  ;;  %v6462_v0 = vld [vmem:[%s6917_s5 + $0x38] sm:$0xff] }
 0x80d   :  { %v2785_v45 = vadd.f32 %v2782_v36, %v2675_v35  ;;  %v2857_v24 = vpop.f32.mrf.mxu0  ;;  %v4303_v36 = vld [vmem:[%s6914_s0 + $0xc] sm:$0x3]  ;;  %3179 = vmatpush.msra.mxu3 %v6462_v0 }
 0x80e   :  { %v2860_v1 = vadd.f32 %v2857_v24, %v2759_v59 }
 0x80f   :  { %v4298_v33 = vmul.f32 -1.442695, %v2785_v45  ;;  %v4304_v45 = vld [vmem:[%s6915_s1 + $0xc] sm:$0x3] }
 0x810   :  { %v4300_v44 = vmul.f32 -1.442695, %v2860_v1 }
 0x811   :  { %4646 = vpow2.f32 %v4298_v33 }
 0x812   :  { %4648 = vpow2.f32 %v4300_v44  ;;  %v2807_v55 = vpop.f32.mrf.mxu2 }
 0x813   :  { %v2810_v13 = vadd.f32 %v2807_v55, %v2703_v40  ;;  %v2832_v4 = vpop.f32.mrf.mxu3 }
 0x814   :  { %v2835_v53 = vadd.f32 %v2832_v4, %v2731_v46  ;;  %v4306_v46 = vld [vmem:[%s6916_s3 + $0xc] sm:$0x3] }
 0x815   :  { %v4299_v3 = vmul.f32 -1.442695, %v2810_v13 }
 0x817   :  { %v4647_v28 = vpop.eup %4646  ;;  %4650 = vpow2.f32 %v4299_v3 }
 0x818   :  { %v4649_v20 = vpop.eup %4648  ;;  %v2864_v21 = vadd.f32 1.0, %v4647_v28  ;;  %v4459_v28 = vld [vmem:[#allocation6] ss:$0 sm:$0xff] }
 0x819   :  { %v6386_v54 = vadd.f32 1.0, %v4649_v20 }
 0x81a   :  { %4652 = vrcp.f32 %v2864_v21  ;;  %v2876_v17 = vand.u32 2147483648, %v2864_v21  ;;  %vm2870_vm4 = vweird.f32 %v2864_v21  ;;  %v2874_v30 = vand.u32 2147483647, %v2864_v21  ;;  %v2986_v52 = vpop.f32.mrf.mxu2 }
 0x81b   :  { %4654 = vrcp.f32 %v6386_v54  ;;  %v2915_v26 = vand.u32 2147483648, %v6386_v54  ;;  %vm2909_vm13 = vweird.f32 %v6386_v54  ;;  %v2913_v25 = vand.u32 2147483647, %v6386_v54  ;;  %v3011_v24 = vpop.f32.mrf.mxu3 }
 0x81c   :  { %v2877_v6 = vor.u32 1.1754944e-38, %v2876_v17  ;;  %vm2875_vm8 = vcmp.eq.f32.partialorder %v2874_v30, 8.507059e+37  ;;  %v2989_v1 = vadd.f32 %v4303_v36, %v2986_v52  ;;  %v3014_v33 = vadd.f32 %v4304_v45, %v3011_v24  ;;  %v6509_v17 = vld [vmem:[%s6917_s5 + $0x8] sm:$0xff] }
 0x81d   :  { %v4651_v37 = vpop.eup %4650  ;;  %v2916_v57 = vor.u32 1.1754944e-38, %v2915_v26  ;;  %vm2914_vm15 = vcmp.eq.f32.partialorder %v2913_v25, 8.507059e+37  ;;  %v6587_v26 = vld [vmem:[%s6919_s6 + $0x30] sm:$0xff]  ;;  %v6612_v52 = vld [vmem:[%s6919_s6 + $0x8] sm:$0xff] }
 0x81e   :  { %v2883_v39 = vadd.f32 1.0, %v4651_v37  ;;  %v4323_v44 = vmul.f32 -1.442695, %v2989_v1  ;;  %v4324_v40 = vmul.f32 -1.442695, %v3014_v33  ;;  %v6617_v45 = vld [vmem:[%s6919_s6 + $0x28] sm:$0xff] }
 0x820   :  { %v4653_v23 = vpop.eup %4652  ;;  %4656 = vrcp.f32 %v2883_v39  ;;  %v2895_v19 = vand.u32 2147483648, %v2883_v39  ;;  %v2893_v16 = vand.u32 2147483647, %v2883_v39  ;;  %vm2889_vm7 = vweird.f32 %v2883_v39 }
 0x821   :  { %v2866_v50 = vmul.f32 %v4653_v23, %v2864_v21  ;;  %v4655_v8 = vpop.eup %4654  ;;  %vm2871_vm3 = vweird.f32 %v4653_v23  ;;  %4658 = vtanh.f32 %v2835_v53  ;;  %v6494_v53 = vld [vmem:[%s6917_s5 + $0x50] sm:$0xff] }
 0x822   :  { %v2905_v10 = vmul.f32 %v4655_v8, %v6386_v54  ;;  %vm2872_vm5 = vmor %vm2870_vm4, %vm2871_vm3  ;;  %v2896_v61 = vor.u32 1.1754944e-38, %v2895_v19  ;;  %vm2894_vm10 = vcmp.eq.f32.partialorder %v2893_v16, 8.507059e+37  ;;  %vm2910_vm11 = vweird.f32 %v4655_v8  ;;  %v6521_v19 = vld [vmem:[%s6917_s5 + $0x48] sm:$0xff]  ;;  %v3036_v16 = vpop.f32.mrf.mxu0 }
 0x823   :  { %v2867_v14 = vsub.f32 1.0, %v2866_v50  ;;  %vm2911_vm14 = vmor %vm2909_vm13, %vm2910_vm11  ;;  %v6467_v50 = vld [vmem:[%s6917_s5 + $0x58] sm:$0xff] }
 0x824   :  { %v2906_v2 = vsub.f32 1.0, %v2905_v10  ;;  %3207 = vmatpush.msrb.mxu0 %v6467_v50  ;;  %v6504_v10 = vld [vmem:[%s6917_s5 + $0x70] sm:$0xff] }
 0x825   :  { %v2868_v60 = vmul.f32 %v4653_v23, %v2867_v14 }
 0x826   :  { %v4657_v5 = vpop.eup %4656  ;;  %v2907_v29 = vmul.f32 %v4655_v8, %v2906_v2  ;;  %3208 = vmatpush.msrb.mxu0 %v6494_v53 }
 0x827   :  { %v2885_v63 = vmul.f32 %v4657_v5, %v2883_v39  ;;  %v2869_v43 = vadd.f32 %v4653_v23, %v2868_v60  ;;  %vm2890_vm6 = vweird.f32 %v4657_v5  ;;  %v4659_v27 = vpop.eup %4658  ;;  %v6484_v60 = vld [vmem:[%s6917_s5 + $0x10] sm:$0xff] }
 0x828   :  { %vm2891_vm9 = vmor %vm2889_vm7, %vm2890_vm6  ;;  %v2908_v15 = vadd.f32 %v4655_v8, %v2907_v29  ;;  %3209 = vmatpush.msrb.mxu0 %v6521_v19  ;;  %v6562_v29 = vld [vmem:[%s6919_s6 + $0x38] sm:$0xff] }
 0x829   :  { %v2886_v7 = vsub.f32 1.0, %v2885_v63  ;;  %v2873_v11 = vsel %vm2872_vm5, %v4653_v23, %v2869_v43  ;;  %v6457_v23 = vld [vmem:[%s6917_s5 + $0x18] sm:$0xff]  ;;  %v4305_v63 = vld [vmem:[%s6918_s2 + $0xc] sm:$0x3] }
 0x82a   :  { %v2878_v22 = vsel %vm2875_vm8, %v2877_v6, %v2873_v11  ;;  %v2912_v47 = vsel %vm2911_vm14, %v4655_v8, %v2908_v15  ;;  %3151 = vmatpush.msra.mxu2 %v6457_v23  ;;  %v6477_v8 = vld [vmem:[%s6917_s5 + $0x78] sm:$0xff]  ;;  %v6531_v11 = vld [vmem:[%s6917_s5] sm:$0xff]  ;;  %v6582_v15 = vld [vmem:[%s6919_s6 + $0x10] sm:$0xff] }
 0x82b   :  { %v2887_v41 = vmul.f32 %v4657_v5, %v2886_v7  ;;  %v2920_v48 = vmul.f32 %v4659_v27, %v2878_v22  ;;  %v2917_v59 = vsel %vm2914_vm15, %v2916_v57, %v2912_v47  ;;  %v6514_v7 = vld [vmem:[%s6917_s5 + $0x28] sm:$0xff]  ;;  %v6550_v22 = vld [vmem:[%s6917_s5 + $0x60] sm:$0xff]  ;;  %v6557_v27 = vld [vmem:[%s6919_s6 + $0x18] sm:$0xff] }
 0x82c   :  { %3152 = vmatpush.msra.mxu2 %v6484_v60  ;;  %v6597_v57 = vld [vmem:[%s6919_s6 + $0x50] sm:$0xff] }
 0x82d   :  { %v2888_v56 = vadd.f32 %v4657_v5, %v2887_v41  ;;  %v6526_v41 = vld [vmem:[%s6917_s5 + $0x68] sm:$0xff] }
 0x82e   :  { %3153 = vmatpush.msra.mxu2 %v6509_v17 }
 0x82f   :  { %v2892_v31 = vsel %vm2891_vm9, %v4657_v5, %v2888_v56  ;;  %v6489_v5 = vld [vmem:[%s6917_s5 + $0x30] sm:$0xff]  ;;  %v6540_v56 = vld [vmem:[%s6917_s5 + $0x20] sm:$0xff] }
 0x830   :  { %v2897_v34 = vsel %vm2894_vm10, %v2896_v61, %v2892_v31  ;;  %3180 = vmatpush.msra.mxu3 %v6489_v5  ;;  %v6545_v61 = vld [vmem:[%s6917_s5 + $0x40] sm:$0xff]  ;;  %3154 = vmatpush.msra.mxu2 %v6531_v11 }
 0x831   :  { %v2919_v38 = vmul.f32 %v2897_v34, %v6300_v62  ;;  %v6569_v34 = vld [vmem:[%s6919_s6 + $0x58] sm:$0xff]  ;;  %3210 = vmatpush.msrb.mxu0 %v6545_v61 }
 0x832   :  { %3181 = vmatpush.msra.mxu3 %v6514_v7  ;;  %3259 = vmatpush.msrb.mxu2 %v6557_v27 }
 0x833   :  { %v6418_v12 = vadd.f32 %v2920_v48, %v2919_v38  ;;  %v6574_v38 = vld [vmem:[%s6919_s6 + $0x78] sm:$0xff]  ;;  %v3039_v48 = vadd.f32 %v4305_v63, %v3036_v16  ;;  %3309 = vmatpush.msra.mxu0 %v6569_v34 }
 0x834   :  { %3182 = vmatpush.msra.mxu3 %v6540_v56  ;;  %3260 = vmatpush.msrb.mxu2 %v6582_v15 }
 0x835   :  { %4660 = vtanh.f32 %v6418_v12  ;;  %3310 = vmatpush.msra.mxu0 %v6597_v57 }
 0x836   :  { %4662 = vpow2.f32 %v4323_v44  ;;  %3284 = vmatpush.msrb.mxu3 %v6562_v29  ;;  %v6633_v44 = vld [vmem:[%s6919_s6 + $0x48] sm:$0xff]  ;;  %3261 = vmatpush.msrb.mxu2 %v6612_v52 }
 0x837   :  { %4664 = vpow2.f32 %v4324_v40  ;;  %v6638_v40 = vld [vmem:[%s6919_s6 + $0x68] sm:$0xff]  ;;  %3311 = vmatpush.msra.mxu0 %v6633_v44 }
 0x838   :  { %3285 = vmatpush.msrb.mxu3 %v6587_v26 }
 0x83a   :  { %3286 = vmatpush.msrb.mxu3 %v6617_v45 }
 0x83b   :  { %v4661_v35 = vpop.eup %4660 }
 0x83c   :  { %v6424_v62 = vmul.f32 %v4661_v35, %v2917_v59  ;;  %v4663_v55 = vpop.eup %4662  ;;  %v6602_v35 = vld [vmem:[%s6919_s6 + $0x70] sm:$0xff] }
 0x83d   :  { %v4665_v13 = vpop.eup %4664  ;;  %v6436_v3 = vadd.f32 1.0, %v4663_v55  ;;  %v4374_v55 = vld [vmem:[%s6912_s4 + $0x38] sm:$0xff] }
 0x83e   :  { %4301 = vmatmul.msk.f32.vlgmr.msrb.gmra.mxu1 %vm58_vm1, %v6424_v62 }
 0x83f   :  { %4666 = vrcp.f32 %v6436_v3  ;;  %3235 = vmatpush.msrb.mxu1 %v6477_v8  ;;  %vm3074_vm4 = vweird.f32 %v6436_v3  ;;  %v3080_v59 = vand.u32 2147483648, %v6436_v3  ;;  %v3078_v1 = vand.u32 2147483647, %v6436_v3 }
 0x841   :  { %3236 = vmatpush.msrb.mxu1 %v6504_v10  ;;  %vm3079_vm8 = vcmp.eq.f32.partialorder %v3078_v1, 8.507059e+37 }
 0x843   :  { %3237 = vmatpush.msrb.mxu1 %v6526_v41 }
 0x845   :  { %v6442_v20 = vpop.eup %4666  ;;  %3238 = vmatpush.msrb.mxu1 %v6550_v22 }
 0x846   :  { %4322 = vmatmul.msk.f32.vlgmr.msra.gmra.mxu1 %vm58_vm1, %v6337_v51  ;;  %v6438_v51 = vadd.f32 1.0, %v4665_v13  ;;  %v3070_v37 = vmul.f32 %v6442_v20, %v6436_v3  ;;  %vm3075_vm2 = vweird.f32 %v6442_v20  ;;  %v6651_v13 = vld [vmem:[%s6919_s6] sm:$0xff] }
 0x847   :  { %3334 = vmatpush.msra.mxu1 %v6574_v38  ;;  %vm6621_vm5 = vmor %vm3074_vm4, %vm3075_vm2  ;;  %v6656_v3 = vld [vmem:[%s6919_s6 + $0x20] sm:$0xff]  ;;  %3262 = vmatpush.msrb.mxu2 %v6651_v13 }
 0x848   :  { %4668 = vrcp.f32 %v6438_v51  ;;  %v3071_v14 = vsub.f32 1.0, %v3070_v37  ;;  %v3099_v36 = vand.u32 2147483648, %v6438_v51  ;;  %vm3093_vm6 = vweird.f32 %v6438_v51  ;;  %3287 = vmatpush.msrb.mxu3 %v6656_v3 }
 0x849   :  { %v3097_v33 = vand.u32 2147483647, %v6438_v51  ;;  %3335 = vmatpush.msra.mxu1 %v6602_v35 }
 0x84a   :  { %v3072_v2 = vmul.f32 %v6442_v20, %v3071_v14 }
 0x84b   :  { %3336 = vmatpush.msra.mxu1 %v6638_v40  ;;  %vm3098_vm9 = vcmp.eq.f32.partialorder %v3097_v33, 8.507059e+37  ;;  %v3450_v33 = vld [vmem:[%s6912_s4 + $0x18] sm:$0xff] }
 0x84c   :  { %v3073_v25 = vadd.f32 %v6442_v20, %v3072_v2 }
 0x84e   :  { %v6444_v21 = vpop.eup %4668 }
 0x84f   :  { %v3089_v39 = vmul.f32 %v6444_v21, %v6438_v51  ;;  %vm3094_vm3 = vweird.f32 %v6444_v21  ;;  %v3077_v51 = vsel %vm6621_vm5, %v6442_v20, %v3073_v25  ;;  %v3081_v20 = vor.u32 1.1754944e-38, %v3080_v59 }
 0x850   :  { %vm6642_vm7 = vmor %vm3093_vm6, %vm3094_vm3 }
 0x851   :  { %v3090_v4 = vsub.f32 1.0, %v3089_v39  ;;  %v3100_v39 = vor.u32 1.1754944e-38, %v3099_v36  ;;  %v3082_v14 = vsel %vm3079_vm8, %v3081_v20, %v3077_v51  ;;  %v4379_v51 = vld [vmem:[%s6912_s4 + $0x58] sm:$0xff]  ;;  %v4378_v20 = vld [vmem:[%s6912_s4 + $0x50] sm:$0xff] }
 0x853   :  { %v3091_v6 = vmul.f32 %v6444_v21, %v3090_v4 }
 0x855   :  { %v3092_v47 = vadd.f32 %v6444_v21, %v3091_v6 }
 0x8bb   :  { %v2952_v58 = vpop.f32.mrf.mxu1 }
 0x8bc   :  { %v2953_v54 = vadd.f32 %v4459_v28, %v2952_v58  ;;  %v3096_v28 = vsel %vm6642_vm7, %v6444_v21, %v3092_v47  ;;  %v6669_v58 = vld [vmem:[%s6919_s6 + $0x40] sm:$0xff] }
 0x8bd   :  { %v3101_v4 = vsel %vm3098_vm9, %v3100_v39, %v3096_v28  ;;  %3312 = vmatpush.msra.mxu0 %v6669_v58  ;;  %v3449_v28 = vld [vmem:[%s6912_s4 + $0x10] sm:$0xff]  ;;  %v3448_v39 = vld [vmem:[%s6912_s4 + $0x8] sm:$0xff] }
 0x8be   :  { %4302 = vst.msk [vmem:[%s6922_s10 + $0xa] sm:$0x3] %vm545_vm12, %v2953_v54  ;;  %v6674_v54 = vld [vmem:[%s6919_s6 + $0x60] sm:$0xff] }
 0x8bf   :  { %3337 = vmatpush.msra.mxu1 %v6674_v54 }
 0x8c3   :  { %v3061_v43 = vpop.f32.mrf.mxu1 }
 0x8c4   :  { %v3064_v30 = vadd.f32 %v4306_v46, %v3061_v43  ;;  %v3123_v43 = vmul.f32 %v3101_v4, %v6334_v9  ;;  %v3447_v4 = vld [vmem:[%s6912_s4] sm:$0xff] }
 0x8c6   :  { %v4325_v31 = vmul.f32 -1.442695, %v3064_v30 }
 0x8c8   :  { %4670 = vpow2.f32 %v4325_v31 }
 0x8c9   :  { %4672 = vtanh.f32 %v3039_v48 }
 0x8ce   :  { %v4671_v37 = vpop.eup %4670 }
 0x8cf   :  { %v3107_v21 = vadd.f32 1.0, %v4671_v37  ;;  %v4673_v46 = vpop.eup %4672  ;;  %v4373_v37 = vld [vmem:[%s6912_s4 + $0x30] sm:$0xff] }
 0x8d0   :  { %v3124_v63 = vmul.f32 %v4673_v46, %v3082_v14  ;;  %v4377_v14 = vld [vmem:[%s6912_s4 + $0x48] sm:$0xff]  ;;  %v4371_v46 = vld [vmem:[%s6912_s4 + $0x20] sm:$0xff] }
 0x8d1   :  { %4674 = vrcp.f32 %v3107_v21  ;;  %v3119_v31 = vand.u32 2147483648, %v3107_v21  ;;  %v3117_v25 = vand.u32 2147483647, %v3107_v21  ;;  %vm3113_vm11 = vweird.f32 %v3107_v21 }
 0x8d2   :  { %v6683_v16 = vadd.f32 %v3124_v63, %v3123_v43  ;;  %v4376_v63 = vld [vmem:[%s6912_s4 + $0x40] sm:$0xff]  ;;  %v4366_v43 = vld [vmem:[%s6914_s0 + $0xe] sm:$0x3] }
 0x8d3   :  { %v3120_v59 = vor.u32 1.1754944e-38, %v3119_v31  ;;  %vm3118_vm14 = vcmp.eq.f32.partialorder %v3117_v25, 8.507059e+37  ;;  %v6801_v25 = vld [vmem:[%s6920_s8 + $0x8] sm:$0xff] }
 0x8d4   :  { %4676 = vtanh.f32 %v6683_v16 }
 0x8d7   :  { %v4675_v30 = vpop.eup %4674 }
 0x8d8   :  { %v3109_v2 = vmul.f32 %v4675_v30, %v3107_v21  ;;  %vm3114_vm10 = vweird.f32 %v4675_v30  ;;  %v4372_v21 = vld [vmem:[%s6912_s4 + $0x28] sm:$0xff] }
 0x8d9   :  { %vm3115_vm13 = vmor %vm3113_vm11, %vm3114_vm10 }
 0x8da   :  { %v3110_v6 = vsub.f32 1.0, %v3109_v2  ;;  %v4677_v24 = vpop.eup %4676  ;;  %v6793_v2 = vld [vmem:[%s6920_s8 + $0x10] sm:$0xff] }
 0x8dc   :  { %v3111_v48 = vmul.f32 %v4675_v30, %v3110_v6 }
 0x8de   :  { %v3112_v47 = vadd.f32 %v4675_v30, %v3111_v48 }
 0x8e0   :  { %v3116_v36 = vsel %vm3115_vm13, %v4675_v30, %v3112_v47  ;;  %v6788_v30 = vld [vmem:[%s6920_s8 + $0x18] sm:$0xff] }
 0x8e1   :  { %v3121_v1 = vsel %vm3118_vm14, %v3120_v59, %v3116_v36  ;;  %v6807_v36 = vld [vmem:[%s6920_s8] sm:$0xff] }
 0x8e2   :  { %v6686_v9 = vmul.f32 %v4677_v24, %v3121_v1 }
 0x8e4   :  { %4326 = vmatmul.msk.f32.vlgmr.msra.gmra.mxu2 %vm58_vm1, %v6686_v9  ;;  %4332 = vmatmul.msk.f32.vlgmr.msra.gmra.mxu3 %vm58_vm1, %v6686_v9 }
 0x8e5   :  { %4338 = vmatmul.msk.f32.vlgmr.msrb.gmra.mxu0 %vm58_vm1, %v6686_v9  ;;  %4344 = vmatmul.msk.f32.vlgmr.msrb.gmra.mxu1 %vm58_vm1, %v6686_v9 }
 0x8e6   :  { %3463 = vmatpush.msra.mxu3 %v3450_v33  ;;  %3488 = vmatpush.msrb.mxu0 %v4374_v55 }
 0x8e7   :  { %3513 = vmatpush.msrb.mxu1 %v4379_v51  ;;  %3429 = vmatpush.msra.mxu2 %v6788_v30  ;;  %v4460_v51 = vld [vmem:[%s6913_s7 + $0x2] ss:$0 sm:$0xff] }
 0x8e8   :  { %3464 = vmatpush.msra.mxu3 %v3449_v28  ;;  %3489 = vmatpush.msrb.mxu0 %v4373_v37 }
 0x8e9   :  { %3514 = vmatpush.msrb.mxu1 %v4378_v20  ;;  %3430 = vmatpush.msra.mxu2 %v6793_v2 }
 0x8ea   :  { %3465 = vmatpush.msra.mxu3 %v3448_v39  ;;  %3490 = vmatpush.msrb.mxu0 %v4372_v21  ;;  %v4368_v39 = vld [vmem:[%s6918_s2 + $0xe] sm:$0x3] }
 0x8eb   :  { %3515 = vmatpush.msrb.mxu1 %v4377_v14  ;;  %3431 = vmatpush.msra.mxu2 %v6801_v25 }
 0x8ec   :  { %4345 = vmatmul.msk.f32.vlgmr.msrb.gmra.mxu2 %vm58_vm1, %v6424_v62  ;;  %4350 = vmatmul.msk.f32.vlgmr.msrb.gmra.mxu3 %vm58_vm1, %v6424_v62 }
 0x8ed   :  { %4355 = vmatmul.msk.f32.vlgmr.msra.gmra.mxu0 %vm58_vm1, %v6424_v62  ;;  %4360 = vmatmul.msk.f32.vlgmr.msra.gmra.mxu1 %vm58_vm1, %v6424_v62 }
 0x8ee   :  { %3466 = vmatpush.msra.mxu3 %v3447_v4  ;;  %3491 = vmatpush.msrb.mxu0 %v4371_v46 }
 0x8ef   :  { %3516 = vmatpush.msrb.mxu1 %v4376_v63  ;;  %3432 = vmatpush.msra.mxu2 %v6807_v36 }
 0x8f0   :  { %3633 = vmatpush.msrb.mxu3 %v6457_v23  ;;  %3661 = vmatpush.msra.mxu0 %v6462_v0  ;;  %v4461_v0 = vld [vmem:[%s6913_s7 + $0x3] ss:$0 sm:$0xff] }
 0x8f1   :  { %3689 = vmatpush.msra.mxu1 %v6467_v50  ;;  %3538 = vmatpush.msrb.mxu2 %v6395_v18 }
 0x8f2   :  { %3634 = vmatpush.msrb.mxu3 %v6484_v60  ;;  %3662 = vmatpush.msra.mxu0 %v6489_v5 }
 0x8f3   :  { %3690 = vmatpush.msra.mxu1 %v6494_v53  ;;  %v4462_v53 = vld [vmem:[%s6913_s7] ss:$0 sm:$0xff]  ;;  %3539 = vmatpush.msrb.mxu2 %v6400_v42 }
 0x8f4   :  { %3635 = vmatpush.msrb.mxu3 %v6509_v17  ;;  %3663 = vmatpush.msra.mxu0 %v6514_v7  ;;  %v4463_v17 = vld [vmem:[%s6913_s7 + $0x1] ss:$0 sm:$0xff] }
 0x8f5   :  { %4370 = vmatmul.msk.f32.vlgmr.msra.gmra.mxu3 %vm58_vm1, %v6686_v9  ;;  %4375 = vmatmul.msk.f32.vlgmr.msrb.gmra.mxu0 %vm58_vm1, %v6686_v9 }
 0x8f6   :  { %4380 = vmatmul.msk.f32.vlgmr.msrb.gmra.mxu1 %vm58_vm1, %v6686_v9  ;;  %3636 = vmatpush.msrb.mxu3 %v6531_v11 }
 0x8f7   :  { %3691 = vmatpush.msra.mxu1 %v6521_v19  ;;  %3664 = vmatpush.msra.mxu0 %v6540_v56 }
 0x8f8   :  { %3741 = vmatpush.msra.mxu3 %v6557_v27  ;;  %3540 = vmatpush.msrb.mxu2 %v6406_v49 }
 0x8f9   :  { %3692 = vmatpush.msra.mxu1 %v6545_v61  ;;  %3766 = vmatpush.msrb.mxu0 %v6562_v29 }
 0x8fa   :  { %3742 = vmatpush.msra.mxu3 %v6582_v15  ;;  %3541 = vmatpush.msrb.mxu2 %v6412_v32 }
 0x8fb   :  { %3791 = vmatpush.msrb.mxu1 %v6569_v34  ;;  %3767 = vmatpush.msrb.mxu0 %v6587_v26 }
 0x8fc   :  { %3743 = vmatpush.msra.mxu3 %v6612_v52 }
 0x8fd   :  { %3792 = vmatpush.msrb.mxu1 %v6597_v57  ;;  %3768 = vmatpush.msrb.mxu0 %v6617_v45  ;;  %v4367_v57 = vld [vmem:[%s6915_s1 + $0xe] sm:$0x3] }
 0x8fe   :  { %3744 = vmatpush.msra.mxu3 %v6651_v13 }
 0x8ff   :  { %3793 = vmatpush.msrb.mxu1 %v6633_v44  ;;  %3769 = vmatpush.msrb.mxu0 %v6656_v3 }
 0x901   :  { %3794 = vmatpush.msrb.mxu1 %v6669_v58 }
 0x962   :  { %v3212_v62 = vpop.f32.mrf.mxu0  ;;  %v3240_v23 = vpop.f32.mrf.mxu1 }
 0x963   :  { %v3241_v5 = vadd.f32 %v4461_v0, %v3240_v23  ;;  %v3213_v20 = vadd.f32 %v4460_v51, %v3212_v62 }
 0x967   :  { %v3156_v50 = vpop.f32.mrf.mxu2  ;;  %v3184_v60 = vpop.f32.mrf.mxu3 }
 0x968   :  { %v3157_v61 = vadd.f32 %v4462_v53, %v3156_v50  ;;  %v3185_v27 = vadd.f32 %v4463_v17, %v3184_v60 }
 0x96a   :  { %v3314_v7 = vpop.f32.mrf.mxu0  ;;  %v3339_v19 = vpop.f32.mrf.mxu1 }
 0x96b   :  { %v3342_v11 = vadd.f32 %v3339_v19, %v3241_v5  ;;  %v3317_v46 = vadd.f32 %v3314_v7, %v3213_v20 }
 0x96d   :  { %v4363_v56 = vmul.f32 -1.442695, %v3342_v11 }
 0x96f   :  { %4678 = vpow2.f32 %v4363_v56  ;;  %v3264_v29 = vpop.f32.mrf.mxu2  ;;  %v3289_v34 = vpop.f32.mrf.mxu3 }
 0x970   :  { %v3267_v15 = vadd.f32 %v3264_v29, %v3157_v61  ;;  %v3292_v26 = vadd.f32 %v3289_v34, %v3185_v27 }
 0x972   :  { %v4361_v52 = vmul.f32 -1.442695, %v3267_v15  ;;  %v4362_v45 = vmul.f32 -1.442695, %v3292_v26  ;;  %v3493_v44 = vpop.f32.mrf.mxu0 }
 0x973   :  { %v3496_v13 = vadd.f32 %v4367_v57, %v3493_v44  ;;  %v3518_v21 = vpop.f32.mrf.mxu1 }
 0x974   :  { %4680 = vpow2.f32 %v4361_v52  ;;  %v3521_v42 = vadd.f32 %v4368_v39, %v3518_v21 }
 0x975   :  { %v4679_v3 = vpop.eup %4678  ;;  %4682 = vpow2.f32 %v4362_v45  ;;  %v4387_v58 = vmul.f32 -1.442695, %v3496_v13 }
 0x976   :  { %v6795_v6 = vadd.f32 1.0, %v4679_v3 }
 0x977   :  { %4684 = vpow2.f32 %v4387_v58 }
 0x978   :  { %v3468_v31 = vpop.f32.mrf.mxu3  ;;  %4686 = vrcp.f32 %v6795_v6 }
 0x979   :  { %v3471_v48 = vadd.f32 %v4366_v43, %v3468_v31 }
 0x97a   :  { %v4681_v47 = vpop.eup %4680 }
 0x97b   :  { %v4386_v59 = vmul.f32 -1.442695, %v3471_v48  ;;  %v4683_v24 = vpop.eup %4682  ;;  %v3346_v1 = vadd.f32 1.0, %v4681_v47 }
 0x97c   :  { %v3365_v33 = vadd.f32 1.0, %v4683_v24 }
 0x97d   :  { %4688 = vpow2.f32 %v4386_v59  ;;  %v4685_v55 = vpop.eup %4684  ;;  %v3356_v60 = vand.u32 2147483647, %v3346_v1  ;;  %v3358_v5 = vand.u32 2147483648, %v3346_v1  ;;  %vm3352_vm15 = vweird.f32 %v3346_v1 }
 0x97e   :  { %4690 = vrcp.f32 %v3346_v1  ;;  %v6816_v28 = vadd.f32 1.0, %v4685_v55  ;;  %v6819_v37 = vpop.eup %4686  ;;  %v3375_v53 = vand.u32 2147483647, %v3365_v33  ;;  %v3377_v17 = vand.u32 2147483648, %v3365_v33 }
 0x97f   :  { %4692 = vrcp.f32 %v3365_v33  ;;  %v3387_v0 = vmul.f32 %v6819_v37, %v6795_v6  ;;  %vm3371_vm3 = vweird.f32 %v3365_v33  ;;  %vm3357_vm5 = vcmp.eq.f32.partialorder %v3356_v60, 8.507059e+37 }
 0x980   :  { %4694 = vrcp.f32 %v6816_v28  ;;  %v3359_v27 = vor.u32 1.1754944e-38, %v3358_v5  ;;  %vm6833_vm7 = vcmp.eq.f32.partialorder %v3375_v53, 8.507059e+37  ;;  %v3378_v26 = vor.u32 1.1754944e-38, %v3377_v17 }
 0x981   :  { %v3388_v56 = vsub.f32 1.0, %v3387_v0  ;;  %v3579_v45 = vand.u32 2147483647, %v6816_v28  ;;  %v3581_v44 = vand.u32 2147483648, %v6816_v28  ;;  %vm3575_vm10 = vweird.f32 %v6816_v28 }
 0x982   :  { %vm3392_vm14 = vweird.f32 %v6819_v37 }
 0x983   :  { %v4689_v14 = vpop.eup %4688  ;;  %v3389_v47 = vmul.f32 %v6819_v37, %v3388_v56 }
 0x984   :  { %v4691_v4 = vpop.eup %4690  ;;  %v6826_v18 = vadd.f32 1.0, %v4689_v14  ;;  %v3582_v14 = vor.u32 1.1754944e-38, %v3581_v44 }
 0x985   :  { %v4693_v63 = vpop.eup %4692  ;;  %v3348_v23 = vmul.f32 %v4691_v4, %v3346_v1  ;;  %vm3353_vm2 = vweird.f32 %v4691_v4 }
 0x986   :  { %v3367_v62 = vmul.f32 %v4693_v63, %v3365_v33  ;;  %4696 = vrcp.f32 %v6826_v18  ;;  %v4695_v7 = vpop.eup %4694  ;;  %vm3372_vm4 = vweird.f32 %v4693_v63  ;;  %vm3354_vm6 = vmor %vm3352_vm15, %vm3353_vm2  ;;  %v3562_v51 = vand.u32 2147483648, %v6826_v18 }
 0x987   :  { %v3349_v50 = vsub.f32 1.0, %v3348_v23  ;;  %4698 = vtanh.f32 %v3317_v46  ;;  %v3571_v32 = vmul.f32 %v4695_v7, %v6816_v28  ;;  %vm3373_vm8 = vmor %vm3371_vm3, %vm3372_vm4  ;;  %vm3576_vm9 = vweird.f32 %v4695_v7 }
 0x988   :  { %v3368_v49 = vsub.f32 1.0, %v3367_v62  ;;  %4700 = vtanh.f32 %v3521_v42  ;;  %vm3577_vm11 = vmor %vm3575_vm10, %vm3576_vm9  ;;  %v3560_v39 = vand.u32 2147483647, %v6826_v18  ;;  %vm3580_vm15 = vcmp.eq.f32.partialorder %v3579_v45, 8.507059e+37 }
 0x989   :  { %v3350_v19 = vmul.f32 %v4691_v4, %v3349_v50  ;;  %v3572_v57 = vsub.f32 1.0, %v3571_v32  ;;  %vm3556_vm2 = vweird.f32 %v6826_v18  ;;  %v3397_v28 = vand.u32 2147483648, %v6795_v6 }
 0x98a   :  { %v3369_v11 = vmul.f32 %v4693_v63, %v3368_v49  ;;  %v3563_v23 = vor.u32 1.1754944e-38, %v3562_v51  ;;  %vm3391_vm4 = vweird.f32 %v6795_v6  ;;  %v3395_v62 = vand.u32 2147483647, %v6795_v6 }
 0x98b   :  { %v3351_v61 = vadd.f32 %v4691_v4, %v3350_v19  ;;  %v3573_v31 = vmul.f32 %v4695_v7, %v3572_v57  ;;  %v3398_v5 = vor.u32 1.1754944e-38, %v3397_v28  ;;  %v4465_v57 = vld [vmem:[%s6913_s7 + $0x1] ss:$0 sm:$0xff] }
 0x98c   :  { %v4697_v29 = vpop.eup %4696  ;;  %v3370_v34 = vadd.f32 %v4693_v63, %v3369_v11 }
 0x98d   :  { %v3355_v52 = vsel %vm3354_vm6, %v4691_v4, %v3351_v61  ;;  %v3552_v13 = vmul.f32 %v4697_v29, %v6826_v18  ;;  %v4699_v3 = vpop.eup %4698  ;;  %v3574_v55 = vadd.f32 %v4695_v7, %v3573_v31  ;;  %vm3557_vm13 = vweird.f32 %v4697_v29  ;;  %vm3393_vm6 = vmor %vm3391_vm4, %vm3392_vm14 }
 0x98e   :  { %v3360_v58 = vsel %vm3357_vm5, %v3359_v27, %v3355_v52  ;;  %v3374_v43 = vsel %vm3373_vm8, %v4693_v63, %v3370_v34  ;;  %v4701_v48 = vpop.eup %4700  ;;  %vm3558_vm3 = vmor %vm3556_vm2, %vm3557_vm13  ;;  %vm3561_vm5 = vcmp.eq.f32.partialorder %v3560_v39, 8.507059e+37 }
 0x98f   :  { %v3402_v59 = vmul.f32 %v4699_v3, %v3360_v58  ;;  %v3379_v24 = vsel %vm6833_vm7, %v3378_v26, %v3374_v43  ;;  %v3553_v1 = vsub.f32 1.0, %v3552_v13  ;;  %v3578_v21 = vsel %vm3577_vm11, %v4695_v7, %v3574_v55  ;;  %v4468_v13 = vld [vmem:[%s6913_s7 + $0x3] ss:$0 sm:$0xff] }
 0x990   :  { %v3401_v33 = vmul.f32 %v3379_v24, %v6418_v12  ;;  %v3390_v12 = vadd.f32 %v6819_v37, %v3389_v47  ;;  %v3583_v63 = vsel %vm3580_vm15, %v3582_v14, %v3578_v21  ;;  %vm3396_vm7 = vcmp.eq.f32.partialorder %v3395_v62, 8.507059e+37 }
 0x991   :  { %v3554_v20 = vmul.f32 %v4697_v29, %v3553_v1  ;;  %v3605_v18 = vmul.f32 %v3583_v63, %v6683_v16  ;;  %v4464_v16 = vld [vmem:[#allocation6] ss:$0 sm:$0xff] }
 0x992   :  { %v6848_v4 = vadd.f32 %v3402_v59, %v3401_v33  ;;  %v3394_v60 = vsel %vm3393_vm6, %v6819_v37, %v3390_v12 }
 0x993   :  { %v3555_v46 = vadd.f32 %v4697_v29, %v3554_v20  ;;  %v3399_v17 = vsel %vm3396_vm7, %v3398_v5, %v3394_v60 }
 0x994   :  { %4702 = vtanh.f32 %v6848_v4 }
 0x995   :  { %v3559_v42 = vsel %vm3558_vm3, %v4697_v29, %v3555_v46  ;;  %v4466_v46 = vld [vmem:[%s6913_s7 + $0x2] ss:$0 sm:$0xff] }
 0x996   :  { %v3564_v0 = vsel %vm3561_vm5, %v3563_v23, %v3559_v42 }
 0x997   :  { %v3606_v50 = vmul.f32 %v4701_v48, %v3564_v0 }
 0x999   :  { %v3607_v49 = vadd.f32 %v3606_v50, %v3605_v18 }
 0x99a   :  { %v4703_v53 = vpop.eup %4702 }
 0x99b   :  { %v3405_v7 = vmul.f32 %v4703_v53, %v3399_v17  ;;  %3923 = vst.msk [vmem:[#allocation3] sm:$0x3] %vm41_vm0, %v3607_v49 }
 0x99d   :  { %4364 = vmatmul.msk.f32.vlgmr.msra.gmra.mxu2 %vm58_vm1, %v3405_v7 }
 0x99e   :  { %3717 = vmatpush.msra.mxu2 %v6477_v8 }
 0x9a0   :  { %3718 = vmatpush.msra.mxu2 %v6504_v10  ;;  %v4369_v10 = vld [vmem:[%s6916_s3 + $0xe] sm:$0x3] }
 0x9a2   :  { %3719 = vmatpush.msra.mxu2 %v6526_v41 }
 0x9a4   :  { %3720 = vmatpush.msra.mxu2 %v6550_v22 }
 0x9a5   :  { %4385 = vmatmul.msk.f32.vlgmr.msrb.gmra.mxu2 %vm58_vm1, %v6686_v9 }
 0x9a6   :  { %3816 = vmatpush.msrb.mxu2 %v6574_v38 }
 0x9a8   :  { %3817 = vmatpush.msrb.mxu2 %v6602_v35 }
 0x9aa   :  { %3818 = vmatpush.msrb.mxu2 %v6638_v40 }
 0x9ac   :  { %3819 = vmatpush.msrb.mxu2 %v6674_v54 }
 0xa20   :  { %v3434_v6 = vpop.f32.mrf.mxu2 }
 0xa21   :  { %v3435_v8 = vadd.f32 %v4464_v16, %v3434_v6 }
 0xa23   :  { %4365 = vst.msk [vmem:[%s6922_s10 + $0xc] sm:$0x3] %vm545_vm12, %v3435_v8 }
 0xa28   :  { %v3543_v41 = vpop.f32.mrf.mxu2 }
 0xa29   :  { %v3546_v22 = vadd.f32 %v4369_v10, %v3543_v41 }
 0xa2b   :  { %v4388_v38 = vmul.f32 -1.442695, %v3546_v22 }
 0xa2d   :  { %4704 = vpow2.f32 %v4388_v38 }
 0xa33   :  { %v4705_v35 = vpop.eup %4704 }
 0xa34   :  { %v3589_v40 = vadd.f32 1.0, %v4705_v35 }
 0xa36   :  { %4706 = vrcp.f32 %v3589_v40  ;;  %v3601_v19 = vand.u32 2147483648, %v3589_v40  ;;  %v3599_v32 = vand.u32 2147483647, %v3589_v40  ;;  %vm3595_vm9 = vweird.f32 %v3589_v40 }
 0xa37   :  { %4708 = vtanh.f32 %v3607_v49 }
 0xa38   :  { %v3602_v61 = vor.u32 1.1754944e-38, %v3601_v19  ;;  %vm3600_vm11 = vcmp.eq.f32.partialorder %v3599_v32, 8.507059e+37 }
 0xa3c   :  { %v4707_v54 = vpop.eup %4706 }
 0xa3d   :  { %v3591_v9 = vmul.f32 %v4707_v54, %v3589_v40  ;;  %vm3596_vm8 = vweird.f32 %v4707_v54  ;;  %v4709_v29 = vpop.eup %4708 }
 0xa3e   :  { %vm3597_vm10 = vmor %vm3595_vm9, %vm3596_vm8 }
 0xa3f   :  { %v3592_v37 = vsub.f32 1.0, %v3591_v9 }
 0xa41   :  { %v3593_v11 = vmul.f32 %v4707_v54, %v3592_v37 }
 0xa43   :  { %v3594_v56 = vadd.f32 %v4707_v54, %v3593_v11 }
 0xa45   :  { %v3598_v27 = vsel %vm3597_vm10, %v4707_v54, %v3594_v56 }
 0xa46   :  { %v3603_v34 = vsel %vm3600_vm11, %v3602_v61, %v3598_v27 }
 0xa47   :  { %v3609_v15 = vmul.f32 %v4709_v29, %v3603_v34 }
 0xa49   :  { %4389 = vmatmul.msk.f32.vlgmr.msrb.gmra.mxu3 %vm58_vm1, %v3609_v15  ;;  %3922 = vst.msk [vmem:[#allocation2] sm:$0x3] %vm41_vm0, %v3609_v15  ;;  %4395 = vmatmul.msk.f32.vlgmr.msra.gmra.mxu0 %vm58_vm1, %v3609_v15 }
 0xa4a   :  { %4401 = vmatmul.msk.f32.vlgmr.msra.gmra.mxu1 %vm58_vm1, %v3609_v15  ;;  %4407 = vmatmul.msk.f32.vlgmr.msra.gmra.mxu2 %vm58_vm1, %v3609_v15 }
 0xa4b   :  { %3911 = vmatpush.msrb.mxu3 %v6788_v30 }
 0xa4d   :  { %3912 = vmatpush.msrb.mxu3 %v6793_v2 }
 0xa4f   :  { %3913 = vmatpush.msrb.mxu3 %v6801_v25  ;;  %v4467_v25 = vld [vmem:[%s6913_s7] ss:$0 sm:$0xff] }
 0xa51   :  { %4408 = vmatmul.msk.f32.vlgmr.msra.gmra.mxu3 %vm58_vm1, %v3405_v7  ;;  %4413 = vmatmul.msk.f32.vlgmr.msrb.gmra.mxu0 %vm58_vm1, %v3405_v7 }
 0xa52   :  { %4418 = vmatmul.msk.f32.vlgmr.msrb.gmra.mxu1 %vm58_vm1, %v3405_v7  ;;  %4423 = vmatmul.msk.f32.vlgmr.msrb.gmra.mxu2 %vm58_vm1, %v3405_v7 }
 0xa53   :  { %3914 = vmatpush.msrb.mxu3 %v6807_v36 }
 0xac6   :  { %v3666_v26 = vpop.f32.mrf.mxu0 }
 0xac7   :  { %v3667_v52 = vadd.f32 %v4465_v57, %v3666_v26  ;;  %v3694_v55 = vpop.f32.mrf.mxu1 }
 0xac8   :  { %v3695_v23 = vadd.f32 %v4466_v46, %v3694_v55 }
 0xacc   :  { %v3638_v30 = vpop.f32.mrf.mxu3 }
 0xacd   :  { %v3722_v2 = vpop.f32.mrf.mxu2  ;;  %v3639_v36 = vadd.f32 %v4467_v25, %v3638_v30 }
 0xace   :  { %v3771_v45 = vpop.f32.mrf.mxu0  ;;  %v3723_v58 = vadd.f32 %v4468_v13, %v3722_v2 }
 0xacf   :  { %v3774_v44 = vadd.f32 %v3771_v45, %v3667_v52  ;;  %v3796_v63 = vpop.f32.mrf.mxu1 }
 0xad0   :  { %v3799_v0 = vadd.f32 %v3796_v63, %v3695_v23 }
 0xad1   :  { %v4425_v3 = vmul.f32 -1.442695, %v3774_v44 }
 0xad3   :  { %4710 = vpow2.f32 %v4425_v3 }
 0xad4   :  { %v3746_v43 = vpop.f32.mrf.mxu3 }
 0xad5   :  { %v3749_v31 = vadd.f32 %v3746_v43, %v3639_v36  ;;  %v3821_v48 = vpop.f32.mrf.mxu2 }
 0xad6   :  { %v3824_v47 = vadd.f32 %v3821_v48, %v3723_v58 }
 0xad7   :  { %v4424_v59 = vmul.f32 -1.442695, %v3749_v31 }
 0xad8   :  { %v4426_v24 = vmul.f32 -1.442695, %v3824_v47 }
 0xad9   :  { %v4711_v1 = vpop.eup %4710  ;;  %4712 = vpow2.f32 %v4424_v59 }
 0xada   :  { %v3847_v33 = vadd.f32 1.0, %v4711_v1  ;;  %4714 = vpow2.f32 %v4426_v24 }
 0xadc   :  { %4716 = vrcp.f32 %v3847_v33  ;;  %v3859_v5 = vand.u32 2147483648, %v3847_v33  ;;  %vm3853_vm14 = vweird.f32 %v3847_v33  ;;  %v3857_v53 = vand.u32 2147483647, %v3847_v33 }
 0xade   :  { %v3860_v10 = vor.u32 1.1754944e-38, %v3859_v5  ;;  %vm3858_vm3 = vcmp.eq.f32.partialorder %v3857_v53, 8.507059e+37 }
 0xadf   :  { %v4713_v51 = vpop.eup %4712 }
 0xae0   :  { %v4715_v20 = vpop.eup %4714  ;;  %v3828_v39 = vadd.f32 1.0, %v4713_v51 }
 0xae1   :  { %v3867_v21 = vadd.f32 1.0, %v4715_v20 }
 0xae2   :  { %v4717_v14 = vpop.eup %4716  ;;  %4718 = vrcp.f32 %v3828_v39  ;;  %v3840_v7 = vand.u32 2147483648, %v3828_v39  ;;  %v3838_v8 = vand.u32 2147483647, %v3828_v39  ;;  %vm3834_vm4 = vweird.f32 %v3828_v39 }
 0xae3   :  { %v3849_v12 = vmul.f32 %v4717_v14, %v3847_v33  ;;  %4720 = vrcp.f32 %v3867_v21  ;;  %vm3854_vm13 = vweird.f32 %v4717_v14  ;;  %v3879_v61 = vand.u32 2147483648, %v3867_v21 }
 0xae4   :  { %vm3855_vm15 = vmor %vm3853_vm14, %vm3854_vm13  ;;  %4722 = vtanh.f32 %v3799_v0  ;;  %v3841_v35 = vor.u32 1.1754944e-38, %v3840_v7  ;;  %vm3839_vm6 = vcmp.eq.f32.partialorder %v3838_v8, 8.507059e+37  ;;  %vm3873_vm8 = vweird.f32 %v3867_v21 }
 0xae5   :  { %v3850_v28 = vsub.f32 1.0, %v3849_v12  ;;  %v3877_v27 = vand.u32 2147483647, %v3867_v21  ;;  %v3880_v34 = vor.u32 1.1754944e-38, %v3879_v61 }
 0xae7   :  { %v3851_v42 = vmul.f32 %v4717_v14, %v3850_v28  ;;  %vm3878_vm10 = vcmp.eq.f32.partialorder %v3877_v27, 8.507059e+37 }
 0xae8   :  { %v4719_v62 = vpop.eup %4718 }
 0xae9   :  { %v4721_v18 = vpop.eup %4720  ;;  %v3852_v50 = vadd.f32 %v4717_v14, %v3851_v42  ;;  %v3830_v60 = vmul.f32 %v4719_v62, %v3828_v39  ;;  %vm3835_vm2 = vweird.f32 %v4719_v62 }
 0xaea   :  { %v3869_v49 = vmul.f32 %v4721_v18, %v3867_v21  ;;  %vm3836_vm5 = vmor %vm3834_vm4, %vm3835_vm2  ;;  %v4723_v54 = vpop.eup %4722  ;;  %vm3874_vm7 = vweird.f32 %v4721_v18 }
 0xaeb   :  { %v3831_v17 = vsub.f32 1.0, %v3830_v60  ;;  %v3856_v16 = vsel %vm3855_vm15, %v4717_v14, %v3852_v50  ;;  %vm3875_vm9 = vmor %vm3873_vm8, %vm3874_vm7 }
 0xaec   :  { %v3870_v41 = vsub.f32 1.0, %v3869_v49  ;;  %v3861_v38 = vsel %vm3858_vm3, %v3860_v10, %v3856_v16 }
 0xaed   :  { %v3832_v6 = vmul.f32 %v4719_v62, %v3831_v17  ;;  %v3883_v19 = vmul.f32 %v3861_v38, %v6848_v4  ;;  %v4469_v4 = vld [vmem:[#allocation6] ss:$0 sm:$0xff] }
 0xaee   :  { %v3871_v37 = vmul.f32 %v4721_v18, %v3870_v41 }
 0xaef   :  { %v3833_v22 = vadd.f32 %v4719_v62, %v3832_v6 }
 0xaf0   :  { %v3872_v56 = vadd.f32 %v4721_v18, %v3871_v37 }
 0xaf1   :  { %v3837_v40 = vsel %vm3836_vm5, %v4719_v62, %v3833_v22 }
 0xaf2   :  { %v3842_v9 = vsel %vm3839_vm6, %v3841_v35, %v3837_v40  ;;  %v3876_v29 = vsel %vm3875_vm9, %v4721_v18, %v3872_v56 }
 0xaf3   :  { %v3884_v11 = vmul.f32 %v4723_v54, %v3842_v9  ;;  %v3881_v26 = vsel %vm3878_vm10, %v3880_v34, %v3876_v29 }
 0xaf5   :  { %v3885_v32 = vadd.f32 %v3884_v11, %v3883_v19 }
 0xaf7   :  { %4724 = vtanh.f32 %v3885_v32  ;;  %3925 = vst.msk [vmem:[#allocation5] sm:$0x3] %vm41_vm0, %v3885_v32 }
 0xafd   :  { %v4725_v15 = vpop.eup %4724 }
 0xafe   :  { %v3887_v57 = vmul.f32 %v4725_v15, %v3881_v26 }
 0xb00   :  { %4427 = vmatmul.msk.f32.vlgmr.msrb.gmra.mxu3 %vm58_vm1, %v3887_v57  ;;  %3924 = vst.msk [vmem:[#allocation4] sm:$0x3] %vm41_vm0, %v3887_v57 }
 0xb83   :  { %v3916_v30 = vpop.f32.mrf.mxu3 }
 0xb84   :  { %v3917_v52 = vadd.f32 %v4469_v4, %v3916_v30 }
 0xb86   :  { %4428 = vst.msk [vmem:[%s6922_s10 + $0xe] sm:$0x3] %vm545_vm12, %v3917_v52 }

</bundles_post_ra>
